<compile_context>
chip_gen: v7x
topology: tpu7x:2x2x1
jax: 0.10.0
libtpu: 0.0.40
codegen_flags: <defaults>
</compile_context>

<pallas_src>
import functools

import numpy as np
import jax
import jax.numpy as jnp
from jax import lax
from jax.experimental import pallas as pl
from jax.experimental.pallas import tpu as pltpu


# ------------------------------ Pallas kernel -------------------------------

def _encoder_bottleneck_kernel(x_ref, w1_ref, b1_ref, w2_ref, b2_ref,
                               w3_ref, b3_ref, wd_ref, bd_ref,
                               o_ref, y1s_ref):
    """Fused EncoderBottleneck forward for one batch element.

    x_ref : (1, 2, Hq, Wq, 2*Cp) bf16, parity-packed input:
            x_ref[0, py, qy, qx, px*Cp + c] == x[2*qy+py, 2*qx+px, c]
    w1_ref: (Cp, Wd)   bf16 (BN1 scale folded)   b1_ref: (1, Wd) f32
    w2_ref: (9, Wd, Wd) bf16 (BN2 scale folded)  b2_ref: (1, Wd) f32
    w3_ref: (Wd, Co)   bf16 (BN3 scale folded)   b3_ref: (1, Co) f32
    wd_ref: (Cp, Co)   bf16 (BNd scale folded)   bd_ref: (1, Co) f32
    o_ref : (1, Hq, Wq, Co) f32 output (NHWC, half resolution)
    y1s_ref: (2, Hq+1, Wq+1, 2*Wd) bf16 VMEM scratch holding the conv1 output
             in the same parity-packed layout, with a zero row/col border that
             implements conv2's padding=1.
    """
    _, _, Hq, Wq, Cp2 = x_ref.shape
    Cp = Cp2 // 2
    Wd = w1_ref.shape[1]
    Co = w3_ref.shape[1]
    Ho, Wo = Hq, Wq

    # Zero scratch so the row-0 / col-0 border acts as conv2's zero padding.
    y1s_ref[...] = jnp.zeros_like(y1s_ref)

    # ---- stage 1: conv1 (1x1) + BN1 + ReLU, written parity-packed to VMEM ---
    for py in range(2):
        for px in range(2):
            xp = x_ref[0, py, :, :, px * Cp:(px + 1) * Cp].reshape(Hq * Wq, Cp)
            y = jnp.dot(xp, w1_ref[...], preferred_element_type=jnp.float32)
            y = jnp.maximum(y + b1_ref[...], 0.0)
            y1s_ref[py, 1:Hq + 1, 1:Wq + 1, px * Wd:(px + 1) * Wd] = (
                y.reshape(Hq, Wq, Wd).astype(y1s_ref.dtype))

    # ---- stage 2: conv2 (3x3, stride 2, pad 1) + BN2 + ReLU as 9 GEMM taps --
    # Full-res row u = 2*ho + dy - 1 -> parity plane py = (dy+1)%2, packed row
    # qy = ho + (dy-1)//2; with the +1 border shift the window start is
    # r0 = (dy-1)//2 + 1.  Columns are identical with the parity folded into
    # the channel axis (px block).
    acc = jnp.zeros((Ho * Wo, Wd), jnp.float32)
    for dy in range(3):
        py = (dy + 1) % 2
        r0 = (dy - 1) // 2 + 1
        for dx in range(3):
            px = (dx + 1) % 2
            c0 = (dx - 1) // 2 + 1
            tap = y1s_ref[py, r0:r0 + Ho, c0:c0 + Wo, px * Wd:(px + 1) * Wd]
            acc = acc + jnp.dot(tap.reshape(Ho * Wo, Wd),
                                w2_ref[dy * 3 + dx],
                                preferred_element_type=jnp.float32)
    y2 = jnp.maximum(acc + b2_ref[...], 0.0).astype(jnp.bfloat16)

    # ---- stage 3: conv3 (1x1) + BN3 ------------------------------------------
    y3 = jnp.dot(y2, w3_ref[...], preferred_element_type=jnp.float32) + b3_ref[...]

    # ---- downsample branch: 1x1 stride-2 conv + BNd == parity-(0,0) GEMM -----
    xs = x_ref[0, 0, :, :, 0:Cp].reshape(Ho * Wo, Cp)
    idn = jnp.dot(xs, wd_ref[...], preferred_element_type=jnp.float32) + bd_ref[...]

    # ---- residual add + final ReLU --------------------------------------------
    out = jnp.maximum(y3 + idn, 0.0)
    o_ref[...] = out.reshape(1, Ho, Wo, Co).astype(o_ref.dtype)


# ------------------------------ glue / forward ------------------------------

def _round_up(x, m):
    return ((x + m - 1) // m) * m


def _fold_bn(gamma, beta, mean, var, eps=1e-5):
    scale = gamma / jnp.sqrt(var + eps)
    bias = beta - mean * scale
    return scale.astype(jnp.float32), bias.astype(jnp.float32)


def _pad2(m, rows, cols):
    return jnp.pad(m, ((0, rows - m.shape[0]), (0, cols - m.shape[1])))


def encoder_bottleneck_forward(x_nchw, params, *, stride=2):
    # The PyTorch module hardcodes conv2's stride=2; the residual add only
    # shape-checks when the downsample stride matches.
    assert stride == 2, "EncoderBottleneck forward only supports stride=2"

    N, Cin, H, W = x_nchw.shape
    assert H % 2 == 0 and W % 2 == 0, "spatial dims must be even for stride=2"
    Hq, Wq = H // 2, W // 2
    width = params["w1"].shape[0]
    cout = params["w3"].shape[0]

    LANE = 128
    Cp = _round_up(Cin, LANE)     # padded input channels
    Wd = _round_up(width, LANE)   # padded bottleneck width
    Co = _round_up(cout, LANE)    # padded output channels

    # ---- fold eval-mode BatchNorm scale into the conv weights ----------------
    s1, b1 = _fold_bn(*params["bn1"])
    s2, b2 = _fold_bn(*params["bn2"])
    s3, b3 = _fold_bn(*params["bn3"])
    sd, bd = _fold_bn(*params["bnd"])

    w1m = jnp.transpose(params["w1"][:, :, 0, 0], (1, 0)) * s1[None, :]   # (Cin, width)
    w3m = jnp.transpose(params["w3"][:, :, 0, 0], (1, 0)) * s3[None, :]   # (width, cout)
    wdm = jnp.transpose(params["wd"][:, :, 0, 0], (1, 0)) * sd[None, :]   # (Cin, cout)
    # conv2 taps, tap-major (dy,dx) layout, BN2 scale folded along out channel.
    w2m = jnp.transpose(params["w2"], (2, 3, 1, 0)) * s2[None, None, None, :]
    w2m = w2m.reshape(9, width, width)

    # pad to lane-dense (128-multiple) channel counts; padded rows/cols are 0,
    # padded biases are 0, so padded output lanes are exactly 0 and sliced off.
    w1p = _pad2(w1m, Cp, Wd).astype(jnp.bfloat16)
    w3p = _pad2(w3m, Wd, Co).astype(jnp.bfloat16)
    wdp = _pad2(wdm, Cp, Co).astype(jnp.bfloat16)
    w2p = jnp.pad(w2m, ((0, 0), (0, Wd - width), (0, Wd - width))).astype(jnp.bfloat16)
    b1p = jnp.pad(b1, (0, Wd - width))[None, :]
    b2p = jnp.pad(b2, (0, Wd - width))[None, :]
    b3p = jnp.pad(b3, (0, Co - cout))[None, :]
    bdp = jnp.pad(bd, (0, Co - cout))[None, :]

    # ---- parity-pack the input (single XLA pass over x):
    # x_packed[n, py, qy, qx, px*Cp + c] = x[n, 2*qy+py, 2*qx+px, c]
    x_nhwc = jnp.transpose(x_nchw, (0, 2, 3, 1)).astype(jnp.float32)
    x_nhwc = jnp.pad(x_nhwc, ((0, 0), (0, 0), (0, 0), (0, Cp - Cin)))
    xp = x_nhwc.reshape(N, Hq, 2, Wq, 2, Cp)
    xp = jnp.transpose(xp, (0, 2, 1, 3, 4, 5))
    x_packed = xp.reshape(N, 2, Hq, Wq, 2 * Cp).astype(jnp.bfloat16)

    # ---- cost estimate & VMEM budget ------------------------------------------
    flops = 2 * N * (H * W * Cp * Wd           # conv1 (all H*W positions)
                     + Hq * Wq * 9 * Wd * Wd   # conv2 (9 taps)
                     + Hq * Wq * Wd * Co       # conv3
                     + Hq * Wq * Cp * Co)      # downsample
    w_bytes = 2 * (Cp * Wd + 9 * Wd * Wd + Wd * Co + Cp * Co) + 4 * (2 * Wd + 2 * Co)
    bytes_accessed = x_packed.size * 2 + w_bytes + N * Hq * Wq * Co * 4

    x_blk = 2 * Hq * Wq * 2 * Cp * 2           # bf16 input block
    o_blk = Hq * Wq * Co * 4                   # f32 output block
    scratch_bytes = 2 * (Hq + 1) * (Wq + 1) * 2 * Wd * 2
    vmem_bytes = min(2 * (x_blk + o_blk + w_bytes) + scratch_bytes + (16 << 20),
                     100 * 1024 * 1024)

    out_padded = pl.pallas_call(
        _encoder_bottleneck_kernel,
        out_shape=jax.ShapeDtypeStruct((N, Hq, Wq, Co), jnp.float32),
        grid_spec=pltpu.PrefetchScalarGridSpec(
            num_scalar_prefetch=0,
            grid=(N,),
            in_specs=[
                pl.BlockSpec((1, 2, Hq, Wq, 2 * Cp), lambda n: (n, 0, 0, 0, 0)),
                pl.BlockSpec((Cp, Wd), lambda n: (0, 0)),
                pl.BlockSpec((1, Wd), lambda n: (0, 0)),
                pl.BlockSpec((9, Wd, Wd), lambda n: (0, 0, 0)),
                pl.BlockSpec((1, Wd), lambda n: (0, 0)),
                pl.BlockSpec((Wd, Co), lambda n: (0, 0)),
                pl.BlockSpec((1, Co), lambda n: (0, 0)),
                pl.BlockSpec((Cp, Co), lambda n: (0, 0)),
                pl.BlockSpec((1, Co), lambda n: (0, 0)),
            ],
            out_specs=pl.BlockSpec((1, Hq, Wq, Co), lambda n: (n, 0, 0, 0)),
            scratch_shapes=[
                pltpu.VMEM((2, Hq + 1, Wq + 1, 2 * Wd), jnp.bfloat16),
            ],
        ),
        compiler_params=pltpu.CompilerParams(
            dimension_semantics=("parallel",),
            vmem_limit_bytes=int(vmem_bytes),
        ),
        cost_estimate=pl.CostEstimate(flops=int(flops), transcendentals=0,
                                      bytes_accessed=int(bytes_accessed)),
    )(x_packed, w1p, b1p, w2p, b2p, w3p, b3p, wdp, bdp)

    out = out_padded[:, :, :, :cout]            # drop lane padding
    # NHWC -> NCHW to match the PyTorch module (drop if the consumer takes NHWC).
    return jnp.transpose(out, (0, 3, 1, 2))


# --------------------------- reference (pure JAX) ---------------------------

def _reference(x, params, eps=1e-5):
    def conv(z, w, stride, pad):
        return lax.conv_general_dilated(
            z, w, window_strides=(stride, stride),
            padding=[(pad, pad), (pad, pad)],
            dimension_numbers=("NCHW", "OIHW", "NCHW"))

    def bn(z, p):
        g, b, m, v = p
        inv = g / jnp.sqrt(v + eps)
        return z * inv[None, :, None, None] + (b - m * inv)[None, :, None, None]

    relu = lambda z: jnp.maximum(z, 0.0)
    identity = bn(conv(x, params["wd"], 2, 0), params["bnd"])
    out = relu(bn(conv(x, params["w1"], 1, 0), params["bn1"]))
    out = relu(bn(conv(out, params["w2"], 2, 1), params["bn2"]))
    out = bn(conv(out, params["w3"], 1, 0), params["bn3"])
    return relu(out + identity)


# --------------------------------- params -----------------------------------

def init_params(key, in_channels, out_channels, base_width=64):
    width = int(out_channels * (base_width / 64))
    ks = jax.random.split(key, 8)

    def conv_w(k, cout, cin, kh, kw):
        return 0.1 * jax.random.normal(k, (cout, cin, kh, kw), jnp.float32)

    def bn_p(k, c):
        k1, k2, k3, k4 = jax.random.split(k, 4)
        gamma = 1.0 + 0.1 * jax.random.normal(k1, (c,), jnp.float32)
        beta = 0.1 * jax.random.normal(k2, (c,), jnp.float32)
        mean = 0.1 * jax.random.normal(k3, (c,), jnp.float32)
        var = jax.random.uniform(k4, (c,), jnp.float32, minval=0.5, maxval=1.5)
        return (gamma, beta, mean, var)

    return {
        "wd": conv_w(ks[0], out_channels, in_channels, 1, 1),
        "bnd": bn_p(ks[1], out_channels),
        "w1": conv_w(ks[2], width, in_channels, 1, 1),
        "bn1": bn_p(ks[3], width),
        "w2": conv_w(ks[4], width, width, 3, 3),
        "bn2": bn_p(ks[5], width),
        "w3": conv_w(ks[6], out_channels, width, 1, 1),
        "bn3": bn_p(ks[7], out_channels),
    }


# ----------------------------------- main ------------------------------------

if __name__ == "__main__":
    key = jax.random.PRNGKey(0)
    kx, kp = jax.random.split(key)

    N, Cin, H, W = 2, 4, 16, 16
    Cout = 16  # width = Cout * 64/64 = 16
    x = jax.random.normal(kx, (N, Cin, H, W), jnp.float32)
    params = init_params(kp, Cin, Cout)

    fwd = jax.jit(functools.partial(encoder_bottleneck_forward, stride=2))
    out = jax.block_until_ready(fwd(x, params))
    assert out.shape == (N, Cout, H // 2, W // 2)

    ref = _reference(x, params)
    # bf16 GEMM operands (f32 accumulation) vs f32 reference -> loose tolerance.
    np.testing.assert_allclose(np.asarray(out), np.asarray(ref),
                               rtol=5e-2, atol=5e-2)
    print("KERNEL_OK")
</pallas_src>

<mosaic_0001>
module attributes {stable_mosaic.version = 11 : i64} {
  func.func @_encoder_bottleneck_kernel(%arg0: i32, %arg1: memref<1x2x8x8x256xbf16, #tpu.memory_space<vmem>>, %arg2: memref<128x128xbf16, #tpu.memory_space<vmem>>, %arg3: memref<1x128xf32, #tpu.memory_space<vmem>>, %arg4: memref<9x128x128xbf16, #tpu.memory_space<vmem>>, %arg5: memref<1x128xf32, #tpu.memory_space<vmem>>, %arg6: memref<128x128xbf16, #tpu.memory_space<vmem>>, %arg7: memref<1x128xf32, #tpu.memory_space<vmem>>, %arg8: memref<128x128xbf16, #tpu.memory_space<vmem>>, %arg9: memref<1x128xf32, #tpu.memory_space<vmem>>, %arg10: memref<1x8x8x128xf32, #tpu.memory_space<vmem>>, %arg11: memref<2x9x9x256xbf16, #tpu.memory_space<vmem>>) attributes {dimension_semantics = [#tpu.dimension_semantics<parallel>], iteration_bounds = array<i64: 2>, scalar_prefetch = 0 : i64, scratch_operands = 1 : i64, tpu.core_type = #tpu.core_type<tc>, window_params = [{transform_indices = @transform_0, window_bounds = array<i64: 1, 2, 8, 8, 256>}, {pipeline_mode = #tpu.pipeline_mode<synchronous>, transform_indices = @transform_1, window_bounds = array<i64: 128, 128>}, {pipeline_mode = #tpu.pipeline_mode<synchronous>, transform_indices = @transform_2, window_bounds = array<i64: 1, 128>}, {pipeline_mode = #tpu.pipeline_mode<synchronous>, transform_indices = @transform_3, window_bounds = array<i64: 9, 128, 128>}, {pipeline_mode = #tpu.pipeline_mode<synchronous>, transform_indices = @transform_4, window_bounds = array<i64: 1, 128>}, {pipeline_mode = #tpu.pipeline_mode<synchronous>, transform_indices = @transform_5, window_bounds = array<i64: 128, 128>}, {pipeline_mode = #tpu.pipeline_mode<synchronous>, transform_indices = @transform_6, window_bounds = array<i64: 1, 128>}, {pipeline_mode = #tpu.pipeline_mode<synchronous>, transform_indices = @transform_7, window_bounds = array<i64: 128, 128>}, {pipeline_mode = #tpu.pipeline_mode<synchronous>, transform_indices = @transform_8, window_bounds = array<i64: 1, 128>}, {transform_indices = @transform_9, window_bounds = array<i64: 1, 8, 8, 128>}]} {
    %cst = arith.constant 0.000000e+00 : bf16
    %0 = vector.broadcast %cst : bf16 to vector<2x9x9x256xbf16>
    %c0 = arith.constant 0 : index
    %c0_0 = arith.constant 0 : index
    %c0_1 = arith.constant 0 : index
    %c0_2 = arith.constant 0 : index
    %1 = vector.load %arg11[%c0, %c0_0, %c0_1, %c0_2] : memref<2x9x9x256xbf16, #tpu.memory_space<vmem>>, vector<2x9x9x256xbf16>
    tpu.vector_store %arg11[%c0, %c0_0, %c0_1, %c0_2], %0 {strides = array<i32>} : memref<2x9x9x256xbf16, #tpu.memory_space<vmem>>, vector<2x9x9x256xbf16>,
    %c0_3 = arith.constant 0 : index
    %c0_4 = arith.constant 0 : index
    %c0_5 = arith.constant 0 : index
    %c0_6 = arith.constant 0 : index
    %c0_7 = arith.constant 0 : index
    %2 = vector.load %arg1[%c0_3, %c0_4, %c0_5, %c0_6, %c0_7] : memref<1x2x8x8x256xbf16, #tpu.memory_space<vmem>>, vector<1x1x8x8x128xbf16>
    %3 = vector.shape_cast %2 : vector<1x1x8x8x128xbf16> to vector<8x8x128xbf16>
    %4 = vector.shape_cast %3 : vector<8x8x128xbf16> to vector<64x128xbf16>
    %c0_8 = arith.constant 0 : index
    %c0_9 = arith.constant 0 : index
    %5 = vector.load %arg2[%c0_8, %c0_9] : memref<128x128xbf16, #tpu.memory_space<vmem>>, vector<128x128xbf16>
    %cst_10 = arith.constant dense<0.000000e+00> : vector<64x128xf32>
    %6 = tpu.matmul %4, %5, %cst_10 {dimension_numbers = #tpu.dot_dimension_numbers<[1], [0], [0], [1], [0, 0, 1, 1], [], []>} : vector<64x128xbf16>, vector<128x128xbf16>, vector<64x128xf32> -> vector<64x128xf32>
    %c0_11 = arith.constant 0 : index
    %c0_12 = arith.constant 0 : index
    %7 = vector.load %arg3[%c0_11, %c0_12] : memref<1x128xf32, #tpu.memory_space<vmem>>, vector<1x128xf32>
    %8 = vector.broadcast %7 : vector<1x128xf32> to vector<64x128xf32>
    %9 = arith.addf %6, %8 : vector<64x128xf32>
    %cst_13 = arith.constant 0.000000e+00 : f32
    %10 = vector.broadcast %cst_13 : f32 to vector<64x128xf32>
    %11 = arith.maximumf %9, %10 : vector<64x128xf32>
    %12 = vector.shape_cast %11 : vector<64x128xf32> to vector<8x8x128xf32>
    %13 = arith.truncf %12 : vector<8x8x128xf32> to vector<8x8x128xbf16>
    %c0_14 = arith.constant 0 : index
    %c1 = arith.constant 1 : index
    %c1_15 = arith.constant 1 : index
    %c0_16 = arith.constant 0 : index
    %14 = vector.load %arg11[%c0_14, %c1, %c1_15, %c0_16] : memref<2x9x9x256xbf16, #tpu.memory_space<vmem>>, vector<1x8x8x128xbf16>
    %15 = vector.shape_cast %14 : vector<1x8x8x128xbf16> to vector<8x8x128xbf16>
    %16 = vector.shape_cast %13 : vector<8x8x128xbf16> to vector<1x8x8x128xbf16>
    tpu.vector_store %arg11[%c0_14, %c1, %c1_15, %c0_16], %16 {strides = array<i32>} : memref<2x9x9x256xbf16, #tpu.memory_space<vmem>>, vector<1x8x8x128xbf16>,
    %c0_17 = arith.constant 0 : index
    %c0_18 = arith.constant 0 : index
    %c0_19 = arith.constant 0 : index
    %c0_20 = arith.constant 0 : index
    %c128 = arith.constant 128 : index
    %17 = vector.load %arg1[%c0_17, %c0_18, %c0_19, %c0_20, %c128] : memref<1x2x8x8x256xbf16, #tpu.memory_space<vmem>>, vector<1x1x8x8x128xbf16>
    %18 = vector.shape_cast %17 : vector<1x1x8x8x128xbf16> to vector<8x8x128xbf16>
    %19 = vector.shape_cast %18 : vector<8x8x128xbf16> to vector<64x128xbf16>
    %c0_21 = arith.constant 0 : index
    %c0_22 = arith.constant 0 : index
    %20 = vector.load %arg2[%c0_21, %c0_22] : memref<128x128xbf16, #tpu.memory_space<vmem>>, vector<128x128xbf16>
    %cst_23 = arith.constant dense<0.000000e+00> : vector<64x128xf32>
    %21 = tpu.matmul %19, %20, %cst_23 {dimension_numbers = #tpu.dot_dimension_numbers<[1], [0], [0], [1], [0, 0, 1, 1], [], []>} : vector<64x128xbf16>, vector<128x128xbf16>, vector<64x128xf32> -> vector<64x128xf32>
    %c0_24 = arith.constant 0 : index
    %c0_25 = arith.constant 0 : index
    %22 = vector.load %arg3[%c0_24, %c0_25] : memref<1x128xf32, #tpu.memory_space<vmem>>, vector<1x128xf32>
    %23 = vector.broadcast %22 : vector<1x128xf32> to vector<64x128xf32>
    %24 = arith.addf %21, %23 : vector<64x128xf32>
    %cst_26 = arith.constant 0.000000e+00 : f32
    %25 = vector.broadcast %cst_26 : f32 to vector<64x128xf32>
    %26 = arith.maximumf %24, %25 : vector<64x128xf32>
    %27 = vector.shape_cast %26 : vector<64x128xf32> to vector<8x8x128xf32>
    %28 = arith.truncf %27 : vector<8x8x128xf32> to vector<8x8x128xbf16>
    %c0_27 = arith.constant 0 : index
    %c1_28 = arith.constant 1 : index
    %c1_29 = arith.constant 1 : index
    %c128_30 = arith.constant 128 : index
    %29 = vector.load %arg11[%c0_27, %c1_28, %c1_29, %c128_30] : memref<2x9x9x256xbf16, #tpu.memory_space<vmem>>, vector<1x8x8x128xbf16>
    %30 = vector.shape_cast %29 : vector<1x8x8x128xbf16> to vector<8x8x128xbf16>
    %31 = vector.shape_cast %28 : vector<8x8x128xbf16> to vector<1x8x8x128xbf16>
    tpu.vector_store %arg11[%c0_27, %c1_28, %c1_29, %c128_30], %31 {strides = array<i32>} : memref<2x9x9x256xbf16, #tpu.memory_space<vmem>>, vector<1x8x8x128xbf16>,
    %c0_31 = arith.constant 0 : index
    %c1_32 = arith.constant 1 : index
    %c0_33 = arith.constant 0 : index
    %c0_34 = arith.constant 0 : index
    %c0_35 = arith.constant 0 : index
    %32 = vector.load %arg1[%c0_31, %c1_32, %c0_33, %c0_34, %c0_35] : memref<1x2x8x8x256xbf16, #tpu.memory_space<vmem>>, vector<1x1x8x8x128xbf16>
    %33 = vector.shape_cast %32 : vector<1x1x8x8x128xbf16> to vector<8x8x128xbf16>
    %34 = vector.shape_cast %33 : vector<8x8x128xbf16> to vector<64x128xbf16>
    %c0_36 = arith.constant 0 : index
    %c0_37 = arith.constant 0 : index
    %35 = vector.load %arg2[%c0_36, %c0_37] : memref<128x128xbf16, #tpu.memory_space<vmem>>, vector<128x128xbf16>
    %cst_38 = arith.constant dense<0.000000e+00> : vector<64x128xf32>
    %36 = tpu.matmul %34, %35, %cst_38 {dimension_numbers = #tpu.dot_dimension_numbers<[1], [0], [0], [1], [0, 0, 1, 1], [], []>} : vector<64x128xbf16>, vector<128x128xbf16>, vector<64x128xf32> -> vector<64x128xf32>
    %c0_39 = arith.constant 0 : index
    %c0_40 = arith.constant 0 : index
    %37 = vector.load %arg3[%c0_39, %c0_40] : memref<1x128xf32, #tpu.memory_space<vmem>>, vector<1x128xf32>
    %38 = vector.broadcast %37 : vector<1x128xf32> to vector<64x128xf32>
    %39 = arith.addf %36, %38 : vector<64x128xf32>
    %cst_41 = arith.constant 0.000000e+00 : f32
    %40 = vector.broadcast %cst_41 : f32 to vector<64x128xf32>
    %41 = arith.maximumf %39, %40 : vector<64x128xf32>
    %42 = vector.shape_cast %41 : vector<64x128xf32> to vector<8x8x128xf32>
    %43 = arith.truncf %42 : vector<8x8x128xf32> to vector<8x8x128xbf16>
    %c1_42 = arith.constant 1 : index
    %c1_43 = arith.constant 1 : index
    %c1_44 = arith.constant 1 : index
    %c0_45 = arith.constant 0 : index
    %44 = vector.load %arg11[%c1_42, %c1_43, %c1_44, %c0_45] : memref<2x9x9x256xbf16, #tpu.memory_space<vmem>>, vector<1x8x8x128xbf16>
    %45 = vector.shape_cast %44 : vector<1x8x8x128xbf16> to vector<8x8x128xbf16>
    %46 = vector.shape_cast %43 : vector<8x8x128xbf16> to vector<1x8x8x128xbf16>
    tpu.vector_store %arg11[%c1_42, %c1_43, %c1_44, %c0_45], %46 {strides = array<i32>} : memref<2x9x9x256xbf16, #tpu.memory_space<vmem>>, vector<1x8x8x128xbf16>,
    %c0_46 = arith.constant 0 : index
    %c1_47 = arith.constant 1 : index
    %c0_48 = arith.constant 0 : index
    %c0_49 = arith.constant 0 : index
    %c128_50 = arith.constant 128 : index
    %47 = vector.load %arg1[%c0_46, %c1_47, %c0_48, %c0_49, %c128_50] : memref<1x2x8x8x256xbf16, #tpu.memory_space<vmem>>, vector<1x1x8x8x128xbf16>
    %48 = vector.shape_cast %47 : vector<1x1x8x8x128xbf16> to vector<8x8x128xbf16>
    %49 = vector.shape_cast %48 : vector<8x8x128xbf16> to vector<64x128xbf16>
    %c0_51 = arith.constant 0 : index
    %c0_52 = arith.constant 0 : index
    %50 = vector.load %arg2[%c0_51, %c0_52] : memref<128x128xbf16, #tpu.memory_space<vmem>>, vector<128x128xbf16>
    %cst_53 = arith.constant dense<0.000000e+00> : vector<64x128xf32>
    %51 = tpu.matmul %49, %50, %cst_53 {dimension_numbers = #tpu.dot_dimension_numbers<[1], [0], [0], [1], [0, 0, 1, 1], [], []>} : vector<64x128xbf16>, vector<128x128xbf16>, vector<64x128xf32> -> vector<64x128xf32>
    %c0_54 = arith.constant 0 : index
    %c0_55 = arith.constant 0 : index
    %52 = vector.load %arg3[%c0_54, %c0_55] : memref<1x128xf32, #tpu.memory_space<vmem>>, vector<1x128xf32>
    %53 = vector.broadcast %52 : vector<1x128xf32> to vector<64x128xf32>
    %54 = arith.addf %51, %53 : vector<64x128xf32>
    %cst_56 = arith.constant 0.000000e+00 : f32
    %55 = vector.broadcast %cst_56 : f32 to vector<64x128xf32>
    %56 = arith.maximumf %54, %55 : vector<64x128xf32>
    %57 = vector.shape_cast %56 : vector<64x128xf32> to vector<8x8x128xf32>
    %58 = arith.truncf %57 : vector<8x8x128xf32> to vector<8x8x128xbf16>
    %c1_57 = arith.constant 1 : index
    %c1_58 = arith.constant 1 : index
    %c1_59 = arith.constant 1 : index
    %c128_60 = arith.constant 128 : index
    %59 = vector.load %arg11[%c1_57, %c1_58, %c1_59, %c128_60] : memref<2x9x9x256xbf16, #tpu.memory_space<vmem>>, vector<1x8x8x128xbf16>
    %60 = vector.shape_cast %59 : vector<1x8x8x128xbf16> to vector<8x8x128xbf16>
    %61 = vector.shape_cast %58 : vector<8x8x128xbf16> to vector<1x8x8x128xbf16>
    tpu.vector_store %arg11[%c1_57, %c1_58, %c1_59, %c128_60], %61 {strides = array<i32>} : memref<2x9x9x256xbf16, #tpu.memory_space<vmem>>, vector<1x8x8x128xbf16>,
    %cst_61 = arith.constant 0.000000e+00 : f32
    %62 = vector.broadcast %cst_61 : f32 to vector<64x128xf32>
    %c1_62 = arith.constant 1 : index
    %c0_63 = arith.constant 0 : index
    %c0_64 = arith.constant 0 : index
    %c128_65 = arith.constant 128 : index
    %63 = vector.load %arg11[%c1_62, %c0_63, %c0_64, %c128_65] : memref<2x9x9x256xbf16, #tpu.memory_space<vmem>>, vector<1x8x8x128xbf16>
    %64 = vector.shape_cast %63 : vector<1x8x8x128xbf16> to vector<8x8x128xbf16>
    %65 = vector.shape_cast %64 : vector<8x8x128xbf16> to vector<64x128xbf16>
    %c0_66 = arith.constant 0 : index
    %c0_67 = arith.constant 0 : index
    %c0_68 = arith.constant 0 : index
    %66 = vector.load %arg4[%c0_66, %c0_67, %c0_68] : memref<9x128x128xbf16, #tpu.memory_space<vmem>>, vector<1x128x128xbf16>
    %67 = vector.shape_cast %66 : vector<1x128x128xbf16> to vector<128x128xbf16>
    %cst_69 = arith.constant dense<0.000000e+00> : vector<64x128xf32>
    %68 = tpu.matmul %65, %67, %cst_69 {dimension_numbers = #tpu.dot_dimension_numbers<[1], [0], [0], [1], [0, 0, 1, 1], [], []>} : vector<64x128xbf16>, vector<128x128xbf16>, vector<64x128xf32> -> vector<64x128xf32>
    %69 = arith.addf %62, %68 : vector<64x128xf32>
    %c1_70 = arith.constant 1 : index
    %c0_71 = arith.constant 0 : index
    %c1_72 = arith.constant 1 : index
    %c0_73 = arith.constant 0 : index
    %70 = vector.load %arg11[%c1_70, %c0_71, %c1_72, %c0_73] : memref<2x9x9x256xbf16, #tpu.memory_space<vmem>>, vector<1x8x8x128xbf16>
    %71 = vector.shape_cast %70 : vector<1x8x8x128xbf16> to vector<8x8x128xbf16>
    %72 = vector.shape_cast %71 : vector<8x8x128xbf16> to vector<64x128xbf16>
    %c1_74 = arith.constant 1 : index
    %c0_75 = arith.constant 0 : index
    %c0_76 = arith.constant 0 : index
    %73 = vector.load %arg4[%c1_74, %c0_75, %c0_76] : memref<9x128x128xbf16, #tpu.memory_space<vmem>>, vector<1x128x128xbf16>
    %74 = vector.shape_cast %73 : vector<1x128x128xbf16> to vector<128x128xbf16>
    %cst_77 = arith.constant dense<0.000000e+00> : vector<64x128xf32>
    %75 = tpu.matmul %72, %74, %cst_77 {dimension_numbers = #tpu.dot_dimension_numbers<[1], [0], [0], [1], [0, 0, 1, 1], [], []>} : vector<64x128xbf16>, vector<128x128xbf16>, vector<64x128xf32> -> vector<64x128xf32>
    %76 = arith.addf %69, %75 : vector<64x128xf32>
    %c1_78 = arith.constant 1 : index
    %c0_79 = arith.constant 0 : index
    %c1_80 = arith.constant 1 : index
    %c128_81 = arith.constant 128 : index
    %77 = vector.load %arg11[%c1_78, %c0_79, %c1_80, %c128_81] : memref<2x9x9x256xbf16, #tpu.memory_space<vmem>>, vector<1x8x8x128xbf16>
    %78 = vector.shape_cast %77 : vector<1x8x8x128xbf16> to vector<8x8x128xbf16>
    %79 = vector.shape_cast %78 : vector<8x8x128xbf16> to vector<64x128xbf16>
    %c2 = arith.constant 2 : index
    %c0_82 = arith.constant 0 : index
    %c0_83 = arith.constant 0 : index
    %80 = vector.load %arg4[%c2, %c0_82, %c0_83] : memref<9x128x128xbf16, #tpu.memory_space<vmem>>, vector<1x128x128xbf16>
    %81 = vector.shape_cast %80 : vector<1x128x128xbf16> to vector<128x128xbf16>
    %cst_84 = arith.constant dense<0.000000e+00> : vector<64x128xf32>
    %82 = tpu.matmul %79, %81, %cst_84 {dimension_numbers = #tpu.dot_dimension_numbers<[1], [0], [0], [1], [0, 0, 1, 1], [], []>} : vector<64x128xbf16>, vector<128x128xbf16>, vector<64x128xf32> -> vector<64x128xf32>
    %83 = arith.addf %76, %82 : vector<64x128xf32>
    %c0_85 = arith.constant 0 : index
    %c1_86 = arith.constant 1 : index
    %c0_87 = arith.constant 0 : index
    %c128_88 = arith.constant 128 : index
    %84 = vector.load %arg11[%c0_85, %c1_86, %c0_87, %c128_88] : memref<2x9x9x256xbf16, #tpu.memory_space<vmem>>, vector<1x8x8x128xbf16>
    %85 = vector.shape_cast %84 : vector<1x8x8x128xbf16> to vector<8x8x128xbf16>
    %86 = vector.shape_cast %85 : vector<8x8x128xbf16> to vector<64x128xbf16>
    %c3 = arith.constant 3 : index
    %c0_89 = arith.constant 0 : index
    %c0_90 = arith.constant 0 : index
    %87 = vector.load %arg4[%c3, %c0_89, %c0_90] : memref<9x128x128xbf16, #tpu.memory_space<vmem>>, vector<1x128x128xbf16>
    %88 = vector.shape_cast %87 : vector<1x128x128xbf16> to vector<128x128xbf16>
    %cst_91 = arith.constant dense<0.000000e+00> : vector<64x128xf32>
    %89 = tpu.matmul %86, %88, %cst_91 {dimension_numbers = #tpu.dot_dimension_numbers<[1], [0], [0], [1], [0, 0, 1, 1], [], []>} : vector<64x128xbf16>, vector<128x128xbf16>, vector<64x128xf32> -> vector<64x128xf32>
    %90 = arith.addf %83, %89 : vector<64x128xf32>
    %c0_92 = arith.constant 0 : index
    %c1_93 = arith.constant 1 : index
    %c1_94 = arith.constant 1 : index
    %c0_95 = arith.constant 0 : index
    %91 = vector.load %arg11[%c0_92, %c1_93, %c1_94, %c0_95] : memref<2x9x9x256xbf16, #tpu.memory_space<vmem>>, vector<1x8x8x128xbf16>
    %92 = vector.shape_cast %91 : vector<1x8x8x128xbf16> to vector<8x8x128xbf16>
    %93 = vector.shape_cast %92 : vector<8x8x128xbf16> to vector<64x128xbf16>
    %c4 = arith.constant 4 : index
    %c0_96 = arith.constant 0 : index
    %c0_97 = arith.constant 0 : index
    %94 = vector.load %arg4[%c4, %c0_96, %c0_97] : memref<9x128x128xbf16, #tpu.memory_space<vmem>>, vector<1x128x128xbf16>
    %95 = vector.shape_cast %94 : vector<1x128x128xbf16> to vector<128x128xbf16>
    %cst_98 = arith.constant dense<0.000000e+00> : vector<64x128xf32>
    %96 = tpu.matmul %93, %95, %cst_98 {dimension_numbers = #tpu.dot_dimension_numbers<[1], [0], [0], [1], [0, 0, 1, 1], [], []>} : vector<64x128xbf16>, vector<128x128xbf16>, vector<64x128xf32> -> vector<64x128xf32>
    %97 = arith.addf %90, %96 : vector<64x128xf32>
    %c0_99 = arith.constant 0 : index
    %c1_100 = arith.constant 1 : index
    %c1_101 = arith.constant 1 : index
    %c128_102 = arith.constant 128 : index
    %98 = vector.load %arg11[%c0_99, %c1_100, %c1_101, %c128_102] : memref<2x9x9x256xbf16, #tpu.memory_space<vmem>>, vector<1x8x8x128xbf16>
    %99 = vector.shape_cast %98 : vector<1x8x8x128xbf16> to vector<8x8x128xbf16>
    %100 = vector.shape_cast %99 : vector<8x8x128xbf16> to vector<64x128xbf16>
    %c5 = arith.constant 5 : index
    %c0_103 = arith.constant 0 : index
    %c0_104 = arith.constant 0 : index
    %101 = vector.load %arg4[%c5, %c0_103, %c0_104] : memref<9x128x128xbf16, #tpu.memory_space<vmem>>, vector<1x128x128xbf16>
    %102 = vector.shape_cast %101 : vector<1x128x128xbf16> to vector<128x128xbf16>
    %cst_105 = arith.constant dense<0.000000e+00> : vector<64x128xf32>
    %103 = tpu.matmul %100, %102, %cst_105 {dimension_numbers = #tpu.dot_dimension_numbers<[1], [0], [0], [1], [0, 0, 1, 1], [], []>} : vector<64x128xbf16>, vector<128x128xbf16>, vector<64x128xf32> -> vector<64x128xf32>
    %104 = arith.addf %97, %103 : vector<64x128xf32>
    %c1_106 = arith.constant 1 : index
    %c1_107 = arith.constant 1 : index
    %c0_108 = arith.constant 0 : index
    %c128_109 = arith.constant 128 : index
    %105 = vector.load %arg11[%c1_106, %c1_107, %c0_108, %c128_109] : memref<2x9x9x256xbf16, #tpu.memory_space<vmem>>, vector<1x8x8x128xbf16>
    %106 = vector.shape_cast %105 : vector<1x8x8x128xbf16> to vector<8x8x128xbf16>
    %107 = vector.shape_cast %106 : vector<8x8x128xbf16> to vector<64x128xbf16>
    %c6 = arith.constant 6 : index
    %c0_110 = arith.constant 0 : index
    %c0_111 = arith.constant 0 : index
    %108 = vector.load %arg4[%c6, %c0_110, %c0_111] : memref<9x128x128xbf16, #tpu.memory_space<vmem>>, vector<1x128x128xbf16>
    %109 = vector.shape_cast %108 : vector<1x128x128xbf16> to vector<128x128xbf16>
    %cst_112 = arith.constant dense<0.000000e+00> : vector<64x128xf32>
    %110 = tpu.matmul %107, %109, %cst_112 {dimension_numbers = #tpu.dot_dimension_numbers<[1], [0], [0], [1], [0, 0, 1, 1], [], []>} : vector<64x128xbf16>, vector<128x128xbf16>, vector<64x128xf32> -> vector<64x128xf32>
    %111 = arith.addf %104, %110 : vector<64x128xf32>
    %c1_113 = arith.constant 1 : index
    %c1_114 = arith.constant 1 : index
    %c1_115 = arith.constant 1 : index
    %c0_116 = arith.constant 0 : index
    %112 = vector.load %arg11[%c1_113, %c1_114, %c1_115, %c0_116] : memref<2x9x9x256xbf16, #tpu.memory_space<vmem>>, vector<1x8x8x128xbf16>
    %113 = vector.shape_cast %112 : vector<1x8x8x128xbf16> to vector<8x8x128xbf16>
    %114 = vector.shape_cast %113 : vector<8x8x128xbf16> to vector<64x128xbf16>
    %c7 = arith.constant 7 : index
    %c0_117 = arith.constant 0 : index
    %c0_118 = arith.constant 0 : index
    %115 = vector.load %arg4[%c7, %c0_117, %c0_118] : memref<9x128x128xbf16, #tpu.memory_space<vmem>>, vector<1x128x128xbf16>
    %116 = vector.shape_cast %115 : vector<1x128x128xbf16> to vector<128x128xbf16>
    %cst_119 = arith.constant dense<0.000000e+00> : vector<64x128xf32>
    %117 = tpu.matmul %114, %116, %cst_119 {dimension_numbers = #tpu.dot_dimension_numbers<[1], [0], [0], [1], [0, 0, 1, 1], [], []>} : vector<64x128xbf16>, vector<128x128xbf16>, vector<64x128xf32> -> vector<64x128xf32>
    %118 = arith.addf %111, %117 : vector<64x128xf32>
    %c1_120 = arith.constant 1 : index
    %c1_121 = arith.constant 1 : index
    %c1_122 = arith.constant 1 : index
    %c128_123 = arith.constant 128 : index
    %119 = vector.load %arg11[%c1_120, %c1_121, %c1_122, %c128_123] : memref<2x9x9x256xbf16, #tpu.memory_space<vmem>>, vector<1x8x8x128xbf16>
    %120 = vector.shape_cast %119 : vector<1x8x8x128xbf16> to vector<8x8x128xbf16>
    %121 = vector.shape_cast %120 : vector<8x8x128xbf16> to vector<64x128xbf16>
    %c8 = arith.constant 8 : index
    %c0_124 = arith.constant 0 : index
    %c0_125 = arith.constant 0 : index
    %122 = vector.load %arg4[%c8, %c0_124, %c0_125] : memref<9x128x128xbf16, #tpu.memory_space<vmem>>, vector<1x128x128xbf16>
    %123 = vector.shape_cast %122 : vector<1x128x128xbf16> to vector<128x128xbf16>
    %cst_126 = arith.constant dense<0.000000e+00> : vector<64x128xf32>
    %124 = tpu.matmul %121, %123, %cst_126 {dimension_numbers = #tpu.dot_dimension_numbers<[1], [0], [0], [1], [0, 0, 1, 1], [], []>} : vector<64x128xbf16>, vector<128x128xbf16>, vector<64x128xf32> -> vector<64x128xf32>
    %125 = arith.addf %118, %124 : vector<64x128xf32>
    %c0_127 = arith.constant 0 : index
    %c0_128 = arith.constant 0 : index
    %126 = vector.load %arg5[%c0_127, %c0_128] : memref<1x128xf32, #tpu.memory_space<vmem>>, vector<1x128xf32>
    %127 = vector.broadcast %126 : vector<1x128xf32> to vector<64x128xf32>
    %128 = arith.addf %125, %127 : vector<64x128xf32>
    %cst_129 = arith.constant 0.000000e+00 : f32
    %129 = vector.broadcast %cst_129 : f32 to vector<64x128xf32>
    %130 = arith.maximumf %128, %129 : vector<64x128xf32>
    %131 = arith.truncf %130 : vector<64x128xf32> to vector<64x128xbf16>
    %c0_130 = arith.constant 0 : index
    %c0_131 = arith.constant 0 : index
    %132 = vector.load %arg6[%c0_130, %c0_131] : memref<128x128xbf16, #tpu.memory_space<vmem>>, vector<128x128xbf16>
    %cst_132 = arith.constant dense<0.000000e+00> : vector<64x128xf32>
    %133 = tpu.matmul %131, %132, %cst_132 {dimension_numbers = #tpu.dot_dimension_numbers<[1], [0], [0], [1], [0, 0, 1, 1], [], []>} : vector<64x128xbf16>, vector<128x128xbf16>, vector<64x128xf32> -> vector<64x128xf32>
    %c0_133 = arith.constant 0 : index
    %c0_134 = arith.constant 0 : index
    %134 = vector.load %arg7[%c0_133, %c0_134] : memref<1x128xf32, #tpu.memory_space<vmem>>, vector<1x128xf32>
    %135 = vector.broadcast %134 : vector<1x128xf32> to vector<64x128xf32>
    %136 = arith.addf %133, %135 : vector<64x128xf32>
    %c0_135 = arith.constant 0 : index
    %c0_136 = arith.constant 0 : index
    %c0_137 = arith.constant 0 : index
    %c0_138 = arith.constant 0 : index
    %c0_139 = arith.constant 0 : index
    %137 = vector.load %arg1[%c0_135, %c0_136, %c0_137, %c0_138, %c0_139] : memref<1x2x8x8x256xbf16, #tpu.memory_space<vmem>>, vector<1x1x8x8x128xbf16>
    %138 = vector.shape_cast %137 : vector<1x1x8x8x128xbf16> to vector<8x8x128xbf16>
    %139 = vector.shape_cast %138 : vector<8x8x128xbf16> to vector<64x128xbf16>
    %c0_140 = arith.constant 0 : index
    %c0_141 = arith.constant 0 : index
    %140 = vector.load %arg8[%c0_140, %c0_141] : memref<128x128xbf16, #tpu.memory_space<vmem>>, vector<128x128xbf16>
    %cst_142 = arith.constant dense<0.000000e+00> : vector<64x128xf32>
    %141 = tpu.matmul %139, %140, %cst_142 {dimension_numbers = #tpu.dot_dimension_numbers<[1], [0], [0], [1], [0, 0, 1, 1], [], []>} : vector<64x128xbf16>, vector<128x128xbf16>, vector<64x128xf32> -> vector<64x128xf32>
    %c0_143 = arith.constant 0 : index
    %c0_144 = arith.constant 0 : index
    %142 = vector.load %arg9[%c0_143, %c0_144] : memref<1x128xf32, #tpu.memory_space<vmem>>, vector<1x128xf32>
    %143 = vector.broadcast %142 : vector<1x128xf32> to vector<64x128xf32>
    %144 = arith.addf %141, %143 : vector<64x128xf32>
    %145 = arith.addf %136, %144 : vector<64x128xf32>
    %cst_145 = arith.constant 0.000000e+00 : f32
    %146 = vector.broadcast %cst_145 : f32 to vector<64x128xf32>
    %147 = arith.maximumf %145, %146 : vector<64x128xf32>
    %148 = vector.shape_cast %147 : vector<64x128xf32> to vector<1x8x8x128xf32>
    %c0_146 = arith.constant 0 : index
    %c0_147 = arith.constant 0 : index
    %c0_148 = arith.constant 0 : index
    %c0_149 = arith.constant 0 : index
    %149 = vector.load %arg10[%c0_146, %c0_147, %c0_148, %c0_149] : memref<1x8x8x128xf32, #tpu.memory_space<vmem>>, vector<1x8x8x128xf32>
    tpu.vector_store %arg10[%c0_146, %c0_147, %c0_148, %c0_149], %148 {strides = array<i32>} : memref<1x8x8x128xf32, #tpu.memory_space<vmem>>, vector<1x8x8x128xf32>,
    return
  }
  func.func @transform_0(%arg0: i32) -> (i32, i32, i32, i32, i32) {
    %c0_i32 = arith.constant 0 : i32
    %c0_i32_0 = arith.constant 0 : i32
    %c0_i32_1 = arith.constant 0 : i32
    %c0_i32_2 = arith.constant 0 : i32
    %c0_i32_3 = arith.constant 0 : i32
    return %arg0, %c0_i32, %c0_i32_0, %c0_i32_1, %c0_i32_2 : i32, i32, i32, i32, i32
  }
  func.func @transform_1(%arg0: i32) -> (i32, i32) {
    %c0_i32 = arith.constant 0 : i32
    %c0_i32_0 = arith.constant 0 : i32
    %c0_i32_1 = arith.constant 0 : i32
    return %c0_i32, %c0_i32_0 : i32, i32
  }
  func.func @transform_2(%arg0: i32) -> (i32, i32) {
    %c0_i32 = arith.constant 0 : i32
    %c0_i32_0 = arith.constant 0 : i32
    %c0_i32_1 = arith.constant 0 : i32
    return %c0_i32, %c0_i32_0 : i32, i32
  }
  func.func @transform_3(%arg0: i32) -> (i32, i32, i32) {
    %c0_i32 = arith.constant 0 : i32
    %c0_i32_0 = arith.constant 0 : i32
    %c0_i32_1 = arith.constant 0 : i32
    %c0_i32_2 = arith.constant 0 : i32
    return %c0_i32, %c0_i32_0, %c0_i32_1 : i32, i32, i32
  }
  func.func @transform_4(%arg0: i32) -> (i32, i32) {
    %c0_i32 = arith.constant 0 : i32
    %c0_i32_0 = arith.constant 0 : i32
    %c0_i32_1 = arith.constant 0 : i32
    return %c0_i32, %c0_i32_0 : i32, i32
  }
  func.func @transform_5(%arg0: i32) -> (i32, i32) {
    %c0_i32 = arith.constant 0 : i32
    %c0_i32_0 = arith.constant 0 : i32
    %c0_i32_1 = arith.constant 0 : i32
    return %c0_i32, %c0_i32_0 : i32, i32
  }
  func.func @transform_6(%arg0: i32) -> (i32, i32) {
    %c0_i32 = arith.constant 0 : i32
    %c0_i32_0 = arith.constant 0 : i32
    %c0_i32_1 = arith.constant 0 : i32
    return %c0_i32, %c0_i32_0 : i32, i32
  }
  func.func @transform_7(%arg0: i32) -> (i32, i32) {
    %c0_i32 = arith.constant 0 : i32
    %c0_i32_0 = arith.constant 0 : i32
    %c0_i32_1 = arith.constant 0 : i32
    return %c0_i32, %c0_i32_0 : i32, i32
  }
  func.func @transform_8(%arg0: i32) -> (i32, i32) {
    %c0_i32 = arith.constant 0 : i32
    %c0_i32_0 = arith.constant 0 : i32
    %c0_i32_1 = arith.constant 0 : i32
    return %c0_i32, %c0_i32_0 : i32, i32
  }
  func.func @transform_9(%arg0: i32) -> (i32, i32, i32, i32) {
    %c0_i32 = arith.constant 0 : i32
    %c0_i32_0 = arith.constant 0 : i32
    %c0_i32_1 = arith.constant 0 : i32
    %c0_i32_2 = arith.constant 0 : i32
    return %arg0, %c0_i32, %c0_i32_0, %c0_i32_1 : i32, i32, i32, i32
  }
}

</mosaic_0001>

<bundles_post_ra>
// kernel: encoder_bottleneck_forward.1
= control target key start
LH: loop header
LB: loop body
LE: loop exit
PB: predicated region body
PF: predicated region fallthrough
CT: control target
= control target key end

     0   :  { %s5616_s30 = smov 0   ;;  %s6416_s0 = inlined_call_operand.vmem [shape: bf16[2,2,8,8,256], index: 0, kind: input, shape index: {}]   ;;  %s6417_s1 = inlined_call_operand.vmem [shape: bf16[128,128], index: 1, kind: input, shape index: {}]   ;;  %s6418_s2 = inlined_call_operand.vmem [shape: f32[1,128], index: 2, kind: input, shape index: {}]   ;;  %s6419_s3 = inlined_call_operand.vmem [shape: bf16[9,128,128], index: 3, kind: input, shape index: {}]   ;;  %s6420_s4 = inlined_call_operand.vmem [shape: f32[1,128], index: 4, kind: input, shape index: {}]   ;;  %s6421_s5 = inlined_call_operand.vmem [shape: bf16[128,128], index: 5, kind: input, shape index: {}]   ;;  %s6422_s6 = inlined_call_operand.vmem [shape: f32[1,128], index: 6, kind: input, shape index: {}]   ;;  %s6423_s7 = inlined_call_operand.vmem [shape: bf16[128,128], index: 7, kind: input, shape index: {}]   ;;  %s6424_s8 = inlined_call_operand.vmem [shape: f32[1,128], index: 8, kind: input, shape index: {}]   ;;  %s6425_s9 = inlined_call_operand.vmem [shape: f32[2,8,8,128], index: 9, kind: output, shape index: {}]  }
   0x1 LB: > { %s4362_s10 = sadd.s32 4294967295, %s5563_s30   ;;  %p4366_p0 = scmp.ge.s32.totalorder %s5563_s30, 1  ;;  %s5563_s30 = sphi %s5616_s30, %s19_s30  }
   0x2   : > { %p287_p1 = scmp.lt.s32.totalorder %s5563_s30, 3 }
   0x4   : > { %p288_p2 = pnand %p4366_p0, %p287_p1 }
   0x5   : > { %v5403_v0 = vld [vmem:[%s6417_s1] sm:$0xff] (!%p288_p2)   ;;  %p323_p3 = scmp.lt.s32.totalorder (!%p288_p2), %s4362_s10, 1  ;;  %v5404_v1 = vld [vmem:[%s6417_s1 + $0x8] sm:$0xff] (!%p288_p2)   ;;  %v5405_v2 = vld [vmem:[%s6417_s1 + $0x10] sm:$0xff] (!%p288_p2)   ;;  %v5565_v5 = vmov (!%p288_p2), 0   ;;  %vm335_vm0 = vcmask (!%p288_p2), 1040384  }
   0x6   : > { %291 = sbr.rel (%p288_p2) target bundleno = 1082 (0x43a), region = 56  ;;  %4946 = vmatprep.subr.bf16.mxu1 (!%p288_p2), %v5403_v0  ;;  %v5406_v3 = vld [vmem:[%s6417_s1 + $0x18] sm:$0xff] (!%p288_p2)   ;;  %353 = vst [vmem:[#allocation2 + $0x30] sm:$0xff] (!%p288_p2), %v5565_v5  ;;  %345 = vst [vmem:[#allocation2 + $0x10] sm:$0xff] (!%p288_p2), %v5565_v5  ;;  %v5407_v6 = vld [vmem:[%s6417_s1 + $0x20] sm:$0xff] (!%p288_p2)   ;;  %vm338_vm1 = vcmask (!%p288_p2), 1044484  }
   0x7   : > { %4947 = vmatpush3.bf16.msra.mxu1 (!%p288_p2), %v5403_v0  ;;  %349 = vst [vmem:[#allocation2 + $0x20] sm:$0xff] (!%p288_p2), %v5565_v5  ;;  %357 = vst [vmem:[#allocation2 + $0x40] sm:$0xff] (!%p288_p2), %v5565_v5  ;;  %v5408_v7 = vld [vmem:[%s6417_s1 + $0x28] sm:$0xff] (!%p288_p2)   ;;  %v5409_v8 = vld [vmem:[%s6417_s1 + $0x30] sm:$0xff] (!%p288_p2)   ;;  %vm336_vm2 = vsmask.f32 (!%p288_p2), 256 }
   0x8   : > { %4948 = vmatprep.subr.bf16.mxu1 (!%p288_p2), %v5404_v1  ;;  %361 = vst [vmem:[#allocation2 + $0x50] sm:$0xff] (!%p288_p2), %v5565_v5  ;;  %365 = vst [vmem:[#allocation2 + $0x60] sm:$0xff] (!%p288_p2), %v5565_v5  ;;  %v5410_v9 = vld [vmem:[%s6417_s1 + $0x38] sm:$0xff] (!%p288_p2)   ;;  %v5413_v10 = vld [vmem:[%s6417_s1] sm:$0xff] (!%p288_p2)   ;;  %vm339_vm3 = vsmask.f32 (!%p288_p2), 4352 }
   0x9   : > { %369 = vst [vmem:[#allocation2 + $0x70] sm:$0xff] (!%p288_p2), %v5565_v5  ;;  %373 = vst [vmem:[#allocation2 + $0x80] sm:$0xff] (!%p288_p2), %v5565_v5  ;;  %v5414_v13 = vld [vmem:[%s6417_s1 + $0x8] sm:$0xff] (!%p288_p2)   ;;  %v5415_v14 = vld [vmem:[%s6417_s1 + $0x10] sm:$0xff] (!%p288_p2)   ;;  %vm702_vm7 = vcmask (!%p288_p2), 1043456  }
   0xa   : > { %377 = vst [vmem:[#allocation2 + $0x90] sm:$0xff] (!%p288_p2), %v5565_v5  ;;  %381 = vst [vmem:[#allocation2 + $0xa0] sm:$0xff] (!%p288_p2), %v5565_v5  ;;  %v5416_v17 = vld [vmem:[%s6417_s1 + $0x18] sm:$0xff] (!%p288_p2)   ;;  %v5417_v18 = vld [vmem:[%s6417_s1 + $0x20] sm:$0xff] (!%p288_p2)   ;;  %vm703_vm8 = vsmask.f32 (!%p288_p2), 7938 }
   0xb   : > { %4949 = vmatpush3.bf16.msra.mxu1 (!%p288_p2), %v5404_v1  ;;  %385 = vst [vmem:[#allocation2 + $0xb0] sm:$0xff] (!%p288_p2), %v5565_v5  ;;  %389 = vst [vmem:[#allocation2 + $0xc0] sm:$0xff] (!%p288_p2), %v5565_v5  ;;  %v342_v19 = vld [vmem:[#allocation2 + $0x8] sm:$0x11] (!%p288_p2)  ;;  %v354_v22 = vld [vmem:[#allocation2 + $0x38] sm:$0x11] (!%p288_p2) }
   0xc   : > { %4950 = vmatprep.subr.bf16.mxu1 (!%p288_p2), %v5405_v2  ;;  %393 = vst [vmem:[#allocation2 + $0xd0] sm:$0xff] (!%p288_p2), %v5565_v5  ;;  %397 = vst [vmem:[#allocation2 + $0xe0] sm:$0xff] (!%p288_p2), %v5565_v5  ;;  %v5420_v20 = vld [vmem:[%s6417_s1 + $0x28] sm:$0xff] (!%p288_p2)   ;;  %v5421_v23 = vld [vmem:[%s6417_s1 + $0x30] sm:$0xff] (!%p288_p2)   ;;  %vm1804_vm10 = vsmask.f32 (!%p288_p2), 3328 }
   0xd   : > { %s6435_s10 = smov (!%p323_p3, %s4362_s10), 1  ;;  %401 = vst [vmem:[#allocation2 + $0xf0] sm:$0xff] %v5565_v5  ;;  %405 = vst [vmem:[#allocation2 + $0x100] sm:$0xff] %v5565_v5  ;;  %v5422_v27 = vld [vmem:[%s6417_s1 + $0x38] sm:$0xff]   ;;  %v5425_v28 = vld [vmem:[%s6417_s1] sm:$0xff]  }
   0xe   : > { %s4732_s17 = sshll.u32 %s6435_s10, 7  ;;  %409 = vst [vmem:[#allocation2 + $0x110] sm:$0xff] %v5565_v5  ;;  %vm5679_vm4 = vmand %vm335_vm0, %vm336_vm2  ;;  %v5426_v31 = vld [vmem:[%s6417_s1 + $0x8] sm:$0xff]   ;;  %v5427_v32 = vld [vmem:[%s6417_s1 + $0x10] sm:$0xff]   ;;  %vm1805_vm11 = vsmask.f32 7440 }
   0xf   : > { %s5639_s20 = scalar_lea.vmem %s6416_s0, %s4732_s17  ;;  %4951 = vmatpush3.bf16.msra.mxu1 %v5405_v2  ;;  %vm340_vm5 = vmand %vm338_vm1, %vm339_vm3  ;;  %v5428_v35 = vld [vmem:[%s6417_s1 + $0x18] sm:$0xff]   ;;  %v5429_v36 = vld [vmem:[%s6417_s1 + $0x20] sm:$0xff]   ;;  %s4733_s14 = sshll.u32 %s6435_s10, 6 }
  0x10   : > { %v5411_v4 = vld [vmem:[%s5639_s20] ss:$8 sps:$4 sm:$0xff]   ;;  %4952 = vmatprep.subr.bf16.mxu1 %v5406_v3  ;;  %v5412_v11 = vld [vmem:[%s5639_s20 + $0x10] ss:$8 sps:$4 sm:$0xff]   ;;  %v5423_v16 = vld [vmem:[%s5639_s20 + $0x4] ss:$8 sps:$4 sm:$0xff]   ;;  %s332_s16 = scalar_lea.vmem %s6425_s9, %s4733_s14 }
  0x11   : > { %4962 = vmatprep.mubr.bf16.mxu1 %v5411_v4  ;;  %v5418_v12 = vld [vmem:[%s5639_s20 + $0x20] ss:$8 sps:$4 sm:$0xff]   ;;  %v5419_v15 = vld [vmem:[%s5639_s20 + $0x30] ss:$8 sps:$4 sm:$0xff]   ;;  %vm5688_vm6 = vmor %vm340_vm5, %vm5679_vm4 }
  0x12   : > { %v343_v25 = vsel %vm5688_vm6, 0, %v342_v19  ;;  %v355_v26 = vsel %vm5688_vm6, 0, %v354_v22  ;;  %v5424_v29 = vld [vmem:[%s5639_s20 + $0x14] ss:$8 sps:$4 sm:$0xff]   ;;  %v5430_v30 = vld [vmem:[%s5639_s20 + $0x24] ss:$8 sps:$4 sm:$0xff]   ;;  %vm5853_vm9 = vmand %vm702_vm7, %vm703_vm8 }
  0x13   : > { %4953 = vmatpush3.bf16.msra.mxu1 %v5406_v3  ;;  %344 = vst [vmem:[#allocation2 + $0x8] sm:$0x11] %v343_v25  ;;  %356 = vst [vmem:[#allocation2 + $0x38] sm:$0x11] %v355_v26  ;;  %v5431_v33 = vld [vmem:[%s5639_s20 + $0x34] ss:$8 sps:$4 sm:$0xff]  }
  0x14   : > { %4954 = vmatprep.subr.bf16.mxu1 %v5407_v6  ;;  %v5435_v34 = vld [vmem:[%s5639_s20 + $0x40] ss:$8 sps:$4 sm:$0xff]   ;;  %v5433_v38 = vld [vmem:[%s6417_s1 + $0x30] sm:$0xff]   ;;  %v5434_v39 = vld [vmem:[%s6417_s1 + $0x38] sm:$0xff]  }
  0x15   : > { %v5432_v37 = vld [vmem:[%s6417_s1 + $0x28] sm:$0xff]   ;;  %v5437_v40 = vld [vmem:[%s6417_s1] sm:$0xff]   ;;  %v5436_v41 = vld [vmem:[%s5639_s20 + $0x50] ss:$8 sps:$4 sm:$0xff]  }
  0x16   : > { %v5439_v42 = vld [vmem:[%s5639_s20 + $0x60] ss:$8 sps:$4 sm:$0xff]   ;;  %v5441_v44 = vld [vmem:[%s6417_s1 + $0x10] sm:$0xff]   ;;  %v5447_v46 = vld [vmem:[%s5639_s20 + $0x44] ss:$8 sps:$4 sm:$0xff]  }
  0x17   : > { %4955 = vmatpush3.bf16.msra.mxu1 %v5407_v6  ;;  %v5438_v43 = vld [vmem:[%s6417_s1 + $0x8] sm:$0xff]   ;;  %v5440_v45 = vld [vmem:[%s5639_s20 + $0x70] ss:$8 sps:$4 sm:$0xff]   ;;  %v5443_v48 = vld [vmem:[%s6417_s1 + $0x20] sm:$0xff]  }
  0x18   : > { %4956 = vmatprep.subr.bf16.mxu1 %v5408_v7  ;;  %v5442_v47 = vld [vmem:[%s6417_s1 + $0x18] sm:$0xff]   ;;  %v5444_v49 = vld [vmem:[%s6417_s1 + $0x28] sm:$0xff]   ;;  %v5445_v50 = vld [vmem:[%s6417_s1 + $0x30] sm:$0xff]  }
  0x19   : > { %v5446_v51 = vld [vmem:[%s6417_s1 + $0x38] sm:$0xff]   ;;  %v358_v54 = vld [vmem:[#allocation2 + $0x48] sm:$0x11]  ;;  %vm5968_vm12 = vmor %vm1804_vm10, %vm1805_vm11 }
  0x1a   : > { %v346_v52 = vld [vmem:[#allocation2 + $0x18] sm:$0x11]  ;;  %v359_v55 = vsel %vm5688_vm6, 0, %v358_v54  ;;  %v350_v56 = vld [vmem:[#allocation2 + $0x28] sm:$0x11] }
  0x1b   : > { %4957 = vmatpush3.bf16.msra.mxu1 %v5408_v7  ;;  %v347_v53 = vsel %vm5688_vm6, 0, %v346_v52  ;;  %360 = vst [vmem:[#allocation2 + $0x48] sm:$0x11] %v359_v55  ;;  %v351_v57 = vsel %vm5688_vm6, 0, %v350_v56  ;;  %v5448_v58 = vld [vmem:[%s5639_s20 + $0x54] ss:$8 sps:$4 sm:$0xff]  }
  0x1c   : > { %4958 = vmatprep.subr.bf16.mxu1 %v5409_v8  ;;  %348 = vst [vmem:[#allocation2 + $0x18] sm:$0x11] %v347_v53  ;;  %352 = vst [vmem:[#allocation2 + $0x28] sm:$0x11] %v351_v57  ;;  %v5449_v59 = vld [vmem:[%s5639_s20 + $0x64] ss:$8 sps:$4 sm:$0xff]  }
  0x1d   : > { %v5450_v60 = vld [vmem:[%s5639_s20 + $0x74] ss:$8 sps:$4 sm:$0xff]   ;;  %v374_v0 = vld [vmem:[#allocation2 + $0x88] sm:$0x11]  ;;  %v5451_v7 = vld [vmem:[%s6419_s3 + $0x40] sm:$0xff]  }
  0x1e   : > { %v370_v61 = vld [vmem:[#allocation2 + $0x78] sm:$0x11]  ;;  %v375_v2 = vsel %vm5688_vm6, 0, %v374_v0  ;;  %v366_v3 = vld [vmem:[#allocation2 + $0x68] sm:$0x11] }
  0x1f   : > { %4959 = vmatpush3.bf16.msra.mxu1 %v5409_v8  ;;  %v371_v62 = vsel %vm5688_vm6, 0, %v370_v61  ;;  %v362_v63 = vld [vmem:[#allocation2 + $0x58] sm:$0x11]  ;;  %376 = vst [vmem:[#allocation2 + $0x88] sm:$0x11] %v375_v2  ;;  %v367_v4 = vsel %vm5688_vm6, 0, %v366_v3 }
  0x20   : > { %4960 = vmatprep.subr.bf16.mxu1 %v5410_v9  ;;  %372 = vst [vmem:[#allocation2 + $0x78] sm:$0x11] %v371_v62  ;;  %v363_v1 = vsel %vm5688_vm6, 0, %v362_v63  ;;  %368 = vst [vmem:[#allocation2 + $0x68] sm:$0x11] %v367_v4  ;;  %v5456_v26 = vld [vmem:[%s6419_s3 + $0x68] sm:$0xff]  }
  0x21   : > { %364 = vst [vmem:[#allocation2 + $0x58] sm:$0x11] %v363_v1  ;;  %v390_v5 = vld [vmem:[#allocation2 + $0xc8] sm:$0x11]  ;;  %v378_v22 = vld [vmem:[#allocation2 + $0x98] sm:$0x11] }
  0x22   : > { %v391_v6 = vsel %vm5688_vm6, 0, %v390_v5  ;;  %v382_v8 = vld [vmem:[#allocation2 + $0xa8] sm:$0x11]  ;;  %v379_v25 = vsel %vm5688_vm6, 0, %v378_v22  ;;  %v5460_v24 = vld [vmem:[%s6419_s3 + $0x78] sm:$0xff]  }
  0x23   : > { %4961 = vmatpush3.bf16.msra.mxu1 %v5410_v9  ;;  %392 = vst [vmem:[#allocation2 + $0xc8] sm:$0x11] %v391_v6  ;;  %v383_v9 = vsel %vm5688_vm6, 0, %v382_v8  ;;  %380 = vst [vmem:[#allocation2 + $0x98] sm:$0x11] %v379_v25  ;;  %v5466_v54 = vld [vmem:[%s6419_s3 + $0x38] sm:$0xff]  }
  0x24   : > { %4970 = vmatprep.subr.bf16.mxu1 %v5413_v10  ;;  %384 = vst [vmem:[#allocation2 + $0xa8] sm:$0x11] %v383_v9  ;;  %v705_v2 = vld [vmem:[#allocation2 + $0x10] sm:$0xf]  ;;  %v708_v9 = vld [vmem:[#allocation2 + $0x18] sm:$0x1] }
  0x25   : > { %v5474_v21 = vld [vmem:[%s6419_s3 + $0x98] sm:$0xff]  }
  0x26   : > { %4963 = vmatmul.mubr.bf16.vlgmr.msra.gmra.mrb[0].mxu1 %v5412_v11 }
  0x27   : > { %4971 = vmatpush3.bf16.msra.mxu1 %v5413_v10  ;;  %4966 = vmatprep.mubr.bf16.mxu1 %v5418_v12  ;;  %v394_v10 = vld [vmem:[#allocation2 + $0xd8] sm:$0x11] }
  0x28   : > { %4972 = vmatprep.subr.bf16.mxu1 %v5414_v13  ;;  %v395_v11 = vsel %vm5688_vm6, 0, %v394_v10  ;;  %v386_v12 = vld [vmem:[#allocation2 + $0xb8] sm:$0x11] }
  0x29   : > { %396 = vst [vmem:[#allocation2 + $0xd8] sm:$0x11] %v395_v11 }
  0x2b   : > { %4973 = vmatpush3.bf16.msra.mxu1 %v5414_v13  ;;  %v5452_v13 = vld [vmem:[%s6419_s3 + $0x48] sm:$0xff]  }
  0x2c   : > { %4974 = vmatprep.subr.bf16.mxu1 %v5415_v14 }
  0x2e   : > { %4967 = vmatmul.mubr.bf16.gmra.mrb[4].mxu1 %v5419_v15  ;;  %v5453_v15 = vld [vmem:[%s6419_s3 + $0x50] sm:$0xff]  }
  0x2f   : > { %4975 = vmatpush3.bf16.msra.mxu1 %v5415_v14  ;;  %4986 = vmatprep.mubr.bf16.mxu1 %v5423_v16  ;;  %v387_v14 = vsel %vm5688_vm6, 0, %v386_v12  ;;  %v5454_v16 = vld [vmem:[%s6419_s3 + $0x58] sm:$0xff]  }
  0x30   : > { %4976 = vmatprep.subr.bf16.mxu1 %v5416_v17  ;;  %388 = vst [vmem:[#allocation2 + $0xb8] sm:$0x11] %v387_v14 }
  0x33   : > { %4977 = vmatpush3.bf16.msra.mxu1 %v5416_v17  ;;  %v398_v17 = vld [vmem:[#allocation2 + $0xe8] sm:$0x11] }
  0x34   : > { %4978 = vmatprep.subr.bf16.mxu1 %v5417_v18  ;;  %v399_v19 = vsel %vm5688_vm6, 0, %v398_v17  ;;  %v723_v17 = vld [vmem:[#allocation2 + $0x40] sm:$0xf] }
  0x35   : > { %400 = vst [vmem:[#allocation2 + $0xe8] sm:$0x11] %v399_v19 }
  0x37   : > { %4979 = vmatpush3.bf16.msra.mxu1 %v5417_v18  ;;  %v406_v18 = vld [vmem:[#allocation2 + $0x108] sm:$0x11] }
  0x38   : > { %4980 = vmatprep.subr.bf16.mxu1 %v5420_v20 }
  0x3b   : > { %4981 = vmatpush3.bf16.msra.mxu1 %v5420_v20  ;;  %v407_v20 = vsel %vm5688_vm6, 0, %v406_v18 }
  0x3c   : > { %4982 = vmatprep.subr.bf16.mxu1 %v5421_v23  ;;  %408 = vst [vmem:[#allocation2 + $0x108] sm:$0x11] %v407_v20 }
  0x3f   : > { %4983 = vmatpush3.bf16.msra.mxu1 %v5421_v23  ;;  %v5455_v23 = vld [vmem:[%s6419_s3 + $0x60] sm:$0xff]  }
  0x40   : > { %4984 = vmatprep.subr.bf16.mxu1 %v5422_v27 }
  0x43   : > { %4985 = vmatpush3.bf16.msra.mxu1 %v5422_v27  ;;  %v410_v27 = vld [vmem:[#allocation2 + $0x118] sm:$0x11] }
  0x44   : > { %4994 = vmatprep.subr.bf16.mxu1 %v5425_v28 }
  0x46   : > { %4987 = vmatmul.mubr.bf16.vlgmr.msra.gmra.mrb[8].mxu1 %v5424_v29  ;;  %v411_v29 = vsel %vm5688_vm6, 0, %v410_v27 }
  0x47   : > { %4995 = vmatpush3.bf16.msra.mxu1 %v5425_v28  ;;  %4990 = vmatprep.mubr.bf16.mxu1 %v5430_v30  ;;  %v5457_v28 = vld [vmem:[%s6419_s3] sm:$0xff]   ;;  %v402_v30 = vld [vmem:[#allocation2 + $0xf8] sm:$0x11]  ;;  %412 = vst [vmem:[#allocation2 + $0x118] sm:$0x11] %v411_v29 }
  0x48   : > { %4996 = vmatprep.subr.bf16.mxu1 %v5426_v31  ;;  %5066 = vmatprep.subr.bf16.mxu0 %v5457_v28 }
  0x49   : > { %5067 = vmatpush3.bf16.msra.mxu0 %v5457_v28 }
  0x4b   : > { %4997 = vmatpush3.bf16.msra.mxu1 %v5426_v31  ;;  %v403_v31 = vsel %vm5688_vm6, 0, %v402_v30 }
  0x4c   : > { %4998 = vmatprep.subr.bf16.mxu1 %v5427_v32  ;;  %404 = vst [vmem:[#allocation2 + $0xf8] sm:$0x11] %v403_v31  ;;  %v711_v31 = vld [vmem:[#allocation2 + $0x20] sm:$0xf] }
  0x4e   : > { %4991 = vmatmul.mubr.bf16.gmra.mrb[12].mxu1 %v5431_v33  ;;  %v5459_v33 = vld [vmem:[%s6419_s3 + $0x8] sm:$0xff]  }
  0x4f   : > { %4999 = vmatpush3.bf16.msra.mxu1 %v5427_v32  ;;  %5010 = vmatprep.mubr.bf16.mxu1 %v5435_v34  ;;  %v5458_v32 = vld [vmem:[%s6419_s3 + $0x70] sm:$0xff]  }
  0x50   : > { %5000 = vmatprep.subr.bf16.mxu1 %v5428_v35  ;;  %5068 = vmatprep.subr.bf16.mxu0 %v5459_v33  ;;  %v5461_v34 = vld [vmem:[%s6419_s3 + $0x10] sm:$0xff]  }
  0x51   : > { %5069 = vmatpush3.bf16.msra.mxu0 %v5459_v33 }
  0x52   : > { %5070 = vmatprep.subr.bf16.mxu0 %v5461_v34 }
  0x53   : > { %5001 = vmatpush3.bf16.msra.mxu1 %v5428_v35  ;;  %v5462_v35 = vld [vmem:[%s6419_s3 + $0x18] sm:$0xff]  }
  0x54   : > { %5002 = vmatprep.subr.bf16.mxu1 %v5429_v36 }
  0x55   : > { %5071 = vmatpush3.bf16.msra.mxu0 %v5461_v34 }
  0x56   : > { %5072 = vmatprep.subr.bf16.mxu0 %v5462_v35 }
  0x57   : > { %5003 = vmatpush3.bf16.msra.mxu1 %v5429_v36  ;;  %v5463_v36 = vld [vmem:[%s6419_s3 + $0x20] sm:$0xff]  }
  0x58   : > { %5004 = vmatprep.subr.bf16.mxu1 %v5432_v37 }
  0x59   : > { %5073 = vmatpush3.bf16.msra.mxu0 %v5462_v35 }
  0x5a   : > { %5074 = vmatprep.subr.bf16.mxu0 %v5463_v36 }
  0x5b   : > { %5005 = vmatpush3.bf16.msra.mxu1 %v5432_v37  ;;  %v5464_v37 = vld [vmem:[%s6419_s3 + $0x28] sm:$0xff]  }
  0x5c   : > { %5006 = vmatprep.subr.bf16.mxu1 %v5433_v38 }
  0x5d   : > { %5075 = vmatpush3.bf16.msra.mxu0 %v5463_v36 }
  0x5e   : > { %5076 = vmatprep.subr.bf16.mxu0 %v5464_v37 }
  0x5f   : > { %5007 = vmatpush3.bf16.msra.mxu1 %v5433_v38  ;;  %v5835_v38 = vld [vmem:[%s6418_s2] ss:$0 sm:$0xff] }
  0x60   : > { %5008 = vmatprep.subr.bf16.mxu1 %v5434_v39 }
  0x61   : > { %5077 = vmatpush3.bf16.msra.mxu0 %v5464_v37 }
  0x63   : > { %5009 = vmatpush3.bf16.msra.mxu1 %v5434_v39 }
  0x64   : > { %5018 = vmatprep.subr.bf16.mxu1 %v5437_v40 }
  0x66   : > { %5011 = vmatmul.mubr.bf16.vlgmr.msra.gmra.mrb[16].mxu1 %v5436_v41 }
  0x67   : > { %5019 = vmatpush3.bf16.msra.mxu1 %v5437_v40  ;;  %5014 = vmatprep.mubr.bf16.mxu1 %v5439_v42 }
  0x68   : > { %5020 = vmatprep.subr.bf16.mxu1 %v5438_v43 }
  0x6b   : > { %5021 = vmatpush3.bf16.msra.mxu1 %v5438_v43 }
  0x6c   : > { %5022 = vmatprep.subr.bf16.mxu1 %v5441_v44 }
  0x6e   : > { %5015 = vmatmul.mubr.bf16.gmra.mrb[20].mxu1 %v5440_v45 }
  0x6f   : > { %5023 = vmatpush3.bf16.msra.mxu1 %v5441_v44  ;;  %5034 = vmatprep.mubr.bf16.mxu1 %v5447_v46 }
  0x70   : > { %5024 = vmatprep.subr.bf16.mxu1 %v5442_v47 }
  0x73   : > { %5025 = vmatpush3.bf16.msra.mxu1 %v5442_v47  ;;  %v5465_v47 = vld [vmem:[%s6419_s3 + $0x30] sm:$0xff]  }
  0x74   : > { %5026 = vmatprep.subr.bf16.mxu1 %v5443_v48  ;;  %5078 = vmatprep.subr.bf16.mxu0 %v5465_v47 }
  0x75   : > { %5079 = vmatpush3.bf16.msra.mxu0 %v5465_v47 }
  0x76   : > { %5080 = vmatprep.subr.bf16.mxu0 %v5466_v54 }
  0x77   : > { %5027 = vmatpush3.bf16.msra.mxu1 %v5443_v48 }
  0x78   : > { %5028 = vmatprep.subr.bf16.mxu1 %v5444_v49 }
  0x79   : > { %5081 = vmatpush3.bf16.msra.mxu0 %v5466_v54  ;;  %v744_v54 = vld [vmem:[#allocation2 + $0x78] sm:$0x1] }
  0x7b   : > { %5029 = vmatpush3.bf16.msra.mxu1 %v5444_v49 }
  0x7c   : > { %5030 = vmatprep.subr.bf16.mxu1 %v5445_v50 }
  0x7f   : > { %5031 = vmatpush3.bf16.msra.mxu1 %v5445_v50 }
  0x80   : > { %5032 = vmatprep.subr.bf16.mxu1 %v5446_v51 }
  0x83   : > { %5033 = vmatpush3.bf16.msra.mxu1 %v5446_v51 }
  0x84   : > { %5042 = vmatprep.subr.bf16.mxu1 %v5451_v7 }
  0x86   : > { %5035 = vmatmul.mubr.bf16.vlgmr.msra.gmra.mrb[24].mxu1 %v5448_v58  ;;  %v5468_v58 = vld [vmem:[%s6419_s3 + $0x80] sm:$0xff]  }
  0x87   : > { %5038 = vmatprep.mubr.bf16.mxu1 %v5449_v59  ;;  %5043 = vmatpush3.bf16.msra.mxu1 %v5451_v7  ;;  %v717_v59 = vld [vmem:[#allocation2 + $0x30] sm:$0xf] }
  0x88   : > { %5044 = vmatprep.subr.bf16.mxu1 %v5452_v13  ;;  %5090 = vmatprep.subr.bf16.mxu0 %v5468_v58 }
  0x8b   : > { %5045 = vmatpush3.bf16.msra.mxu1 %v5452_v13 }
  0x8c   : > { %5046 = vmatprep.subr.bf16.mxu1 %v5453_v15 }
  0x8e   : > { %5039 = vmatmul.mubr.bf16.gmra.mrb[28].mxu1 %v5450_v60  ;;  %v720_v60 = vld [vmem:[#allocation2 + $0x38] sm:$0x1] }
  0x8f   : > { %5047 = vmatpush3.bf16.msra.mxu1 %v5453_v15 }
  0x90   : > { %5048 = vmatprep.subr.bf16.mxu1 %v5454_v16 }
  0x93   : > { %5049 = vmatpush3.bf16.msra.mxu1 %v5454_v16 }
  0x94   : > { %5050 = vmatprep.subr.bf16.mxu1 %v5455_v23 }
  0x97   : > { %5051 = vmatpush3.bf16.msra.mxu1 %v5455_v23  ;;  %v726_v23 = vld [vmem:[#allocation2 + $0x48] sm:$0x1] }
  0x98   : > { %5052 = vmatprep.subr.bf16.mxu1 %v5456_v26 }
  0x9b   : > { %5053 = vmatpush3.bf16.msra.mxu1 %v5456_v26 }
  0x9c   : > { %5054 = vmatprep.subr.bf16.mxu1 %v5458_v32 }
  0x9f   : > { %5055 = vmatpush3.bf16.msra.mxu1 %v5458_v32  ;;  %v714_v32 = vld [vmem:[#allocation2 + $0x28] sm:$0x1] }
  0xa0   : > { %5056 = vmatprep.subr.bf16.mxu1 %v5460_v24 }
  0xa3   : > { %5057 = vmatpush3.bf16.msra.mxu1 %v5460_v24 }
  0xf9   : > { %v4964_v39 = vpop.f32.mrb[0].mxu1 }
  0xfa   : > { %v559_v40 = vadd.f32 %v4964_v39, %v5835_v38  ;;  %v550_v41 = vpop.f32.mrb[1].mxu1 }
  0xfb   : > { %v551_v42 = vadd.f32 %v5835_v38, %v550_v41  ;;  %v4965_v43 = vpop.f32.mrb[2].mxu1 }
  0xfc   : > { %v583_v44 = vmax.f32 %v559_v40, 0.0  ;;  %v562_v45 = vadd.f32 %v4965_v43, %v5835_v38  ;;  %v553_v46 = vpop.f32.mrb[3].mxu1 }
  0xfd   : > { %v581_v48 = vmax.f32 %v551_v42, 0.0  ;;  %v554_v49 = vadd.f32 %v5835_v38, %v553_v46 }
  0xfe   : > { %v4736_v50 = vpack.c.bf16 %v583_v44, %v583_v44  ;;  %v584_v51 = vmax.f32 %v562_v45, 0.0 }
  0xff   : > { %v4734_v52 = vpack.c.bf16 %v581_v48, %v581_v48  ;;  %v582_v53 = vmax.f32 %v554_v49, 0.0 }
 0x100   : > { %v638_v55 = vshrl.u32 %v4736_v50, 16  ;;  %v641_v56 = vshll.u32 %v4736_v50, 16  ;;  %v4737_v57 = vpack.c.bf16 %v584_v51, %v584_v51 }
 0x101   : > { %v622_v61 = vshrl.u32 %v4734_v52, 16  ;;  %v625_v62 = vshll.u32 %v4734_v52, 16  ;;  %v4735_v63 = vpack.c.bf16 %v582_v53, %v582_v53  ;;  %v4968_v0 = vpop.f32.mrb[4].mxu1  ;;  %v741_v52 = vld [vmem:[#allocation2 + $0x70] sm:$0xf] }
 0x102   : > { %v640_v1 = vrot.slane %v638_v55, 7  ;;  %v646_v3 = vshrl.u32 %v4737_v57, 16  ;;  %v649_v4 = vshll.u32 %v4737_v57, 16  ;;  %v575_v5 = vadd.f32 %v4968_v0, %v5835_v38  ;;  %v566_v6 = vpop.f32.mrb[5].mxu1  ;;  %v729_v55 = vld [vmem:[#allocation2 + $0x50] sm:$0xf] }
 0x103   : > { %v624_v8 = vrot.slane %v622_v61, 7  ;;  %v630_v10 = vshrl.u32 %v4735_v63, 16  ;;  %v633_v11 = vshll.u32 %v4735_v63, 16  ;;  %v567_v12 = vadd.f32 %v5835_v38, %v566_v6  ;;  %v4969_v13 = vpop.f32.mrb[6].mxu1 }
 0x104   : > { %v643_v14 = vor.u32 %v641_v56, %v640_v1  ;;  %v644_v15 = vrot.slane %v640_v1, 4  ;;  %v648_v16 = vrot.slane %v646_v3, 7  ;;  %v587_v18 = vmax.f32 %v575_v5, 0.0  ;;  %v569_v19 = vpop.f32.mrb[7].mxu1  ;;  %v732_v56 = vld [vmem:[#allocation2 + $0x58] sm:$0x1] }
 0x105   : > { %v627_v20 = vor.u32 %v625_v62, %v624_v8  ;;  %v628_v22 = vrot.slane %v624_v8, 4  ;;  %v632_v25 = vrot.slane %v630_v10, 7  ;;  %v585_v26 = vmax.f32 %v567_v12, 0.0  ;;  %v735_v12 = vld [vmem:[#allocation2 + $0x60] sm:$0xf] }
 0x106   : > { %v718_v27 = vsel %vm5853_vm9, %v643_v14, %v717_v59  ;;  %v721_v28 = vsel %vm5679_vm4, %v644_v15, %v720_v60  ;;  %v651_v29 = vor.u32 %v649_v4, %v648_v16  ;;  %v652_v30 = vrot.slane %v648_v16, 4 }
 0x107   : > { %719 = vst [vmem:[#allocation2 + $0x30] sm:$0xf] %v718_v27  ;;  %722 = vst [vmem:[#allocation2 + $0x38] sm:$0x1] %v721_v28  ;;  %v706_v33 = vsel %vm5853_vm9, %v627_v20, %v705_v2  ;;  %v709_v24 = vsel %vm5679_vm4, %v628_v22, %v708_v9  ;;  %v635_v34 = vor.u32 %v633_v11, %v632_v25  ;;  %v636_v35 = vrot.slane %v632_v25, 4 }
 0x108   : > { %707 = vst [vmem:[#allocation2 + $0x10] sm:$0xf] %v706_v33  ;;  %710 = vst [vmem:[#allocation2 + $0x18] sm:$0x1] %v709_v24  ;;  %v724_v36 = vsel %vm5853_vm9, %v651_v29, %v723_v17  ;;  %v727_v37 = vsel %vm5679_vm4, %v652_v30, %v726_v23  ;;  %v4740_v39 = vpack.c.bf16 %v587_v18, %v587_v18  ;;  %v747_v9 = vld [vmem:[#allocation2 + $0x80] sm:$0xf] }
 0x109   : > { %v4738_v40 = vpack.c.bf16 %v585_v26, %v585_v26  ;;  %725 = vst [vmem:[#allocation2 + $0x40] sm:$0xf] %v724_v36  ;;  %728 = vst [vmem:[#allocation2 + $0x48] sm:$0x1] %v727_v37  ;;  %v712_v41 = vsel %vm5853_vm9, %v635_v34, %v711_v31  ;;  %v715_v42 = vsel %vm5679_vm4, %v636_v35, %v714_v32  ;;  %v750_v11 = vld [vmem:[#allocation2 + $0x88] sm:$0x1] }
 0x10a   : > { %v578_v43 = vadd.f32 %v4969_v13, %v5835_v38  ;;  %v570_v44 = vadd.f32 %v5835_v38, %v569_v19  ;;  %713 = vst [vmem:[#allocation2 + $0x20] sm:$0xf] %v712_v41  ;;  %716 = vst [vmem:[#allocation2 + $0x28] sm:$0x1] %v715_v42  ;;  %v670_v45 = vshrl.u32 %v4740_v39, 16  ;;  %v673_v46 = vshll.u32 %v4740_v39, 16 }
 0x10b   : > { %v654_v47 = vshrl.u32 %v4738_v40, 16  ;;  %v657_v48 = vshll.u32 %v4738_v40, 16  ;;  %v738_v13 = vld [vmem:[#allocation2 + $0x68] sm:$0x1]  ;;  %v1053_v41 = vld [vmem:[#allocation2 + $0x34] sm:$0xf] }
 0x10c   : > { %v588_v49 = vmax.f32 %v578_v43, 0.0  ;;  %v586_v50 = vmax.f32 %v570_v44, 0.0  ;;  %v672_v51 = vrot.slane %v670_v45, 7  ;;  %v1056_v42 = vld [vmem:[#allocation2 + $0x3c] sm:$0x1] }
 0x10d   : > { %v656_v53 = vrot.slane %v654_v47, 7 }
 0x10e   : > { %v4741_v57 = vpack.c.bf16 %v588_v49, %v588_v49  ;;  %v4739_v58 = vpack.c.bf16 %v586_v50, %v586_v50  ;;  %v675_v59 = vor.u32 %v673_v46, %v672_v51  ;;  %v676_v60 = vrot.slane %v672_v51, 4 }
 0x10f   : > { %v659_v61 = vor.u32 %v657_v48, %v656_v53  ;;  %v660_v62 = vrot.slane %v656_v53, 4  ;;  %v1041_v48 = vld [vmem:[#allocation2 + $0x14] sm:$0xf] }
 0x110   : > { %v678_v63 = vshrl.u32 %v4741_v57, 16  ;;  %v681_v0 = vshll.u32 %v4741_v57, 16  ;;  %v662_v1 = vshrl.u32 %v4739_v58, 16  ;;  %v665_v2 = vshll.u32 %v4739_v58, 16 }
 0x111   : > { %v742_v3 = vsel %vm5853_vm9, %v675_v59, %v741_v52  ;;  %v745_v4 = vsel %vm5679_vm4, %v676_v60, %v744_v54  ;;  %v730_v5 = vsel %vm5853_vm9, %v659_v61, %v729_v55  ;;  %v733_v6 = vsel %vm5679_vm4, %v660_v62, %v732_v56  ;;  %v1044_v54 = vld [vmem:[#allocation2 + $0x1c] sm:$0x1]  ;;  %v1059_v62 = vld [vmem:[#allocation2 + $0x44] sm:$0xf] }
 0x112   : > { %743 = vst [vmem:[#allocation2 + $0x70] sm:$0xf] %v742_v3  ;;  %746 = vst [vmem:[#allocation2 + $0x78] sm:$0x1] %v745_v4  ;;  %v680_v8 = vrot.slane %v678_v63, 7  ;;  %v664_v10 = vrot.slane %v662_v1, 7 }
 0x113   : > { %731 = vst [vmem:[#allocation2 + $0x50] sm:$0xf] %v730_v5  ;;  %734 = vst [vmem:[#allocation2 + $0x58] sm:$0x1] %v733_v6  ;;  %v1062_v3 = vld [vmem:[#allocation2 + $0x4c] sm:$0x1] }
 0x114   : > { %v683_v14 = vor.u32 %v681_v0, %v680_v8  ;;  %v684_v15 = vrot.slane %v680_v8, 4  ;;  %v667_v16 = vor.u32 %v665_v2, %v664_v10  ;;  %v668_v17 = vrot.slane %v664_v10, 4 }
 0x116   : > { %v748_v18 = vsel %vm5853_vm9, %v683_v14, %v747_v9  ;;  %v751_v19 = vsel %vm5679_vm4, %v684_v15, %v750_v11  ;;  %v736_v20 = vsel %vm5853_vm9, %v667_v16, %v735_v12  ;;  %v739_v22 = vsel %vm5679_vm4, %v668_v17, %v738_v13  ;;  %v1047_v11 = vld [vmem:[#allocation2 + $0x24] sm:$0xf]  ;;  %v1050_v12 = vld [vmem:[#allocation2 + $0x2c] sm:$0x1] }
 0x117   : > { %749 = vst [vmem:[#allocation2 + $0x80] sm:$0xf] %v748_v18  ;;  %752 = vst [vmem:[#allocation2 + $0x88] sm:$0x1] %v751_v19 }
 0x118   : > { %737 = vst [vmem:[#allocation2 + $0x60] sm:$0xf] %v736_v20  ;;  %740 = vst [vmem:[#allocation2 + $0x68] sm:$0x1] %v739_v22 }
 0x119   : > { %v4988_v23 = vpop.f32.mrb[8].mxu1 }
 0x11a   : > { %v899_v25 = vadd.f32 %v4988_v23, %v5835_v38  ;;  %v890_v26 = vpop.f32.mrb[9].mxu1 }
 0x11b   : > { %v891_v27 = vadd.f32 %v5835_v38, %v890_v26  ;;  %v4989_v28 = vpop.f32.mrb[10].mxu1 }
 0x11c   : > { %v923_v29 = vmax.f32 %v899_v25, 0.0  ;;  %v902_v30 = vadd.f32 %v4989_v28, %v5835_v38  ;;  %v893_v31 = vpop.f32.mrb[11].mxu1 }
 0x11d   : > { %v921_v32 = vmax.f32 %v891_v27, 0.0  ;;  %v894_v33 = vadd.f32 %v5835_v38, %v893_v31 }
 0x11e   : > { %v4744_v24 = vpack.c.bf16 %v923_v29, %v923_v29  ;;  %v924_v34 = vmax.f32 %v902_v30, 0.0 }
 0x11f   : > { %v4742_v35 = vpack.c.bf16 %v921_v32, %v921_v32  ;;  %v922_v36 = vmax.f32 %v894_v33, 0.0 }
 0x120   : > { %v978_v37 = vshrl.u32 %v4744_v24, 16  ;;  %v981_v39 = vshll.u32 %v4744_v24, 16  ;;  %v4745_v40 = vpack.c.bf16 %v924_v34, %v924_v34  ;;  %v1077_v24 = vld [vmem:[#allocation2 + $0x74] sm:$0xf] }
 0x121   : > { %v962_v43 = vshrl.u32 %v4742_v35, 16  ;;  %v965_v44 = vshll.u32 %v4742_v35, 16  ;;  %v4743_v45 = vpack.c.bf16 %v922_v36, %v922_v36  ;;  %v4992_v46 = vpop.f32.mrb[12].mxu1  ;;  %v1080_v35 = vld [vmem:[#allocation2 + $0x7c] sm:$0x1] }
 0x122   : > { %v980_v47 = vrot.slane %v978_v37, 7  ;;  %v986_v49 = vshrl.u32 %v4745_v40, 16  ;;  %v989_v50 = vshll.u32 %v4745_v40, 16  ;;  %v915_v51 = vadd.f32 %v4992_v46, %v5835_v38  ;;  %v906_v52 = vpop.f32.mrb[13].mxu1  ;;  %v1065_v36 = vld [vmem:[#allocation2 + $0x54] sm:$0xf] }
 0x123   : > { %v964_v53 = vrot.slane %v962_v43, 7  ;;  %v970_v55 = vshrl.u32 %v4743_v45, 16  ;;  %v973_v56 = vshll.u32 %v4743_v45, 16  ;;  %v907_v57 = vadd.f32 %v5835_v38, %v906_v52  ;;  %v4993_v58 = vpop.f32.mrb[14].mxu1  ;;  %v1068_v37 = vld [vmem:[#allocation2 + $0x5c] sm:$0x1] }
 0x124   : > { %v983_v59 = vor.u32 %v981_v39, %v980_v47  ;;  %v984_v60 = vrot.slane %v980_v47, 4  ;;  %v988_v61 = vrot.slane %v986_v49, 7  ;;  %v927_v63 = vmax.f32 %v915_v51, 0.0  ;;  %v909_v0 = vpop.f32.mrb[15].mxu1  ;;  %v1788_v45 = vld [vmem:[#allocation2 + $0x90] sm:$0xf] }
 0x125   : > { %v967_v1 = vor.u32 %v965_v44, %v964_v53  ;;  %v968_v2 = vrot.slane %v964_v53, 4  ;;  %v972_v4 = vrot.slane %v970_v55, 7  ;;  %v925_v5 = vmax.f32 %v907_v57, 0.0 }
 0x126   : > { %v1054_v6 = vsel %vm5853_vm9, %v983_v59, %v1053_v41  ;;  %v1057_v8 = vsel %vm5679_vm4, %v984_v60, %v1056_v42  ;;  %v991_v9 = vor.u32 %v989_v50, %v988_v61  ;;  %v992_v10 = vrot.slane %v988_v61, 4  ;;  %v1074_v59 = vld [vmem:[#allocation2 + $0x6c] sm:$0x1] }
 0x127   : > { %1055 = vst [vmem:[#allocation2 + $0x34] sm:$0xf] %v1054_v6  ;;  %1058 = vst [vmem:[#allocation2 + $0x3c] sm:$0x1] %v1057_v8  ;;  %v1042_v13 = vsel %vm5853_vm9, %v967_v1, %v1041_v48  ;;  %v1045_v14 = vsel %vm5679_vm4, %v968_v2, %v1044_v54  ;;  %v975_v15 = vor.u32 %v973_v56, %v972_v4  ;;  %v976_v16 = vrot.slane %v972_v4, 4 }
 0x128   : > { %1043 = vst [vmem:[#allocation2 + $0x14] sm:$0xf] %v1042_v13  ;;  %1046 = vst [vmem:[#allocation2 + $0x1c] sm:$0x1] %v1045_v14  ;;  %v1060_v17 = vsel %vm5853_vm9, %v991_v9, %v1059_v62  ;;  %v1063_v18 = vsel %vm5679_vm4, %v992_v10, %v1062_v3  ;;  %v4748_v19 = vpack.c.bf16 %v927_v63, %v927_v63  ;;  %v1083_v54 = vld [vmem:[#allocation2 + $0x84] sm:$0xf] }
 0x129   : > { %v4746_v20 = vpack.c.bf16 %v925_v5, %v925_v5  ;;  %1061 = vst [vmem:[#allocation2 + $0x44] sm:$0xf] %v1060_v17  ;;  %1064 = vst [vmem:[#allocation2 + $0x4c] sm:$0x1] %v1063_v18  ;;  %v1048_v22 = vsel %vm5853_vm9, %v975_v15, %v1047_v11  ;;  %v1051_v23 = vsel %vm5679_vm4, %v976_v16, %v1050_v12  ;;  %v1086_v56 = vld [vmem:[#allocation2 + $0x8c] sm:$0x1] }
 0x12a   : > { %v918_v25 = vadd.f32 %v4993_v58, %v5835_v38  ;;  %v910_v26 = vadd.f32 %v5835_v38, %v909_v0  ;;  %1049 = vst [vmem:[#allocation2 + $0x24] sm:$0xf] %v1048_v22  ;;  %1052 = vst [vmem:[#allocation2 + $0x2c] sm:$0x1] %v1051_v23  ;;  %v1010_v27 = vshrl.u32 %v4748_v19, 16  ;;  %v1013_v28 = vshll.u32 %v4748_v19, 16 }
 0x12b   : > { %v994_v29 = vshrl.u32 %v4746_v20, 16  ;;  %v997_v30 = vshll.u32 %v4746_v20, 16  ;;  %v1071_v58 = vld [vmem:[#allocation2 + $0x64] sm:$0xf]  ;;  %v1808_v60 = vshrl.u32 %v1788_v45, 16  ;;  %v1811_v61 = vshll.u32 %v1788_v45, 16 }
 0x12c   : > { %v928_v31 = vmax.f32 %v918_v25, 0.0  ;;  %v926_v32 = vmax.f32 %v910_v26, 0.0  ;;  %v1012_v33 = vrot.slane %v1010_v27, 7  ;;  %v1789_v9 = vld [vmem:[#allocation2 + $0x98] sm:$0x1] }
 0x12d   : > { %v996_v34 = vrot.slane %v994_v29, 7  ;;  %v1810_v6 = vrot.slane %v1808_v60, 4  ;;  %v1813_v8 = vrot.slane %v1811_v61, 5  ;;  %v1817_v16 = vshll.u32 %v1789_v9, 16  ;;  %v5936_v23 = vld [vmem:[#allocation2 + $0x94] sm:$0xf] }
 0x12e   : > { %v4749_v39 = vpack.c.bf16 %v928_v31, %v928_v31  ;;  %v4747_v40 = vpack.c.bf16 %v926_v32, %v926_v32  ;;  %v1015_v41 = vor.u32 %v1013_v28, %v1012_v33  ;;  %v1016_v42 = vrot.slane %v1012_v33, 4 }
 0x12f   : > { %v999_v43 = vor.u32 %v997_v30, %v996_v34  ;;  %v1000_v44 = vrot.slane %v996_v34, 4  ;;  %v1814_v15 = vor.u32 %v1813_v8, %v1810_v6  ;;  %v5940_v30 = vrot.slane %v1817_v16, 5  ;;  %v1391_v34 = vld [vmem:[#allocation2 + $0xc0] sm:$0xf]  ;;  %v1388_v6 = vld [vmem:[#allocation2 + $0xb8] sm:$0x1] }
 0x130   : > { %v1018_v46 = vshrl.u32 %v4749_v39, 16  ;;  %v1021_v47 = vshll.u32 %v4749_v39, 16  ;;  %v1002_v48 = vshrl.u32 %v4747_v40, 16  ;;  %v1005_v49 = vshll.u32 %v4747_v40, 16 }
 0x131   : > { %v1078_v50 = vsel %vm5853_vm9, %v1015_v41, %v1077_v24  ;;  %v1081_v51 = vsel %vm5679_vm4, %v1016_v42, %v1080_v35  ;;  %v1066_v52 = vsel %vm5853_vm9, %v999_v43, %v1065_v36  ;;  %v1069_v53 = vsel %vm5679_vm4, %v1000_v44, %v1068_v37  ;;  %v1394_v35 = vld [vmem:[#allocation2 + $0xc8] sm:$0x1]  ;;  %v1379_v43 = vld [vmem:[#allocation2 + $0xa0] sm:$0xf] }
 0x132   : > { %1079 = vst [vmem:[#allocation2 + $0x74] sm:$0xf] %v1078_v50  ;;  %1082 = vst [vmem:[#allocation2 + $0x7c] sm:$0x1] %v1081_v51  ;;  %v1020_v55 = vrot.slane %v1018_v46, 7  ;;  %v1004_v57 = vrot.slane %v1002_v48, 7 }
 0x133   : > { %1067 = vst [vmem:[#allocation2 + $0x54] sm:$0xf] %v1066_v52  ;;  %1070 = vst [vmem:[#allocation2 + $0x5c] sm:$0x1] %v1069_v53  ;;  %v5938_v29 = vrot.slane %v1814_v15, 4  ;;  %v2219_v24 = vshrl.u32 %v5936_v23, 16 }
 0x134   : > { %v1023_v62 = vor.u32 %v1021_v47, %v1020_v55  ;;  %v1024_v63 = vrot.slane %v1020_v55, 4  ;;  %v1007_v0 = vor.u32 %v1005_v49, %v1004_v57  ;;  %v1008_v1 = vrot.slane %v1004_v57, 4  ;;  %v1382_v49 = vld [vmem:[#allocation2 + $0xa8] sm:$0x1]  ;;  %v1397_v57 = vld [vmem:[#allocation2 + $0xd0] sm:$0xf] }
 0x135   : > { %v2222_v41 = vshll.u32 %v5936_v23, 16 }
 0x136   : > { %v1084_v2 = vsel %vm5853_vm9, %v1023_v62, %v1083_v54  ;;  %v1087_v3 = vsel %vm5679_vm4, %v1024_v63, %v1086_v56  ;;  %v1072_v4 = vsel %vm5853_vm9, %v1007_v0, %v1071_v58  ;;  %v1075_v5 = vsel %vm5679_vm4, %v1008_v1, %v1074_v59  ;;  %v1400_v62 = vld [vmem:[#allocation2 + $0xd8] sm:$0x1] }
 0x137   : > { %1085 = vst [vmem:[#allocation2 + $0x84] sm:$0xf] %v1084_v2  ;;  %1088 = vst [vmem:[#allocation2 + $0x8c] sm:$0x1] %v1087_v3 }
 0x138   : > { %1073 = vst [vmem:[#allocation2 + $0x64] sm:$0xf] %v1072_v4  ;;  %1076 = vst [vmem:[#allocation2 + $0x6c] sm:$0x1] %v1075_v5  ;;  %v1385_v5 = vld [vmem:[#allocation2 + $0xb0] sm:$0xf] }
 0x139   : > { %v5012_v10 = vpop.f32.mrb[16].mxu1 }
 0x13a   : > { %v1236_v11 = vadd.f32 %v5012_v10, %v5835_v38  ;;  %v1227_v12 = vpop.f32.mrb[17].mxu1 }
 0x13b   : > { %v1228_v13 = vadd.f32 %v5835_v38, %v1227_v12  ;;  %v5013_v14 = vpop.f32.mrb[18].mxu1 }
 0x13c   : > { %v1260_v17 = vmax.f32 %v1236_v11, 0.0  ;;  %v1239_v18 = vadd.f32 %v5013_v14, %v5835_v38  ;;  %v1230_v19 = vpop.f32.mrb[19].mxu1 }
 0x13d   : > { %v1258_v20 = vmax.f32 %v1228_v13, 0.0  ;;  %v1231_v22 = vadd.f32 %v5835_v38, %v1230_v19 }
 0x13e   : > { %v4752_v25 = vpack.c.bf16 %v1260_v17, %v1260_v17  ;;  %v1261_v26 = vmax.f32 %v1239_v18, 0.0 }
 0x13f   : > { %v4750_v27 = vpack.c.bf16 %v1258_v20, %v1258_v20  ;;  %v1259_v28 = vmax.f32 %v1231_v22, 0.0  ;;  %v5964_v20 = vld [vmem:[#allocation2 + $0x9c] sm:$0x1] }
 0x140   : > { %v1315_v31 = vshrl.u32 %v4752_v25, 16  ;;  %v1318_v32 = vshll.u32 %v4752_v25, 16  ;;  %v4753_v33 = vpack.c.bf16 %v1261_v26, %v1261_v26 }
 0x141   : > { %v1299_v36 = vshrl.u32 %v4750_v27, 16  ;;  %v1302_v37 = vshll.u32 %v4750_v27, 16  ;;  %v4751_v39 = vpack.c.bf16 %v1259_v28, %v1259_v28  ;;  %v5016_v40 = vpop.f32.mrb[20].mxu1  ;;  %v1415_v28 = vld [vmem:[#allocation2 + $0x100] sm:$0xf] }
 0x142   : > { %v1317_v42 = vrot.slane %v1315_v31, 7  ;;  %v1323_v44 = vshrl.u32 %v4753_v33, 16  ;;  %v1326_v45 = vshll.u32 %v4753_v33, 16  ;;  %v1252_v46 = vadd.f32 %v5016_v40, %v5835_v38  ;;  %v1243_v47 = vpop.f32.mrb[21].mxu1  ;;  %v1418_v40 = vld [vmem:[#allocation2 + $0x108] sm:$0x1] }
 0x143   : > { %v1301_v48 = vrot.slane %v1299_v36, 7  ;;  %v1307_v50 = vshrl.u32 %v4751_v39, 16  ;;  %v1310_v51 = vshll.u32 %v4751_v39, 16  ;;  %v1244_v52 = vadd.f32 %v5835_v38, %v1243_v47  ;;  %v5017_v53 = vpop.f32.mrb[22].mxu1  ;;  %v1403_v36 = vld [vmem:[#allocation2 + $0xe0] sm:$0xf] }
 0x144   : > { %v1320_v54 = vor.u32 %v1318_v32, %v1317_v42  ;;  %v1321_v55 = vrot.slane %v1317_v42, 4  ;;  %v1325_v56 = vrot.slane %v1323_v44, 7  ;;  %v1264_v58 = vmax.f32 %v1252_v46, 0.0  ;;  %v1246_v59 = vpop.f32.mrb[23].mxu1  ;;  %v1406_v42 = vld [vmem:[#allocation2 + $0xe8] sm:$0x1] }
 0x145   : > { %v1304_v60 = vor.u32 %v1302_v37, %v1301_v48  ;;  %v1305_v61 = vrot.slane %v1301_v48, 4  ;;  %v1309_v63 = vrot.slane %v1307_v50, 7  ;;  %v1262_v0 = vmax.f32 %v1244_v52, 0.0  ;;  %v5543_v33 = vld [vmem:[%s6423_s7] sm:$0xff]  }
 0x146   : > { %v1392_v1 = vsel %vm5853_vm9, %v1320_v54, %v1391_v34  ;;  %v1395_v2 = vsel %vm5679_vm4, %v1321_v55, %v1394_v35  ;;  %v1328_v3 = vor.u32 %v1326_v45, %v1325_v56  ;;  %v1329_v4 = vrot.slane %v1325_v56, 4 }
 0x147   : > { %1393 = vst [vmem:[#allocation2 + $0xc0] sm:$0xf] %v1392_v1  ;;  %1396 = vst [vmem:[#allocation2 + $0xc8] sm:$0x1] %v1395_v2  ;;  %v1380_v8 = vsel %vm5853_vm9, %v1304_v60, %v1379_v43  ;;  %v1383_v9 = vsel %vm5679_vm4, %v1305_v61, %v1382_v49  ;;  %v1312_v10 = vor.u32 %v1310_v51, %v1309_v63  ;;  %v1313_v11 = vrot.slane %v1309_v63, 4 }
 0x148   : > { %1381 = vst [vmem:[#allocation2 + $0xa0] sm:$0xf] %v1380_v8  ;;  %1384 = vst [vmem:[#allocation2 + $0xa8] sm:$0x1] %v1383_v9  ;;  %v1398_v12 = vsel %vm5853_vm9, %v1328_v3, %v1397_v57  ;;  %v1401_v13 = vsel %vm5679_vm4, %v1329_v4, %v1400_v62  ;;  %v4756_v14 = vpack.c.bf16 %v1264_v58, %v1264_v58  ;;  %v2228_v39 = vshll.u32 %v5964_v20, 16 }
 0x149   : > { %v4754_v15 = vpack.c.bf16 %v1262_v0, %v1262_v0  ;;  %1399 = vst [vmem:[#allocation2 + $0xd0] sm:$0xf] %v1398_v12  ;;  %1402 = vst [vmem:[#allocation2 + $0xd8] sm:$0x1] %v1401_v13  ;;  %v1386_v16 = vsel %vm5853_vm9, %v1312_v10, %v1385_v5  ;;  %v1389_v17 = vsel %vm5679_vm4, %v1313_v11, %v1388_v6  ;;  %v5979_v45 = vrot.slane %v2219_v24, 4 }
 0x14a   : > { %v1255_v18 = vadd.f32 %v5017_v53, %v5835_v38  ;;  %v1247_v19 = vadd.f32 %v5835_v38, %v1246_v59  ;;  %1387 = vst [vmem:[#allocation2 + $0xb0] sm:$0xf] %v1386_v16  ;;  %1390 = vst [vmem:[#allocation2 + $0xb8] sm:$0x1] %v1389_v17  ;;  %v1347_v22 = vshrl.u32 %v4756_v14, 16  ;;  %v1350_v25 = vshll.u32 %v4756_v14, 16 }
 0x14b   : > { %v1331_v26 = vshrl.u32 %v4754_v15, 16  ;;  %v1334_v27 = vshll.u32 %v4754_v15, 16  ;;  %v1820_v37 = vsel %vm5968_vm12, %v5938_v29, %v5940_v30  ;;  %v5983_v46 = vrot.slane %v2222_v41, 5  ;;  %v1421_v58 = vld [vmem:[#allocation2 + $0x110] sm:$0xf] }
 0x14c   : > { %v1265_v31 = vmax.f32 %v1255_v18, 0.0  ;;  %v1263_v32 = vmax.f32 %v1247_v19, 0.0  ;;  %v1349_v34 = vrot.slane %v1347_v22, 7  ;;  %v1424_v59 = vld [vmem:[#allocation2 + $0x118] sm:$0x1] }
 0x14d   : > { %v1333_v35 = vrot.slane %v1331_v26, 7  ;;  %v1409_v60 = vld [vmem:[#allocation2 + $0xf0] sm:$0xf]  ;;  %v1412_v3 = vld [vmem:[#allocation2 + $0xf8] sm:$0x1]  ;;  %v2225_v8 = vor.u32 %v5983_v46, %v5979_v45 }
 0x14e   : > { %v4757_v43 = vpack.c.bf16 %v1265_v31, %v1265_v31  ;;  %v4755_v44 = vpack.c.bf16 %v1263_v32, %v1263_v32  ;;  %v1352_v47 = vor.u32 %v1350_v25, %v1349_v34  ;;  %v1353_v48 = vrot.slane %v1349_v34, 4  ;;  %v1794_v51 = vld [vmem:[#allocation2 + $0xc0] sm:$0xf]  ;;  %v1795_v14 = vld [vmem:[#allocation2 + $0xc8] sm:$0x1] }
 0x14f   : > { %v1336_v49 = vor.u32 %v1334_v27, %v1333_v35  ;;  %v1337_v50 = vrot.slane %v1333_v35, 4  ;;  %v1790_v56 = vld [vmem:[#allocation2 + $0xa0] sm:$0xf]  ;;  %v1791_v61 = vld [vmem:[#allocation2 + $0xa8] sm:$0x1]  ;;  %v1850_v6 = vshrl.u32 %v1794_v51, 16 }
 0x150   : > { %v1355_v52 = vshrl.u32 %v4757_v43, 16  ;;  %v1358_v53 = vshll.u32 %v4757_v43, 16  ;;  %v1339_v54 = vshrl.u32 %v4755_v44, 16  ;;  %v1342_v55 = vshll.u32 %v4755_v44, 16  ;;  %v1796_v19 = vld [vmem:[#allocation2 + $0xd0] sm:$0xf] }
 0x151   : > { %v1416_v57 = vsel %vm5853_vm9, %v1352_v47, %v1415_v28  ;;  %v1419_v24 = vsel %vm5679_vm4, %v1353_v48, %v1418_v40  ;;  %v1404_v23 = vsel %vm5853_vm9, %v1336_v49, %v1403_v36  ;;  %v1407_v41 = vsel %vm5679_vm4, %v1337_v50, %v1406_v42  ;;  %v1792_v2 = vld [vmem:[#allocation2 + $0xb0] sm:$0xf]  ;;  %v1793_v13 = vld [vmem:[#allocation2 + $0xb8] sm:$0x1] }
 0x152   : > { %1417 = vst [vmem:[#allocation2 + $0x100] sm:$0xf] %v1416_v57  ;;  %1420 = vst [vmem:[#allocation2 + $0x108] sm:$0x1] %v1419_v24  ;;  %v1357_v62 = vrot.slane %v1355_v52, 7  ;;  %v1341_v63 = vrot.slane %v1339_v54, 7 }
 0x153   : > { %1405 = vst [vmem:[#allocation2 + $0xe0] sm:$0xf] %v1404_v23  ;;  %1408 = vst [vmem:[#allocation2 + $0xe8] sm:$0x1] %v1407_v41  ;;  %v1822_v0 = vshrl.u32 %v1790_v56, 16  ;;  %v1825_v1 = vshll.u32 %v1790_v56, 16 }
 0x154   : > { %v1836_v4 = vshrl.u32 %v1792_v2, 16  ;;  %v1839_v5 = vshll.u32 %v1792_v2, 16  ;;  %v1360_v9 = vor.u32 %v1358_v53, %v1357_v62  ;;  %v1361_v10 = vrot.slane %v1357_v62, 4  ;;  %v1797_v40 = vld [vmem:[#allocation2 + $0xd8] sm:$0x1] }
 0x155   : > { %v1344_v11 = vor.u32 %v1342_v55, %v1341_v63  ;;  %v1345_v12 = vrot.slane %v1341_v63, 4  ;;  %v1824_v15 = vrot.slane %v1822_v0, 4  ;;  %v1827_v16 = vrot.slane %v1825_v1, 5 }
 0x156   : > { %v1831_v17 = vshll.u32 %v1791_v61, 16  ;;  %v1838_v18 = vrot.slane %v1836_v4, 4  ;;  %v1422_v22 = vsel %vm5853_vm9, %v1360_v9, %v1421_v58  ;;  %v1425_v25 = vsel %vm5679_vm4, %v1361_v10, %v1424_v59 }
 0x157   : > { %v1410_v26 = vsel %vm5853_vm9, %v1344_v11, %v1409_v60  ;;  %v1413_v27 = vsel %vm5679_vm4, %v1345_v12, %v1412_v3  ;;  %1423 = vst [vmem:[#allocation2 + $0x110] sm:$0xf] %v1422_v22  ;;  %1426 = vst [vmem:[#allocation2 + $0x118] sm:$0x1] %v1425_v25  ;;  %v1828_v28 = vor.u32 %v1827_v16, %v1824_v15  ;;  %v1841_v31 = vrot.slane %v1839_v5, 5 }
 0x158   : > { %1411 = vst [vmem:[#allocation2 + $0xf0] sm:$0xf] %v1410_v26  ;;  %1414 = vst [vmem:[#allocation2 + $0xf8] sm:$0x1] %v1413_v27  ;;  %v1845_v32 = vshll.u32 %v1793_v13, 16  ;;  %v1852_v34 = vrot.slane %v1850_v6, 4 }
 0x159   : > { %v1853_v35 = vshll.u32 %v1794_v51, 16  ;;  %v1859_v36 = vshll.u32 %v1795_v14, 16  ;;  %v1864_v42 = vshrl.u32 %v1796_v19, 16  ;;  %v1867_v43 = vshll.u32 %v1796_v19, 16  ;;  %v5036_v50 = vpop.f32.mrb[24].mxu1 }
 0x15a   : > { %v1829_v44 = vrot.slane %v1828_v28, 4  ;;  %v1833_v47 = vrot.slane %v1831_v17, 5  ;;  %v1842_v48 = vor.u32 %v1841_v31, %v1838_v18  ;;  %v1847_v49 = vrot.slane %v1845_v32, 5  ;;  %v1564_v57 = vpop.f32.mrb[25].mxu1  ;;  %v6012_v61 = vld [vmem:[#allocation2 + $0xe0] sm:$0xf] }
 0x15b   : > { %v1855_v52 = vrot.slane %v1853_v35, 5  ;;  %v1861_v53 = vrot.slane %v1859_v36, 5  ;;  %v1866_v54 = vrot.slane %v1864_v42, 4  ;;  %v1869_v55 = vrot.slane %v1867_v43, 5  ;;  %v5037_v58 = vpop.f32.mrb[26].mxu1 }
 0x15c   : > { %v1573_v56 = vadd.f32 %v5036_v50, %v5835_v38  ;;  %v1834_v24 = vsel %vm5968_vm12, %v1829_v44, %v1833_v47  ;;  %v1843_v51 = vrot.slane %v1842_v48, 4  ;;  %v1873_v23 = vshll.u32 %v1797_v40, 16  ;;  %v1567_v1 = vpop.f32.mrb[27].mxu1  ;;  %v1727_v19 = vld [vmem:[#allocation2 + $0xc4] sm:$0xf] }
 0x15d   : > { %v1565_v41 = vadd.f32 %v5835_v38, %v1564_v57  ;;  %v4487_v59 = vcombine.low %v1820_v37, %v1834_v24  ;;  %v1856_v60 = vor.u32 %v1855_v52, %v1852_v34  ;;  %v1870_v62 = vor.u32 %v1869_v55, %v1866_v54  ;;  %v1730_v22 = vld [vmem:[#allocation2 + $0xcc] sm:$0x1]  ;;  %v1715_v34 = vld [vmem:[#allocation2 + $0xa4] sm:$0xf]  ;;  %v1733_v55 = vld [vmem:[#allocation2 + $0xd4] sm:$0xf] }
 0x15e   : > { %v1597_v63 = vmax.f32 %v1573_v56, 0.0  ;;  %v1576_v0 = vadd.f32 %v5037_v58, %v5835_v38  ;;  %v1848_v2 = vsel %vm5968_vm12, %v1843_v51, %v1847_v49  ;;  %v6017_v3 = vrot.slane %v1873_v23, 5  ;;  %v1718_v44 = vld [vmem:[#allocation2 + $0xac] sm:$0x1]  ;;  %v1736_v23 = vld [vmem:[#allocation2 + $0xdc] sm:$0x1] }
 0x15f   : > { %v1595_v4 = vmax.f32 %v1565_v41, 0.0  ;;  %5058 = vmatprep.mubr.bf16.mxu1 %v4487_v59  ;;  %v1568_v5 = vadd.f32 %v5835_v38, %v1567_v1  ;;  %v1857_v6 = vrot.slane %v1856_v60, 4  ;;  %v6020_v29 = vrot.slane %v1870_v62, 4 }
 0x160   : > { %v4760_v30 = vpack.c.bf16 %v1597_v63, %v1597_v63  ;;  %v1598_v37 = vmax.f32 %v1576_v0, 0.0  ;;  %v1878_v9 = vshrl.u32 %v6012_v61, 16  ;;  %v1881_v10 = vshll.u32 %v6012_v61, 16  ;;  %v1721_v63 = vld [vmem:[#allocation2 + $0xb4] sm:$0xf] }
 0x161   : > { %v4758_v11 = vpack.c.bf16 %v1595_v4, %v1595_v4  ;;  %v1596_v12 = vmax.f32 %v1568_v5, 0.0  ;;  %v1862_v13 = vsel %vm5968_vm12, %v1857_v6, %v1861_v53  ;;  %v1876_v14 = vsel %vm5968_vm12, %v6020_v29, %v6017_v3  ;;  %v5040_v28 = vpop.f32.mrb[28].mxu1  ;;  %v1724_v0 = vld [vmem:[#allocation2 + $0xbc] sm:$0x1] }
 0x162   : > { %v1652_v15 = vshrl.u32 %v4760_v30, 16  ;;  %v1655_v16 = vshll.u32 %v4760_v30, 16  ;;  %v4761_v17 = vpack.c.bf16 %v1598_v37, %v1598_v37  ;;  %v4488_v18 = vcombine.low %v1848_v2, %v1862_v13  ;;  %v1580_v42 = vpop.f32.mrb[29].mxu1  ;;  %v1748_v29 = vld [vmem:[#allocation2 + $0xfc] sm:$0x1] }
 0x163   : > { %v1636_v25 = vshrl.u32 %v4758_v11, 16  ;;  %v1639_v26 = vshll.u32 %v4758_v11, 16  ;;  %v4759_v27 = vpack.c.bf16 %v1596_v12, %v1596_v12  ;;  %v6030_v31 = vrot.slane %v1878_v9, 4  ;;  %v5041_v50 = vpop.f32.mrb[30].mxu1  ;;  %v1799_v11 = vld [vmem:[#allocation2 + $0xe8] sm:$0x1] }
 0x164   : > { %v1654_v32 = vrot.slane %v1652_v15, 7  ;;  %v1660_v35 = vshrl.u32 %v4761_v17, 16  ;;  %v1663_v36 = vshll.u32 %v4761_v17, 16  ;;  %5059 = vmatmul.mubr.bf16.vlgmr.msra.gmra.mrb[32].mxu1 %v4488_v18  ;;  %v1589_v40 = vadd.f32 %v5040_v28, %v5835_v38  ;;  %v1583_v57 = vpop.f32.mrb[31].mxu1  ;;  %v5555_v15 = vld [vmem:[%s6418_s2] ss:$0 sm:$0xff] }
 0x165   : > { %v1638_v43 = vrot.slane %v1636_v25, 7  ;;  %v1644_v47 = vshrl.u32 %v4759_v27, 16  ;;  %v1647_v48 = vshll.u32 %v4759_v27, 16  ;;  %v1581_v49 = vadd.f32 %v5835_v38, %v1580_v42  ;;  %v1800_v18 = vld [vmem:[#allocation2 + $0xf0] sm:$0xf] }
 0x166   : > { %v1657_v52 = vor.u32 %v1655_v16, %v1654_v32  ;;  %v1658_v53 = vrot.slane %v1654_v32, 4  ;;  %v1662_v54 = vrot.slane %v1660_v35, 7  ;;  %v1601_v56 = vmax.f32 %v1589_v40, 0.0  ;;  %v1751_v27 = vld [vmem:[#allocation2 + $0x104] sm:$0xf] }
 0x167   : > { %v1641_v24 = vor.u32 %v1639_v26, %v1638_v43  ;;  %v1642_v51 = vrot.slane %v1638_v43, 4  ;;  %v1646_v41 = vrot.slane %v1644_v47, 7  ;;  %v1599_v58 = vmax.f32 %v1581_v49, 0.0  ;;  %v1754_v28 = vld [vmem:[#allocation2 + $0x10c] sm:$0x1] }
 0x168   : > { %v1728_v59 = vsel %vm5853_vm9, %v1657_v52, %v1727_v19  ;;  %v1731_v60 = vsel %vm5679_vm4, %v1658_v53, %v1730_v22  ;;  %v1665_v62 = vor.u32 %v1663_v36, %v1662_v54  ;;  %v1666_v38 = vrot.slane %v1662_v54, 4  ;;  %v1739_v32 = vld [vmem:[#allocation2 + $0xe4] sm:$0xf]  ;;  %v1802_v52 = vld [vmem:[#allocation2 + $0x100] sm:$0xf] }
 0x169   : > { %1729 = vst [vmem:[#allocation2 + $0xc4] sm:$0xf] %v1728_v59  ;;  %1732 = vst [vmem:[#allocation2 + $0xcc] sm:$0x1] %v1731_v60  ;;  %v1716_v1 = vsel %vm5853_vm9, %v1641_v24, %v1715_v34  ;;  %v1719_v2 = vsel %vm5679_vm4, %v1642_v51, %v1718_v44  ;;  %v1649_v4 = vor.u32 %v1647_v48, %v1646_v41  ;;  %v1650_v5 = vrot.slane %v1646_v41, 4 }
 0x16a   : > { %1717 = vst [vmem:[#allocation2 + $0xa4] sm:$0xf] %v1716_v1  ;;  %1720 = vst [vmem:[#allocation2 + $0xac] sm:$0x1] %v1719_v2  ;;  %v1734_v6 = vsel %vm5853_vm9, %v1665_v62, %v1733_v55  ;;  %v1737_v30 = vsel %vm5679_vm4, %v1666_v38, %v1736_v23  ;;  %v4764_v37 = vpack.c.bf16 %v1601_v56, %v1601_v56  ;;  %v1883_v17 = vrot.slane %v1881_v10, 5 }
 0x16b   : > { %v4762_v9 = vpack.c.bf16 %v1599_v58, %v1599_v58  ;;  %1735 = vst [vmem:[#allocation2 + $0xd4] sm:$0xf] %v1734_v6  ;;  %1738 = vst [vmem:[#allocation2 + $0xdc] sm:$0x1] %v1737_v30  ;;  %v1722_v12 = vsel %vm5853_vm9, %v1649_v4, %v1721_v63  ;;  %v1725_v13 = vsel %vm5679_vm4, %v1650_v5, %v1724_v0  ;;  %v1887_v36 = vshll.u32 %v1799_v11, 16  ;;  %v5470_v6 = vld [vmem:[%s6419_s3 + $0x88] sm:$0xff]  }
 0x16c   : > { %v1592_v16 = vadd.f32 %v5555_v15, %v5041_v50  ;;  %1723 = vst [vmem:[#allocation2 + $0xb4] sm:$0xf] %v1722_v12  ;;  %1726 = vst [vmem:[#allocation2 + $0xbc] sm:$0x1] %v1725_v13  ;;  %v1684_v19 = vshrl.u32 %v4764_v37, 16  ;;  %v1687_v22 = vshll.u32 %v4764_v37, 16  ;;  %v1884_v35 = vor.u32 %v1883_v17, %v6030_v31 }
 0x16d   : > { %v1668_v25 = vshrl.u32 %v4762_v9, 16  ;;  %v1671_v26 = vshll.u32 %v4762_v9, 16  ;;  %v1584_v40 = vadd.f32 %v5555_v15, %v1583_v57  ;;  %v1742_v44 = vld [vmem:[#allocation2 + $0xec] sm:$0x1]  ;;  %v1892_v61 = vshrl.u32 %v1800_v18, 16 }
 0x16e   : > { %v1602_v34 = vmax.f32 %v1592_v16, 0.0  ;;  %v1686_v42 = vrot.slane %v1684_v19, 7  ;;  %v1895_v10 = vshll.u32 %v1800_v18, 16  ;;  %v1885_v48 = vrot.slane %v1884_v35, 4  ;;  %v1801_v24 = vld [vmem:[#allocation2 + $0xf8] sm:$0x1] }
 0x16f   : > { %v1670_v43 = vrot.slane %v1668_v25, 7  ;;  %v1889_v49 = vrot.slane %v1887_v36, 5  ;;  %v1600_v50 = vmax.f32 %v1584_v40, 0.0  ;;  %v1757_v38 = vld [vmem:[#allocation2 + $0x114] sm:$0xf]  ;;  %v1894_v37 = vrot.slane %v1892_v61, 4 }
 0x170   : > { %v4765_v47 = vpack.c.bf16 %v1602_v34, %v1602_v34  ;;  %v1689_v53 = vor.u32 %v1687_v22, %v1686_v42  ;;  %v1690_v54 = vrot.slane %v1686_v42, 4  ;;  %v1760_v63 = vld [vmem:[#allocation2 + $0x11c] sm:$0x1]  ;;  %v1803_v0 = vld [vmem:[#allocation2 + $0x108] sm:$0x1]  ;;  %v1897_v9 = vrot.slane %v1895_v10, 5 }
 0x171   : > { %v1673_v55 = vor.u32 %v1671_v26, %v1670_v43  ;;  %v1674_v56 = vrot.slane %v1670_v43, 4  ;;  %v1890_v31 = vsel %vm5968_vm12, %v1885_v48, %v1889_v49  ;;  %v4763_v57 = vpack.c.bf16 %v1600_v50, %v1600_v50  ;;  %v5467_v41 = vld [vmem:[#allocation2 + $0x94] ss:$16 sps:$4 sm:$0xff]   ;;  %v2205_v40 = vld [vmem:[#allocation2 + $0xac] sm:$0x1] }
 0x172   : > { %v1692_v51 = vshrl.u32 %v4765_v47, 16  ;;  %v1695_v23 = vshll.u32 %v4765_v47, 16  ;;  %v1752_v58 = vsel %vm5853_vm9, %v1689_v53, %v1751_v27  ;;  %v1755_v59 = vsel %vm5679_vm4, %v1690_v54, %v1754_v28  ;;  %5082 = vmatprep.mubr.bf16.mxu0 %v5467_v41  ;;  %v1745_v30 = vld [vmem:[#allocation2 + $0xf4] sm:$0xf]  ;;  %v2204_v3 = vld [vmem:[#allocation2 + $0xa4] sm:$0xf] }
 0x173   : > { %v1740_v60 = vsel %vm5853_vm9, %v1673_v55, %v1739_v32  ;;  %v1743_v62 = vsel %vm5679_vm4, %v1674_v56, %v1742_v44  ;;  %1753 = vst [vmem:[#allocation2 + $0x104] sm:$0xf] %v1752_v58  ;;  %1756 = vst [vmem:[#allocation2 + $0x10c] sm:$0x1] %v1755_v59  ;;  %v4489_v2 = vcombine.low %v1876_v14, %v1890_v31  ;;  %v1676_v4 = vshrl.u32 %v4763_v57, 16  ;;  %v5556_v34 = vld [vmem:[%s6419_s3 + $0x80] sm:$0xff]  }
 0x174   : > { %1741 = vst [vmem:[#allocation2 + $0xe4] sm:$0xf] %v1740_v60  ;;  %1744 = vst [vmem:[#allocation2 + $0xec] sm:$0x1] %v1743_v62  ;;  %v1694_v1 = vrot.slane %v1692_v51, 7  ;;  %v1679_v5 = vshll.u32 %v4763_v57, 16  ;;  %v1898_v14 = vor.u32 %v1897_v9, %v1894_v37 }
 0x175   : > { %v1901_v11 = vshll.u32 %v1801_v24, 16  ;;  %v1906_v12 = vshrl.u32 %v1802_v52, 16  ;;  %v5469_v13 = vld [vmem:[#allocation2 + $0xb4] ss:$16 sps:$4 sm:$0xff]   ;;  %5062 = vmatprep.mubr.bf16.mxu1 %v4489_v2  ;;  %v1678_v17 = vrot.slane %v1676_v4, 7  ;;  %v1909_v18 = vshll.u32 %v1802_v52, 16 }
 0x176   : > { %v1697_v15 = vor.u32 %v1695_v23, %v1694_v1  ;;  %v1698_v16 = vrot.slane %v1694_v1, 4  ;;  %v1915_v22 = vshll.u32 %v1803_v0, 16  ;;  %5083 = vmatmul.mubr.bf16.vlgmr.msra.gmra.mrb[0].mxu0 %v5469_v13  ;;  %v2230_v25 = vrot.slane %v2228_v39, 5  ;;  %v5472_v35 = vld [vmem:[%s6419_s3 + $0x90] sm:$0xff]   ;;  %v5475_v23 = vld [vmem:[%s6419_s3 + $0xa0] sm:$0xff]   ;;  %v5476_v1 = vld [vmem:[%s6419_s3 + $0xa8] sm:$0xff]  }
 0x177   : > { %v1908_v19 = vrot.slane %v1906_v12, 4  ;;  %v1681_v28 = vor.u32 %v1679_v5, %v1678_v17  ;;  %v1682_v32 = vrot.slane %v1678_v17, 4  ;;  %5091 = vmatpush3.bf16.msra.mxu0 %v5556_v34  ;;  %v1899_v20 = vrot.slane %v1898_v14, 4  ;;  %v2206_v24 = vld [vmem:[#allocation2 + $0xb4] sm:$0xf] }
 0x178   : > { %v1758_v26 = vsel %vm5853_vm9, %v1697_v15, %v1757_v38  ;;  %v1761_v27 = vsel %vm5679_vm4, %v1698_v16, %v1760_v63  ;;  %v1903_v39 = vrot.slane %v1901_v11, 5  ;;  %v1911_v36 = vrot.slane %v1909_v18, 5  ;;  %5092 = vmatprep.subr.bf16.mxu0 %v5470_v6  ;;  %v2208_v31 = vld [vmem:[#allocation2 + $0xc4] sm:$0xf]  ;;  %v2210_v38 = vld [vmem:[#allocation2 + $0xd4] sm:$0xf] }
 0x179   : > { %1759 = vst [vmem:[#allocation2 + $0x114] sm:$0xf] %v1758_v26  ;;  %1762 = vst [vmem:[#allocation2 + $0x11c] sm:$0x1] %v1761_v27  ;;  %v2233_v42 = vshrl.u32 %v2204_v3, 16  ;;  %v1746_v43 = vsel %vm5853_vm9, %v1681_v28, %v1745_v30  ;;  %v1749_v44 = vsel %vm5679_vm4, %v1682_v32, %v1748_v29  ;;  %v1917_v61 = vrot.slane %v1915_v22, 5 }
 0x17a   : > { %v2236_v10 = vshll.u32 %v2204_v3, 16  ;;  %1747 = vst [vmem:[#allocation2 + $0xf4] sm:$0xf] %v1746_v43  ;;  %1750 = vst [vmem:[#allocation2 + $0xfc] sm:$0x1] %v1749_v44  ;;  %v1912_v47 = vor.u32 %v1911_v36, %v1908_v19  ;;  %v2226_v49 = vrot.slane %v2225_v8, 4  ;;  %v1904_v7 = vsel %vm5968_vm12, %v1899_v20, %v1903_v39 }
 0x17b   : > { %v5471_v48 = vld [vmem:[#allocation2 + $0xd4] ss:$16 sps:$4 sm:$0xff]   ;;  %5093 = vmatpush3.bf16.msra.mxu0 %v5470_v6  ;;  %v2235_v50 = vrot.slane %v2233_v42, 4  ;;  %v2242_v53 = vshll.u32 %v2205_v40, 16  ;;  %v2247_v59 = vshrl.u32 %v2206_v24, 16  ;;  %v2250_v60 = vshll.u32 %v2206_v24, 16 }
 0x17c   : > { %v2238_v52 = vrot.slane %v2236_v10, 5  ;;  %v1913_v54 = vrot.slane %v1912_v47, 4  ;;  %5086 = vmatprep.mubr.bf16.mxu0 %v5471_v48  ;;  %5094 = vmatprep.subr.bf16.mxu0 %v5472_v35  ;;  %v2231_v46 = vsel %vm5968_vm12, %v2226_v49, %v2230_v25  ;;  %v2212_v57 = vld [vmem:[#allocation2 + $0xe4] sm:$0xf]  ;;  %v2261_v2 = vshrl.u32 %v2208_v31, 16  ;;  %v5477_v11 = vld [vmem:[%s6419_s3 + $0xb0] sm:$0xff]  }
 0x17d   : > { %v2244_v51 = vrot.slane %v2242_v53, 5  ;;  %v2289_v63 = vshrl.u32 %v2212_v57, 16  ;;  %v2292_v0 = vshll.u32 %v2212_v57, 16  ;;  %v2264_v4 = vshll.u32 %v2208_v31, 16  ;;  %v2216_v9 = vld [vmem:[#allocation2 + $0x104] sm:$0xf] }
 0x17e   : > { %v2239_v55 = vor.u32 %v2238_v52, %v2235_v50  ;;  %v1918_v56 = vsel %vm5968_vm12, %v1913_v54, %v1917_v61  ;;  %v2249_v5 = vrot.slane %v2247_v59, 4  ;;  %v2252_v6 = vrot.slane %v2250_v60, 5  ;;  %v2207_v16 = vld [vmem:[#allocation2 + $0xbc] sm:$0x1]  ;;  %v2213_v3 = vld [vmem:[#allocation2 + $0xec] sm:$0x1] }
 0x17f   : > { %v4490_v45 = vcombine.low %v1904_v7, %v1918_v56  ;;  %5095 = vmatpush3.bf16.msra.mxu0 %v5472_v35  ;;  %v2275_v30 = vshrl.u32 %v2210_v38, 16  ;;  %v2278_v37 = vshll.u32 %v2210_v38, 16  ;;  %v2291_v12 = vrot.slane %v2289_v63, 4  ;;  %v2209_v22 = vld [vmem:[#allocation2 + $0xcc] sm:$0x1]  ;;  %v5478_v36 = vld [vmem:[%s6419_s3 + $0xb8] sm:$0xff]  }
 0x180   : > { %v2240_v8 = vrot.slane %v2239_v55, 4  ;;  %5096 = vmatprep.subr.bf16.mxu0 %v5474_v21  ;;  %v2294_v13 = vrot.slane %v2292_v0, 5  ;;  %v2263_v17 = vrot.slane %v2261_v2, 4  ;;  %v2266_v18 = vrot.slane %v2264_v4, 5  ;;  %v2211_v39 = vld [vmem:[#allocation2 + $0xdc] sm:$0x1] }
 0x181   : > { %5063 = vmatmul.mubr.bf16.gmra.mrb[36].mxu1 %v4490_v45  ;;  %v5473_v41 = vld [vmem:[#allocation2 + $0xf4] ss:$16 sps:$4 sm:$0xff]   ;;  %v2253_v29 = vor.u32 %v2252_v6, %v2249_v5  ;;  %v2277_v14 = vrot.slane %v2275_v30, 4  ;;  %v2280_v19 = vrot.slane %v2278_v37, 5  ;;  %v2317_v27 = vshrl.u32 %v2216_v9, 16  ;;  %v5480_v59 = vld [vmem:[%s6419_s3 + $0xc8] sm:$0xff]  }
 0x182   : > { %v2245_v58 = vsel %vm5968_vm12, %v2240_v8, %v2244_v51  ;;  %5087 = vmatmul.mubr.bf16.gmra.mrb[4].mxu0 %v5473_v41  ;;  %v2214_v15 = vld [vmem:[#allocation2 + $0xf4] sm:$0xf]  ;;  %v2320_v28 = vshll.u32 %v2216_v9, 16  ;;  %v2295_v32 = vor.u32 %v2294_v13, %v2291_v12  ;;  %v2298_v34 = vshll.u32 %v2213_v3, 16  ;;  %v2215_v44 = vld [vmem:[#allocation2 + $0xfc] sm:$0x1] }
 0x183   : > { %v4527_v62 = vcombine.low %v2231_v46, %v2245_v58  ;;  %5097 = vmatpush3.bf16.msra.mxu0 %v5474_v21  ;;  %v2303_v25 = vshrl.u32 %v2214_v15, 16  ;;  %v2306_v26 = vshll.u32 %v2214_v15, 16  ;;  %v2256_v35 = vshll.u32 %v2207_v16, 16  ;;  %v2217_v53 = vld [vmem:[#allocation2 + $0x10c] sm:$0x1]  ;;  %v5479_v55 = vld [vmem:[%s6419_s3 + $0xc0] sm:$0xff]  }
 0x184   : > { %5098 = vmatprep.subr.bf16.mxu0 %v5475_v23  ;;  %v2267_v20 = vor.u32 %v2266_v18, %v2263_v17  ;;  %v2254_v40 = vrot.slane %v2253_v29, 4  ;;  %v2270_v42 = vshll.u32 %v2209_v22, 16  ;;  %v2281_v43 = vor.u32 %v2280_v19, %v2277_v14  ;;  %v5483_v6 = vld [vmem:[%s6419_s3 + $0xd8] sm:$0xff]   ;;  %v5482_v30 = vld [vmem:[#allocation2 + $0x14] ss:$16 sps:$4 sm:$0xff]   ;;  %v5485_v9 = vld [vmem:[%s6419_s3 + $0xe8] sm:$0xff]  }
 0x185   : > { %5106 = vmatprep.mubr.bf16.mxu0 %v4527_v62  ;;  %v2305_v61 = vrot.slane %v2303_v25, 4  ;;  %v2308_v10 = vrot.slane %v2306_v26, 5  ;;  %v2319_v47 = vrot.slane %v2317_v27, 4  ;;  %v2322_v48 = vrot.slane %v2320_v28, 5  ;;  %v5484_v37 = vld [vmem:[%s6419_s3 + $0xe0] sm:$0xff]   ;;  %v5486_v12 = vld [vmem:[%s6419_s3 + $0xf0] sm:$0xff]  }
 0x186   : > { %v2284_v49 = vshll.u32 %v2211_v39, 16  ;;  %v2296_v50 = vrot.slane %v2295_v32, 4  ;;  %v2300_v52 = vrot.slane %v2298_v34, 5  ;;  %v2258_v7 = vrot.slane %v2256_v35, 5  ;;  %v2654_v13 = vld [vmem:[#allocation2 + $0x10] sm:$0xf] }
 0x187   : > { %5099 = vmatpush3.bf16.msra.mxu0 %v5475_v23  ;;  %v2268_v54 = vrot.slane %v2267_v20, 4  ;;  %v2272_v21 = vrot.slane %v2270_v42, 5  ;;  %v2282_v56 = vrot.slane %v2281_v43, 4  ;;  %v2312_v24 = vshll.u32 %v2215_v44, 16  ;;  %v5487_v17 = vld [vmem:[%s6419_s3 + $0xf8] sm:$0xff]   ;;  %v5489_v19 = vld [vmem:[%s6419_s3 + $0x100] sm:$0xff]  }
 0x188   : > { %5100 = vmatprep.subr.bf16.mxu0 %v5476_v1  ;;  %v2259_v45 = vsel %vm5968_vm12, %v2254_v40, %v2258_v7  ;;  %v2309_v46 = vor.u32 %v2308_v10, %v2305_v61  ;;  %v2323_v8 = vor.u32 %v2322_v48, %v2319_v47  ;;  %v2326_v51 = vshll.u32 %v2217_v53, 16  ;;  %v2657_v26 = vld [vmem:[#allocation2 + $0x28] sm:$0x1]  ;;  %v2655_v28 = vld [vmem:[#allocation2 + $0x18] sm:$0x1]  ;;  %v5493_v42 = vld [vmem:[%s6419_s3 + $0x110] sm:$0xff]  }
 0x189   : > { %v2286_v23 = vrot.slane %v2284_v49, 5  ;;  %v2301_v31 = vsel %vm5968_vm12, %v2296_v50, %v2300_v52  ;;  %v2273_v57 = vsel %vm5968_vm12, %v2268_v54, %v2272_v21  ;;  %v2314_v60 = vrot.slane %v2312_v24, 5  ;;  %v5488_v32 = vld [vmem:[#allocation2 + $0x34] ss:$16 sps:$4 sm:$0xff]   ;;  %v5491_v34 = vld [vmem:[%s6419_s3 + $0x108] sm:$0xff]   ;;  %v5494_v49 = vld [vmem:[%s6419_s3 + $0x118] sm:$0xff]  }
 0x18a   : > { %v4528_v41 = vcombine.low %v2259_v45, %v2273_v57  ;;  %v2310_v38 = vrot.slane %v2309_v46, 4  ;;  %v2324_v63 = vrot.slane %v2323_v8, 4  ;;  %v2328_v0 = vrot.slane %v2326_v51, 5  ;;  %v5490_v39 = vld [vmem:[#allocation2 + $0x54] ss:$16 sps:$4 sm:$0xff]  }
 0x18b   : > { %5101 = vmatpush3.bf16.msra.mxu0 %v5476_v1  ;;  %v2287_v58 = vsel %vm5968_vm12, %v2282_v56, %v2286_v23  ;;  %v5481_v1 = vld [vmem:[%s6419_s3 + $0xd0] sm:$0xff]   ;;  %v2671_v18 = vshrl.u32 %v2654_v13, 16  ;;  %v2674_v3 = vshll.u32 %v2654_v13, 16  ;;  %v2694_v20 = vshll.u32 %v2657_v26, 16  ;;  %v2660_v50 = vld [vmem:[#allocation2 + $0x40] sm:$0xf] }
 0x18c   : > { %5102 = vmatprep.subr.bf16.mxu0 %v5477_v11  ;;  %v4529_v62 = vcombine.low %v2287_v58, %v2301_v31  ;;  %v2315_v2 = vsel %vm5968_vm12, %v2310_v38, %v2314_v60  ;;  %v2329_v4 = vsel %vm5968_vm12, %v2324_v63, %v2328_v0  ;;  %v5492_v47 = vld [vmem:[#allocation2 + $0x74] ss:$16 sps:$4 sm:$0xff]   ;;  %v2662_v53 = vld [vmem:[#allocation2 + $0x50] sm:$0xf]  ;;  %v2713_v7 = vshrl.u32 %v2660_v50, 16 }
 0x18d   : > { %v4530_v5 = vcombine.low %v2315_v2, %v2329_v4  ;;  %v2673_v22 = vrot.slane %v2671_v18, 4  ;;  %v2676_v25 = vrot.slane %v2674_v3, 5  ;;  %v2696_v44 = vrot.slane %v2694_v20, 5  ;;  %v2664_v21 = vld [vmem:[#allocation2 + $0x60] sm:$0xf] }
 0x18e   : > { %v2716_v54 = vshll.u32 %v2660_v50, 16  ;;  %v2658_v56 = vld [vmem:[#allocation2 + $0x30] sm:$0xf]  ;;  %v2727_v24 = vshrl.u32 %v2662_v53, 16  ;;  %v2730_v45 = vshll.u32 %v2662_v53, 16  ;;  %v2741_v46 = vshrl.u32 %v2664_v21, 16 }
 0x18f   : > { %5103 = vmatpush3.bf16.msra.mxu0 %v5477_v11  ;;  %v2656_v11 = vld [vmem:[#allocation2 + $0x20] sm:$0xf]  ;;  %v2677_v35 = vor.u32 %v2676_v25, %v2673_v22  ;;  %v2744_v8 = vshll.u32 %v2664_v21, 16  ;;  %v2699_v51 = vshrl.u32 %v2658_v56, 16  ;;  %v2702_v23 = vshll.u32 %v2658_v56, 16 }
 0x190   : > { %5104 = vmatprep.subr.bf16.mxu0 %v5478_v36  ;;  %v2685_v15 = vshrl.u32 %v2656_v11, 16  ;;  %v2688_v16 = vshll.u32 %v2656_v11, 16  ;;  %v2715_v31 = vrot.slane %v2713_v7, 4  ;;  %v2718_v57 = vrot.slane %v2716_v54, 5  ;;  %v2663_v60 = vld [vmem:[#allocation2 + $0x58] sm:$0x1] }
 0x191   : > { %v2678_v43 = vrot.slane %v2677_v35, 4  ;;  %v2729_v58 = vrot.slane %v2727_v24, 4  ;;  %v2746_v38 = vrot.slane %v2744_v8, 5  ;;  %v2666_v63 = vld [vmem:[#allocation2 + $0x70] sm:$0xf]  ;;  %v2704_v2 = vrot.slane %v2702_v23, 5 }
 0x192   : > { %v2687_v29 = vrot.slane %v2685_v15, 4  ;;  %v2690_v14 = vrot.slane %v2688_v16, 5  ;;  %v2668_v0 = vld [vmem:[#allocation2 + $0x80] sm:$0xf]  ;;  %v2719_v4 = vor.u32 %v2718_v57, %v2715_v31  ;;  %v2755_v13 = vshrl.u32 %v2666_v63, 16 }
 0x193   : > { %5105 = vmatpush3.bf16.msra.mxu0 %v5478_v36  ;;  %v2680_v36 = vshll.u32 %v2655_v28, 16  ;;  %v2758_v15 = vshll.u32 %v2666_v63, 16  ;;  %v2769_v16 = vshrl.u32 %v2668_v0, 16  ;;  %v2936_v18 = vld [vmem:[#allocation2 + $0x14] sm:$0xf]  ;;  %v5498_v28 = vld [vmem:[%s6419_s3 + $0x138] sm:$0xff]  }
 0x194   : > { %5114 = vmatprep.subr.bf16.mxu0 %v5479_v55  ;;  %v2691_v27 = vor.u32 %v2690_v14, %v2687_v29  ;;  %v2720_v26 = vrot.slane %v2719_v4, 4  ;;  %v2953_v35 = vshrl.u32 %v2936_v18, 16  ;;  %v2956_v20 = vshll.u32 %v2936_v18, 16  ;;  %v5499_v53 = vld [vmem:[%s6419_s3 + $0x140] sm:$0xff]   ;;  %v2937_v57 = vld [vmem:[#allocation2 + $0x1c] sm:$0x1] }
 0x195   : > { %v2682_v61 = vrot.slane %v2680_v36, 5  ;;  %v2757_v36 = vrot.slane %v2755_v13, 4  ;;  %v2942_v18 = vld [vmem:[#allocation2 + $0x44] sm:$0xf] }
 0x196   : > { %5107 = vmatmul.mubr.bf16.vlgmr.msra.gmra.mrb[0].mxu0 %v4528_v41  ;;  %v2692_v40 = vrot.slane %v2691_v27, 4  ;;  %v5496_v41 = vld [vmem:[%s6419_s3 + $0x128] sm:$0xff]   ;;  %v2955_v54 = vrot.slane %v2953_v35, 4  ;;  %v2958_v21 = vrot.slane %v2956_v20, 5  ;;  %v5537_v20 = vld [vmem:[%s6421_s5 + $0x10] sm:$0xff]  }
 0x197   : > { %5110 = vmatprep.mubr.bf16.mxu0 %v4529_v62  ;;  %5115 = vmatpush3.bf16.msra.mxu0 %v5479_v55  ;;  %v2683_v48 = vsel %vm5968_vm12, %v2678_v43, %v2682_v61  ;;  %v5495_v55 = vld [vmem:[%s6419_s3 + $0x120] sm:$0xff]   ;;  %v2743_v62 = vrot.slane %v2741_v46, 4  ;;  %v2939_v46 = vld [vmem:[#allocation2 + $0x2c] sm:$0x1] }
 0x198   : > { %5116 = vmatprep.subr.bf16.mxu0 %v5480_v59  ;;  %v2697_v10 = vsel %vm5968_vm12, %v2692_v40, %v2696_v44  ;;  %v2760_v40 = vrot.slane %v2758_v15, 5 }
 0x199   : > { %v4583_v52 = vcombine.low %v2683_v48, %v2697_v10  ;;  %v2747_v3 = vor.u32 %v2746_v38, %v2743_v62  ;;  %v2669_v10 = vld [vmem:[#allocation2 + $0x88] sm:$0x1]  ;;  %v2976_v62 = vshll.u32 %v2939_v46, 16 }
 0x19a   : > { %v2761_v56 = vor.u32 %v2760_v40, %v2757_v36  ;;  %v5504_v40 = vld [vmem:[%s6419_s3 + $0x168] sm:$0xff]  }
 0x19b   : > { %5117 = vmatpush3.bf16.msra.mxu0 %v5480_v59  ;;  %v2732_v59 = vrot.slane %v2730_v45, 5  ;;  %v2748_v44 = vrot.slane %v2747_v3, 4  ;;  %v2778_v45 = vshll.u32 %v2669_v10, 16  ;;  %v5535_v3 = vld [vmem:[%s6421_s5] sm:$0xff]  }
 0x19c   : > { %5118 = vmatprep.subr.bf16.mxu0 %v5481_v1  ;;  %v2762_v63 = vrot.slane %v2761_v56, 4  ;;  %5258 = vmatprep.subr.bf16.mxu1 %v5535_v3 }
 0x19d   : > { %v2733_v11 = vor.u32 %v2732_v59, %v2729_v58  ;;  %v5500_v58 = vld [vmem:[%s6419_s3 + $0x148] sm:$0xff]   ;;  %5259 = vmatpush3.bf16.msra.mxu1 %v5535_v3 }
 0x19e   : > { %5111 = vmatmul.mubr.bf16.gmra.mrb[4].mxu0 %v4530_v5  ;;  %v2665_v5 = vld [vmem:[#allocation2 + $0x68] sm:$0x1] }
 0x19f   : > { %5119 = vmatpush3.bf16.msra.mxu0 %v5481_v1  ;;  %5130 = vmatprep.mubr.bf16.mxu0 %v5482_v30  ;;  %v2701_v1 = vrot.slane %v2699_v51, 4  ;;  %v5497_v30 = vld [vmem:[%s6419_s3 + $0x130] sm:$0xff]   ;;  %v2750_v29 = vshll.u32 %v2665_v5, 16 }
 0x1a0   : > { %5120 = vmatprep.subr.bf16.mxu0 %v5483_v6  ;;  %v5501_v5 = vld [vmem:[%s6419_s3 + $0x150] sm:$0xff]  }
 0x1a1   : > { %v2705_v22 = vor.u32 %v2704_v2, %v2701_v1  ;;  %v2752_v61 = vrot.slane %v2750_v29, 5  ;;  %v2780_v1 = vrot.slane %v2778_v45, 5  ;;  %v2962_v2 = vshll.u32 %v2937_v57, 16  ;;  %v5536_v29 = vld [vmem:[%s6421_s5 + $0x8] sm:$0xff]  }
 0x1a2   : > { %5260 = vmatprep.subr.bf16.mxu1 %v5536_v29 }
 0x1a3   : > { %5121 = vmatpush3.bf16.msra.mxu0 %v5483_v6  ;;  %v2938_v6 = vld [vmem:[#allocation2 + $0x24] sm:$0xf]  ;;  %v2753_v51 = vsel %vm5968_vm12, %v2748_v44, %v2752_v61  ;;  %v2948_v44 = vld [vmem:[#allocation2 + $0x74] sm:$0xf]  ;;  %5261 = vmatpush3.bf16.msra.mxu1 %v5536_v29 }
 0x1a4   : > { %5122 = vmatprep.subr.bf16.mxu0 %v5484_v37  ;;  %v2967_v14 = vshrl.u32 %v2938_v6, 16  ;;  %v2950_v61 = vld [vmem:[#allocation2 + $0x84] sm:$0xf]  ;;  %5262 = vmatprep.subr.bf16.mxu1 %v5537_v20  ;;  %v3037_v45 = vshrl.u32 %v2948_v44, 16  ;;  %v3040_v46 = vshll.u32 %v2948_v44, 16 }
 0x1a5   : > { %v5510_v44 = vld [vmem:[#allocation2 + $0xa4] ss:$16 sps:$4 sm:$0xff]  }
 0x1a7   : > { %5123 = vmatpush3.bf16.msra.mxu0 %v5484_v37  ;;  %v2659_v37 = vld [vmem:[#allocation2 + $0x38] sm:$0x1]  ;;  %5263 = vmatpush3.bf16.msra.mxu1 %v5537_v20 }
 0x1a8   : > { %5124 = vmatprep.subr.bf16.mxu0 %v5485_v9  ;;  %v2708_v25 = vshll.u32 %v2659_v37, 16 }
 0x1ab   : > { %5125 = vmatpush3.bf16.msra.mxu0 %v5485_v9  ;;  %v2661_v9 = vld [vmem:[#allocation2 + $0x48] sm:$0x1] }
 0x1ac   : > { %5126 = vmatprep.subr.bf16.mxu0 %v5486_v12  ;;  %v2722_v27 = vshll.u32 %v2661_v9, 16 }
 0x1ae   : > { %v2724_v50 = vrot.slane %v2722_v27, 5  ;;  %v2998_v27 = vshll.u32 %v2942_v18, 16 }
 0x1af   : > { %5127 = vmatpush3.bf16.msra.mxu0 %v5486_v12  ;;  %v2736_v12 = vshll.u32 %v2663_v60, 16  ;;  %v2959_v60 = vor.u32 %v2958_v21, %v2955_v54  ;;  %v2947_v54 = vld [vmem:[#allocation2 + $0x6c] sm:$0x1]  ;;  %v5505_v21 = vld [vmem:[%s6419_s3 + $0x170] sm:$0xff]  }
 0x1b0   : > { %5128 = vmatprep.subr.bf16.mxu0 %v5487_v17 }
 0x1b3   : > { %5129 = vmatpush3.bf16.msra.mxu0 %v5487_v17  ;;  %v2772_v17 = vshll.u32 %v2668_v0, 16 }
 0x1b4   : > { %5138 = vmatprep.subr.bf16.mxu0 %v5489_v19 }
 0x1b5   : > { %v2774_v43 = vrot.slane %v2772_v17, 5 }
 0x1b6   : > { %5131 = vmatmul.mubr.bf16.vlgmr.msra.gmra.mrb[0].mxu0 %v5488_v32  ;;  %v2734_v32 = vrot.slane %v2733_v11, 4  ;;  %v2964_v11 = vrot.slane %v2962_v2, 5  ;;  %v3042_v2 = vrot.slane %v3040_v46, 5  ;;  %v3391_v46 = vld [vmem:[#allocation2 + $0xb8] sm:$0x1] }
 0x1b7   : > { %5134 = vmatprep.mubr.bf16.mxu0 %v5490_v39  ;;  %5139 = vmatpush3.bf16.msra.mxu0 %v5489_v19  ;;  %v2970_v19 = vshll.u32 %v2938_v6, 16  ;;  %v2667_v39 = vld [vmem:[#allocation2 + $0x78] sm:$0x1]  ;;  %v2960_v6 = vrot.slane %v2959_v60, 4 }
 0x1b8   : > { %5140 = vmatprep.subr.bf16.mxu0 %v5491_v34  ;;  %v2764_v7 = vshll.u32 %v2667_v39, 16 }
 0x1b9   : > { %v2972_v48 = vrot.slane %v2970_v19, 5  ;;  %v2965_v15 = vsel %vm5968_vm12, %v2960_v6, %v2964_v11  ;;  %v2946_v19 = vld [vmem:[#allocation2 + $0x64] sm:$0xf]  ;;  %v2951_v11 = vld [vmem:[#allocation2 + $0x8c] sm:$0x1] }
 0x1ba   : > { %v2766_v59 = vrot.slane %v2764_v7, 5  ;;  %v3026_v35 = vshll.u32 %v2946_v19, 16  ;;  %v2945_v7 = vld [vmem:[#allocation2 + $0x5c] sm:$0x1] }
 0x1bb   : > { %5141 = vmatpush3.bf16.msra.mxu0 %v5491_v34  ;;  %v2738_v34 = vrot.slane %v2736_v12, 5 }
 0x1bc   : > { %5142 = vmatprep.subr.bf16.mxu0 %v5493_v42  ;;  %v2767_v37 = vsel %vm5968_vm12, %v2762_v63, %v2766_v59 }
 0x1bd   : > { %v2739_v8 = vsel %vm5968_vm12, %v2734_v32, %v2738_v34  ;;  %v3023_v34 = vshrl.u32 %v2946_v19, 16 }
 0x1be   : > { %5135 = vmatmul.mubr.bf16.gmra.mrb[4].mxu0 %v5492_v47  ;;  %v2969_v47 = vrot.slane %v2967_v14, 4  ;;  %v4585_v38 = vcombine.low %v2739_v8, %v2753_v51  ;;  %v2944_v14 = vld [vmem:[#allocation2 + $0x54] sm:$0xf]  ;;  %v3051_v8 = vshrl.u32 %v2950_v61, 16  ;;  %v3054_v51 = vshll.u32 %v2950_v61, 16  ;;  %v5512_v61 = vld [vmem:[%s6419_s3 + $0x1a0] sm:$0xff]  }
 0x1bf   : > { %5143 = vmatpush3.bf16.msra.mxu0 %v5493_v42  ;;  %5154 = vmatprep.mubr.bf16.mxu0 %v4583_v52  ;;  %v2771_v42 = vrot.slane %v2769_v16, 4  ;;  %v2710_v52 = vrot.slane %v2708_v25, 5  ;;  %v5502_v16 = vld [vmem:[%s6419_s3 + $0x158] sm:$0xff]   ;;  %v2940_v25 = vld [vmem:[#allocation2 + $0x34] sm:$0xf]  ;;  %v3012_v32 = vshll.u32 %v2944_v14, 16 }
 0x1c0   : > { %5144 = vmatprep.subr.bf16.mxu0 %v5494_v49  ;;  %v2973_v23 = vor.u32 %v2972_v48, %v2969_v47  ;;  %v2981_v39 = vshrl.u32 %v2940_v25, 16  ;;  %v2984_v36 = vshll.u32 %v2940_v25, 16  ;;  %v3025_v48 = vrot.slane %v3023_v34, 4 }
 0x1c1   : > { %v2775_v24 = vor.u32 %v2774_v43, %v2771_v42  ;;  %v3000_v43 = vrot.slane %v2998_v27, 5  ;;  %v3014_v47 = vrot.slane %v3012_v32, 5  ;;  %v5508_v27 = vld [vmem:[%s6419_s3 + $0x188] sm:$0xff]  }
 0x1c2   : > { %v2974_v4 = vrot.slane %v2973_v23, 4 }
 0x1c3   : > { %5145 = vmatpush3.bf16.msra.mxu0 %v5494_v49  ;;  %v2706_v49 = vrot.slane %v2705_v22, 4  ;;  %v2776_v0 = vrot.slane %v2775_v24, 4  ;;  %v5503_v22 = vld [vmem:[%s6419_s3 + $0x160] sm:$0xff]   ;;  %v2941_v24 = vld [vmem:[#allocation2 + $0x3c] sm:$0x1] }
 0x1c4   : > { %5146 = vmatprep.subr.bf16.mxu0 %v5495_v55 }
 0x1c5   : > { %v2711_v31 = vsel %vm5968_vm12, %v2706_v49, %v2710_v52  ;;  %v2781_v9 = vsel %vm5968_vm12, %v2776_v0, %v2780_v1  ;;  %v3028_v49 = vrot.slane %v3026_v35, 5  ;;  %v2983_v52 = vrot.slane %v2981_v39, 4  ;;  %v2949_v0 = vld [vmem:[#allocation2 + $0x7c] sm:$0x1]  ;;  %v5509_v39 = vld [vmem:[%s6419_s3 + $0x190] sm:$0xff]  }
 0x1c6   : > { %v4586_v13 = vcombine.low %v2767_v37, %v2781_v9  ;;  %v3039_v1 = vrot.slane %v3037_v45, 4 }
 0x1c7   : > { %5147 = vmatpush3.bf16.msra.mxu0 %v5495_v55  ;;  %v2725_v55 = vsel %vm5968_vm12, %v2720_v26, %v2724_v50  ;;  %v2995_v26 = vshrl.u32 %v2942_v18, 16  ;;  %v5538_v50 = vld [vmem:[%s6421_s5 + $0x18] sm:$0xff]   ;;  %v3029_v57 = vor.u32 %v3028_v49, %v3025_v48  ;;  %v5514_v48 = vld [vmem:[%s6419_s3 + $0x1b0] sm:$0xff]   ;;  %v3388_v49 = vld [vmem:[#allocation2 + $0xa0] sm:$0xf] }
 0x1c8   : > { %5148 = vmatprep.subr.bf16.mxu0 %v5496_v41  ;;  %5264 = vmatprep.subr.bf16.mxu1 %v5538_v50  ;;  %v3043_v3 = vor.u32 %v3042_v2, %v3039_v1  ;;  %v5520_v2 = vld [vmem:[#allocation2 + $0x104] ss:$16 sps:$4 sm:$0xff]  }
 0x1c9   : > { %v2997_v42 = vrot.slane %v2995_v26, 4  ;;  %5265 = vmatpush3.bf16.msra.mxu1 %v5538_v50  ;;  %v3030_v37 = vrot.slane %v3029_v57, 4 }
 0x1ca   : > { %v3044_v34 = vrot.slane %v3043_v3, 4 }
 0x1cb   : > { %5149 = vmatpush3.bf16.msra.mxu0 %v5496_v41  ;;  %v4584_v41 = vcombine.low %v2711_v31, %v2725_v55  ;;  %v2943_v55 = vld [vmem:[#allocation2 + $0x4c] sm:$0x1]  ;;  %v3001_v56 = vor.u32 %v3000_v43, %v2997_v42  ;;  %v3018_v31 = vshll.u32 %v2945_v7, 16  ;;  %v5511_v43 = vld [vmem:[%s6419_s3 + $0x198] sm:$0xff]   ;;  %v3405_v7 = vshrl.u32 %v3388_v49, 16 }
 0x1cc   : > { %5150 = vmatprep.subr.bf16.mxu0 %v5497_v30  ;;  %v3004_v60 = vshll.u32 %v2943_v55, 16 }
 0x1cd   : > { %v3002_v63 = vrot.slane %v3001_v56, 4  ;;  %v5517_v56 = vld [vmem:[%s6419_s3 + $0x1c0] sm:$0xff]  }
 0x1cf   : > { %5151 = vmatpush3.bf16.msra.mxu0 %v5497_v30  ;;  %v2978_v30 = vrot.slane %v2976_v62, 5  ;;  %v5506_v62 = vld [vmem:[%s6419_s3 + $0x178] sm:$0xff]  }
 0x1d0   : > { %5152 = vmatprep.subr.bf16.mxu0 %v5498_v28 }
 0x1d1   : > { %v2979_v12 = vsel %vm5968_vm12, %v2974_v4, %v2978_v30  ;;  %v3053_v4 = vrot.slane %v3051_v8, 4  ;;  %v3020_v30 = vrot.slane %v3018_v31, 5  ;;  %v5519_v31 = vld [vmem:[%s6419_s3 + $0x1c8] sm:$0xff]  }
 0x1d2   : > { %v4611_v17 = vcombine.low %v2965_v15, %v2979_v12 }
 0x1d3   : > { %5153 = vmatpush3.bf16.msra.mxu0 %v5498_v28  ;;  %v3009_v28 = vshrl.u32 %v2944_v14, 16  ;;  %v3060_v14 = vshll.u32 %v2951_v11, 16  ;;  %v3398_v11 = vld [vmem:[#allocation2 + $0xf0] sm:$0xf] }
 0x1d4   : > { %5162 = vmatprep.subr.bf16.mxu0 %v5499_v53  ;;  %v3478_v3 = vshll.u32 %v3398_v11, 16 }
 0x1d5   : > { %v3011_v10 = vrot.slane %v3009_v28, 4  ;;  %v3062_v20 = vrot.slane %v3060_v14, 5 }
 0x1d6   : > { %5155 = vmatmul.mubr.bf16.vlgmr.msra.gmra.mrb[0].mxu0 %v4584_v41  ;;  %v3032_v41 = vshll.u32 %v2947_v54, 16  ;;  %v3408_v54 = vshll.u32 %v3388_v49, 16 }
 0x1d7   : > { %5158 = vmatprep.mubr.bf16.mxu0 %v4585_v38  ;;  %5163 = vmatpush3.bf16.msra.mxu0 %v5499_v53  ;;  %v2986_v53 = vrot.slane %v2984_v36, 5  ;;  %v3015_v23 = vor.u32 %v3014_v47, %v3011_v10  ;;  %v2990_v38 = vshll.u32 %v2941_v24, 16  ;;  %v5513_v10 = vld [vmem:[%s6419_s3 + $0x1a8] sm:$0xff]   ;;  %v3390_v47 = vld [vmem:[#allocation2 + $0xb0] sm:$0xf]  ;;  %v3407_v24 = vrot.slane %v3405_v7, 4 }
 0x1d8   : > { %5164 = vmatprep.subr.bf16.mxu0 %v5500_v58  ;;  %v3034_v9 = vrot.slane %v3032_v41, 5  ;;  %v3419_v50 = vshrl.u32 %v3390_v47, 16  ;;  %v3410_v45 = vrot.slane %v3408_v54, 5  ;;  %v3428_v41 = vshll.u32 %v3391_v46, 16  ;;  %v3670_v7 = vld [vmem:[#allocation2 + $0xa4] sm:$0xf] }
 0x1d9   : > { %v2987_v59 = vor.u32 %v2986_v53, %v2983_v52  ;;  %v3016_v6 = vrot.slane %v3015_v23, 4  ;;  %v2992_v15 = vrot.slane %v2990_v38, 5  ;;  %v3422_v52 = vshll.u32 %v3390_v47, 16  ;;  %v5515_v53 = vld [vmem:[%s6419_s3 + $0x1b8] sm:$0xff]   ;;  %v5516_v23 = vld [vmem:[#allocation2 + $0xc4] ss:$16 sps:$4 sm:$0xff]  }
 0x1da   : > { %v3411_v57 = vor.u32 %v3410_v45, %v3407_v24 }
 0x1db   : > { %5165 = vmatpush3.bf16.msra.mxu0 %v5500_v58  ;;  %v5539_v58 = vld [vmem:[%s6421_s5 + $0x20] sm:$0xff]   ;;  %v2988_v12 = vrot.slane %v2987_v59, 4  ;;  %v3021_v19 = vsel %vm5968_vm12, %v3016_v6, %v3020_v30  ;;  %v3424_v55 = vrot.slane %v3422_v52, 5  ;;  %v3394_v30 = vld [vmem:[#allocation2 + $0xd0] sm:$0xf] }
 0x1dc   : > { %5166 = vmatprep.subr.bf16.mxu0 %v5501_v5  ;;  %5266 = vmatprep.subr.bf16.mxu1 %v5539_v58  ;;  %v3412_v38 = vrot.slane %v3411_v57, 4  ;;  %v3687_v57 = vshrl.u32 %v3670_v7, 16 }
 0x1dd   : > { %5267 = vmatpush3.bf16.msra.mxu1 %v5539_v58  ;;  %v2993_v25 = vsel %vm5968_vm12, %v2988_v12, %v2992_v15  ;;  %v5518_v58 = vld [vmem:[#allocation2 + $0xe4] ss:$16 sps:$4 sm:$0xff]   ;;  %v3450_v15 = vshll.u32 %v3394_v30, 16 }
 0x1de   : > { %5159 = vmatmul.mubr.bf16.gmra.mrb[4].mxu0 %v4586_v13  ;;  %v3006_v13 = vrot.slane %v3004_v60, 5  ;;  %v5523_v12 = vld [vmem:[%s6419_s3 + $0x1e0] sm:$0xff]  }
 0x1df   : > { %5167 = vmatpush3.bf16.msra.mxu0 %v5501_v5  ;;  %5178 = vmatprep.mubr.bf16.mxu0 %v4611_v17  ;;  %v3056_v5 = vrot.slane %v3054_v51, 5  ;;  %v3046_v17 = vshll.u32 %v2949_v0, 16  ;;  %v3389_v51 = vld [vmem:[#allocation2 + $0xa8] sm:$0x1] }
 0x1e0   : > { %5168 = vmatprep.subr.bf16.mxu0 %v5502_v16  ;;  %v3007_v18 = vsel %vm5968_vm12, %v3002_v63, %v3006_v13  ;;  %v3414_v59 = vshll.u32 %v3389_v51, 16  ;;  %v3430_v63 = vrot.slane %v3428_v41, 5  ;;  %v3447_v13 = vshrl.u32 %v3394_v30, 16  ;;  %v5526_v51 = vld [vmem:[%s6419_s3 + $0x1f8] sm:$0xff]  }
 0x1e1   : > { %v3057_v29 = vor.u32 %v3056_v5, %v3053_v4  ;;  %v4612_v26 = vcombine.low %v2993_v25, %v3007_v18  ;;  %v3048_v28 = vrot.slane %v3046_v17, 5  ;;  %v5522_v5 = vld [vmem:[%s6419_s3 + $0x1d8] sm:$0xff]   ;;  %v3475_v18 = vshrl.u32 %v3398_v11, 16 }
 0x1e2   : > { %v3416_v0 = vrot.slane %v3414_v59, 5  ;;  %v3449_v25 = vrot.slane %v3447_v13, 4  ;;  %v3690_v41 = vshll.u32 %v3670_v7, 16  ;;  %v3689_v11 = vrot.slane %v3687_v57, 4 }
 0x1e3   : > { %5169 = vmatpush3.bf16.msra.mxu0 %v5502_v16  ;;  %v5507_v16 = vld [vmem:[%s6419_s3 + $0x180] sm:$0xff]   ;;  %v3058_v35 = vrot.slane %v3057_v29, 4  ;;  %v3049_v36 = vsel %vm5968_vm12, %v3044_v34, %v3048_v28  ;;  %v3477_v34 = vrot.slane %v3475_v18, 4  ;;  %v3673_v18 = vld [vmem:[#allocation2 + $0xbc] sm:$0x1] }
 0x1e4   : > { %5170 = vmatprep.subr.bf16.mxu0 %v5503_v22  ;;  %v3417_v4 = vsel %vm5968_vm12, %v3412_v38, %v3416_v0 }
 0x1e7   : > { %5171 = vmatpush3.bf16.msra.mxu0 %v5503_v22  ;;  %v3035_v22 = vsel %vm5968_vm12, %v3030_v37, %v3034_v9  ;;  %v3396_v37 = vld [vmem:[#allocation2 + $0xe0] sm:$0xf] }
 0x1e8   : > { %5172 = vmatprep.subr.bf16.mxu0 %v5504_v40  ;;  %v4613_v32 = vcombine.low %v3021_v19, %v3035_v22  ;;  %v3392_v9 = vld [vmem:[#allocation2 + $0xc0] sm:$0xf]  ;;  %v3464_v17 = vshll.u32 %v3396_v37, 16  ;;  %v3397_v19 = vld [vmem:[#allocation2 + $0xe8] sm:$0x1] }
 0x1e9   : > { %v3433_v29 = vshrl.u32 %v3392_v9, 16  ;;  %v3436_v14 = vshll.u32 %v3392_v9, 16  ;;  %v5524_v22 = vld [vmem:[%s6419_s3 + $0x1e8] sm:$0xff]  }
 0x1ea   : > { %v3466_v28 = vrot.slane %v3464_v17, 5 }
 0x1eb   : > { %5173 = vmatpush3.bf16.msra.mxu0 %v5504_v40  ;;  %v3063_v40 = vsel %vm5968_vm12, %v3058_v35, %v3062_v20  ;;  %v3480_v35 = vrot.slane %v3478_v3, 5  ;;  %v3400_v20 = vld [vmem:[#allocation2 + $0x100] sm:$0xf] }
 0x1ec   : > { %5174 = vmatprep.subr.bf16.mxu0 %v5505_v21  ;;  %v4614_v42 = vcombine.low %v3049_v36, %v3063_v40  ;;  %v3435_v36 = vrot.slane %v3433_v29, 4  ;;  %v3438_v40 = vrot.slane %v3436_v14, 5  ;;  %v3489_v49 = vshrl.u32 %v3400_v20, 16 }
 0x1ed   : > { %v3481_v54 = vor.u32 %v3480_v35, %v3477_v34 }
 0x1ee   : > { %v3439_v24 = vor.u32 %v3438_v40, %v3435_v36  ;;  %v3491_v59 = vrot.slane %v3489_v49, 4 }
 0x1ef   : > { %5175 = vmatpush3.bf16.msra.mxu0 %v5505_v21  ;;  %v3421_v21 = vrot.slane %v3419_v50, 4  ;;  %v3492_v50 = vshll.u32 %v3400_v20, 16 }
 0x1f0   : > { %5176 = vmatprep.subr.bf16.mxu0 %v5506_v62 }
 0x1f1   : > { %v3425_v8 = vor.u32 %v3424_v55, %v3421_v21 }
 0x1f3   : > { %5177 = vmatpush3.bf16.msra.mxu0 %v5506_v62  ;;  %v3426_v60 = vrot.slane %v3425_v8, 4  ;;  %v5521_v62 = vld [vmem:[%s6419_s3 + $0x1d0] sm:$0xff]  }
 0x1f4   : > { %5186 = vmatprep.subr.bf16.mxu0 %v5507_v16 }
 0x1f5   : > { %v3431_v1 = vsel %vm5968_vm12, %v3426_v60, %v3430_v63  ;;  %v3494_v60 = vrot.slane %v3492_v50, 5  ;;  %v3482_v63 = vrot.slane %v3481_v54, 4 }
 0x1f6   : > { %5179 = vmatmul.mubr.bf16.vlgmr.msra.gmra.mrb[0].mxu0 %v4612_v26  ;;  %v4667_v6 = vcombine.low %v3417_v4, %v3431_v1  ;;  %v3452_v26 = vrot.slane %v3450_v15, 5  ;;  %v3403_v1 = vld [vmem:[#allocation2 + $0x118] sm:$0x1] }
 0x1f7   : > { %5182 = vmatprep.mubr.bf16.mxu0 %v4613_v32  ;;  %5187 = vmatpush3.bf16.msra.mxu0 %v5507_v16  ;;  %v3461_v16 = vshrl.u32 %v3396_v37, 16  ;;  %v3399_v32 = vld [vmem:[#allocation2 + $0xf8] sm:$0x1]  ;;  %v5527_v37 = vld [vmem:[%s6419_s3 + $0x200] sm:$0xff]   ;;  %v3495_v15 = vor.u32 %v3494_v60, %v3491_v59  ;;  %v3512_v17 = vshll.u32 %v3403_v1, 16 }
 0x1f8   : > { %5188 = vmatprep.subr.bf16.mxu0 %v5508_v27  ;;  %v3453_v47 = vor.u32 %v3452_v26, %v3449_v25  ;;  %v3484_v21 = vshll.u32 %v3399_v32, 16  ;;  %v5528_v26 = vld [vmem:[%s6419_s3 + $0x208] sm:$0xff]   ;;  %v3710_v32 = vshll.u32 %v3673_v18, 16 }
 0x1f9   : > { %v3496_v35 = vrot.slane %v3495_v15, 4 }
 0x1fa   : > { %v3486_v0 = vrot.slane %v3484_v21, 5  ;;  %v5530_v21 = vld [vmem:[%s6419_s3 + $0x218] sm:$0xff]  }
 0x1fb   : > { %5189 = vmatpush3.bf16.msra.mxu0 %v5508_v27  ;;  %v3463_v27 = vrot.slane %v3461_v16, 4 }
 0x1fc   : > { %5190 = vmatprep.subr.bf16.mxu0 %v5509_v39  ;;  %v3487_v29 = vsel %vm5968_vm12, %v3482_v63, %v3486_v0  ;;  %v3682_v0 = vld [vmem:[#allocation2 + $0x104] sm:$0xf] }
 0x1fd   : > { %v3774_v18 = vshll.u32 %v3682_v0, 16 }
 0x1fe   : > { %5183 = vmatmul.mubr.bf16.gmra.mrb[4].mxu0 %v4614_v42  ;;  %v3470_v42 = vshll.u32 %v3397_v19, 16 }
 0x1ff   : > { %5191 = vmatpush3.bf16.msra.mxu0 %v5509_v39  ;;  %5202 = vmatprep.mubr.bf16.mxu0 %v5510_v44  ;;  %v3402_v39 = vld [vmem:[#allocation2 + $0x110] sm:$0xf] }
 0x200   : > { %5192 = vmatprep.subr.bf16.mxu0 %v5511_v43  ;;  %v5525_v44 = vld [vmem:[%s6419_s3 + $0x1f0] sm:$0xff]   ;;  %v3503_v52 = vshrl.u32 %v3402_v39, 16  ;;  %v3472_v8 = vrot.slane %v3470_v42, 5 }
 0x203   : > { %5193 = vmatpush3.bf16.msra.mxu0 %v5511_v43  ;;  %v3672_v43 = vld [vmem:[#allocation2 + $0xb4] sm:$0xf] }
 0x204   : > { %5194 = vmatprep.subr.bf16.mxu0 %v5512_v61  ;;  %v3701_v55 = vshrl.u32 %v3672_v43, 16 }
 0x207   : > { %5195 = vmatpush3.bf16.msra.mxu0 %v5512_v61  ;;  %v3393_v61 = vld [vmem:[#allocation2 + $0xc8] sm:$0x1] }
 0x208   : > { %5196 = vmatprep.subr.bf16.mxu0 %v5513_v10  ;;  %v3442_v45 = vshll.u32 %v3393_v61, 16  ;;  %v5529_v61 = vld [vmem:[%s6419_s3 + $0x210] sm:$0xff]  }
 0x20a   : > { %v3444_v30 = vrot.slane %v3442_v45, 5  ;;  %v3680_v45 = vld [vmem:[#allocation2 + $0xf4] sm:$0xf] }
 0x20b   : > { %5197 = vmatpush3.bf16.msra.mxu0 %v5513_v10  ;;  %v3395_v10 = vld [vmem:[#allocation2 + $0xd8] sm:$0x1] }
 0x20c   : > { %5198 = vmatprep.subr.bf16.mxu0 %v5514_v48  ;;  %v3456_v46 = vshll.u32 %v3395_v10, 16 }
 0x20f   : > { %5199 = vmatpush3.bf16.msra.mxu0 %v5514_v48  ;;  %v3467_v48 = vor.u32 %v3466_v28, %v3463_v27 }
 0x210   : > { %5200 = vmatprep.subr.bf16.mxu0 %v5515_v53 }
 0x213   : > { %5201 = vmatpush3.bf16.msra.mxu0 %v5515_v53  ;;  %v3506_v53 = vshll.u32 %v3402_v39, 16  ;;  %v3514_v39 = vrot.slane %v3512_v17, 5  ;;  %v3771_v17 = vshrl.u32 %v3682_v0, 16 }
 0x214   : > { %5210 = vmatprep.subr.bf16.mxu0 %v5517_v56 }
 0x215   : > { %v3508_v38 = vrot.slane %v3506_v53, 5 }
 0x216   : > { %5203 = vmatmul.mubr.bf16.vlgmr.msra.gmra.mrb[0].mxu0 %v5516_v23  ;;  %v3454_v23 = vrot.slane %v3453_v47, 4  ;;  %v3712_v47 = vrot.slane %v3710_v32, 5 }
 0x217   : > { %5206 = vmatprep.mubr.bf16.mxu0 %v5518_v58  ;;  %5211 = vmatpush3.bf16.msra.mxu0 %v5517_v56  ;;  %v3704_v56 = vshll.u32 %v3672_v43, 16  ;;  %v3401_v58 = vld [vmem:[#allocation2 + $0x108] sm:$0x1] }
 0x218   : > { %5212 = vmatprep.subr.bf16.mxu0 %v5519_v31  ;;  %v3498_v9 = vshll.u32 %v3401_v58, 16  ;;  %v3760_v58 = vshll.u32 %v3680_v45, 16 }
 0x219   : > { %v3706_v4 = vrot.slane %v3704_v56, 5  ;;  %v3676_v56 = vld [vmem:[#allocation2 + $0xd4] sm:$0xf] }
 0x21a   : > { %v3500_v27 = vrot.slane %v3498_v9, 5  ;;  %v3679_v9 = vld [vmem:[#allocation2 + $0xec] sm:$0x1] }
 0x21b   : > { %5213 = vmatpush3.bf16.msra.mxu0 %v5519_v31  ;;  %v3468_v31 = vrot.slane %v3467_v48, 4 }
 0x21c   : > { %5214 = vmatprep.subr.bf16.mxu0 %v5521_v62  ;;  %v3501_v49 = vsel %vm5968_vm12, %v3496_v35, %v3500_v27  ;;  %v3683_v35 = vld [vmem:[#allocation2 + $0x10c] sm:$0x1] }
 0x21d   : > { %v3473_v3 = vsel %vm5968_vm12, %v3468_v31, %v3472_v8  ;;  %v3674_v8 = vld [vmem:[#allocation2 + $0xc4] sm:$0xf] }
 0x21e   : > { %5207 = vmatmul.mubr.bf16.gmra.mrb[4].mxu0 %v5520_v2  ;;  %v3703_v2 = vrot.slane %v3701_v55, 4  ;;  %v4669_v34 = vcombine.low %v3473_v3, %v3487_v29  ;;  %v3715_v59 = vshrl.u32 %v3674_v8, 16  ;;  %v3718_v60 = vshll.u32 %v3674_v8, 16 }
 0x21f   : > { %5215 = vmatpush3.bf16.msra.mxu0 %v5521_v62  ;;  %5226 = vmatprep.mubr.bf16.mxu0 %v4667_v6  ;;  %v3505_v62 = vrot.slane %v3503_v52, 4  ;;  %v3458_v6 = vrot.slane %v3456_v46, 5  ;;  %v5531_v46 = vld [vmem:[%s6419_s3 + $0x220] sm:$0xff]  }
 0x220   : > { %5216 = vmatprep.subr.bf16.mxu0 %v5522_v5  ;;  %v3707_v14 = vor.u32 %v3706_v4, %v3703_v2 }
 0x221   : > { %v3459_v13 = vsel %vm5968_vm12, %v3454_v23, %v3458_v6  ;;  %v3509_v16 = vor.u32 %v3508_v38, %v3505_v62  ;;  %v3732_v23 = vshll.u32 %v3676_v56, 16  ;;  %v5532_v62 = vld [vmem:[%s6419_s3 + $0x228] sm:$0xff]   ;;  %v3684_v6 = vld [vmem:[#allocation2 + $0x114] sm:$0xf] }
 0x222   : > { %v3708_v42 = vrot.slane %v3707_v14, 4  ;;  %v3785_v3 = vshrl.u32 %v3684_v6, 16  ;;  %v3788_v29 = vshll.u32 %v3684_v6, 16 }
 0x223   : > { %5217 = vmatpush3.bf16.msra.mxu0 %v5522_v5  ;;  %v3440_v5 = vrot.slane %v3439_v24, 4  ;;  %v3510_v20 = vrot.slane %v3509_v16, 4  ;;  %v3678_v24 = vld [vmem:[#allocation2 + $0xe4] sm:$0xf]  ;;  %v3734_v63 = vrot.slane %v3732_v23, 5 }
 0x224   : > { %5218 = vmatprep.subr.bf16.mxu0 %v5523_v12  ;;  %v3713_v53 = vsel %vm5968_vm12, %v3708_v42, %v3712_v47  ;;  %v3743_v31 = vshrl.u32 %v3678_v24, 16  ;;  %v3746_v57 = vshll.u32 %v3678_v24, 16  ;;  %v3675_v16 = vld [vmem:[#allocation2 + $0xcc] sm:$0x1]  ;;  %v3790_v42 = vrot.slane %v3788_v29, 5 }
 0x225   : > { %v3445_v19 = vsel %vm5968_vm12, %v3440_v5, %v3444_v30  ;;  %v3515_v50 = vsel %vm5968_vm12, %v3510_v20, %v3514_v39  ;;  %v3762_v5 = vrot.slane %v3760_v58, 5  ;;  %v3717_v30 = vrot.slane %v3715_v59, 4 }
 0x226   : > { %v4668_v25 = vcombine.low %v3445_v19, %v3459_v13  ;;  %v4670_v7 = vcombine.low %v3501_v49, %v3515_v50  ;;  %v3745_v1 = vrot.slane %v3743_v31, 4  ;;  %v3748_v2 = vrot.slane %v3746_v57, 5  ;;  %v3677_v13 = vld [vmem:[#allocation2 + $0xdc] sm:$0x1] }
 0x227   : > { %5219 = vmatpush3.bf16.msra.mxu0 %v5523_v12  ;;  %v3692_v12 = vrot.slane %v3690_v41, 5  ;;  %v3757_v41 = vshrl.u32 %v3680_v45, 16  ;;  %v3752_v19 = vshll.u32 %v3679_v9, 16  ;;  %v3738_v27 = vshll.u32 %v3677_v13, 16  ;;  %v3685_v50 = vld [vmem:[#allocation2 + $0x11c] sm:$0x1] }
 0x228   : > { %5220 = vmatprep.subr.bf16.mxu0 %v5524_v22  ;;  %v3749_v14 = vor.u32 %v3748_v2, %v3745_v1  ;;  %v3724_v32 = vshll.u32 %v3675_v16, 16  ;;  %v3773_v20 = vrot.slane %v3771_v17, 4  ;;  %v3776_v39 = vrot.slane %v3774_v18, 5  ;;  %v5540_v2 = vld [vmem:[%s6421_s5 + $0x28] sm:$0xff]  }
 0x229   : > { %v3693_v28 = vor.u32 %v3692_v12, %v3689_v11  ;;  %v3759_v4 = vrot.slane %v3757_v41, 4  ;;  %v3681_v11 = vld [vmem:[#allocation2 + $0xfc] sm:$0x1]  ;;  %v5533_v12 = vld [vmem:[%s6419_s3 + $0x230] sm:$0xff]   ;;  %v3794_v24 = vshll.u32 %v3685_v50, 16  ;;  %5268 = vmatprep.subr.bf16.mxu1 %v5540_v2 }
 0x22a   : > { %5269 = vmatpush3.bf16.msra.mxu1 %v5540_v2 }
 0x22b   : > { %5221 = vmatpush3.bf16.msra.mxu0 %v5524_v22  ;;  %v3671_v22 = vld [vmem:[#allocation2 + $0xac] sm:$0x1]  ;;  %v3694_v10 = vrot.slane %v3693_v28, 4  ;;  %v5534_v28 = vld [vmem:[%s6419_s3 + $0x238] sm:$0xff]  }
 0x22c   : > { %5222 = vmatprep.subr.bf16.mxu0 %v5525_v44  ;;  %v3696_v40 = vshll.u32 %v3671_v22, 16  ;;  %v3763_v22 = vor.u32 %v3762_v5, %v3759_v4  ;;  %v5541_v4 = vld [vmem:[%s6421_s5 + $0x30] sm:$0xff]   ;;  %v5542_v5 = vld [vmem:[%s6421_s5 + $0x38] sm:$0xff]  }
 0x22d   : > { %5270 = vmatprep.subr.bf16.mxu1 %v5541_v4 }
 0x22e   : > { %v3698_v52 = vrot.slane %v3696_v40, 5  ;;  %v3787_v40 = vrot.slane %v3785_v3, 4  ;;  %v3764_v47 = vrot.slane %v3763_v22, 4  ;;  %5271 = vmatpush3.bf16.msra.mxu1 %v5541_v4 }
 0x22f   : > { %5223 = vmatpush3.bf16.msra.mxu0 %v5525_v44  ;;  %5272 = vmatprep.subr.bf16.mxu1 %v5542_v5 }
 0x230   : > { %5224 = vmatprep.subr.bf16.mxu0 %v5526_v51  ;;  %v3699_v54 = vsel %vm5968_vm12, %v3694_v10, %v3698_v52  ;;  %v3754_v10 = vrot.slane %v3752_v19, 5 }
 0x231   : > { %v4695_v55 = vcombine.low %v3699_v54, %v3713_v53  ;;  %v3740_v53 = vrot.slane %v3738_v27, 5  ;;  %v3780_v54 = vshll.u32 %v3683_v35, 16 }
 0x232   : > { %5273 = vmatpush3.bf16.msra.mxu1 %v5542_v5 }
 0x233   : > { %5225 = vmatpush3.bf16.msra.mxu0 %v5526_v51  ;;  %v3729_v51 = vshrl.u32 %v3676_v56, 16  ;;  %v3791_v56 = vor.u32 %v3790_v42, %v3787_v40  ;;  %v3782_v57 = vrot.slane %v3780_v54, 5  ;;  %5282 = vmatprep.subr.bf16.mxu1 %v5543_v33  ;;  %v5551_v54 = vld [vmem:[%s5639_s20] ss:$8 sps:$4 sm:$0xff]  }
 0x234   : > { %5234 = vmatprep.subr.bf16.mxu0 %v5527_v37 }
 0x235   : > { %v3731_v38 = vrot.slane %v3729_v51, 4 }
 0x236   : > { %5227 = vmatmul.mubr.bf16.vlgmr.msra.gmra.mrb[0].mxu0 %v4668_v25  ;;  %v3766_v25 = vshll.u32 %v3681_v11, 16 }
 0x237   : > { %v6313_v36 = vpop.f32.mrb[32].mxu1  ;;  %5230 = vmatprep.mubr.bf16.mxu0 %v4669_v34  ;;  %5235 = vmatpush3.bf16.msra.mxu0 %v5527_v37  ;;  %v3720_v37 = vrot.slane %v3718_v60, 5  ;;  %v3735_v15 = vor.u32 %v3734_v63, %v3731_v38  ;;  %v3792_v60 = vrot.slane %v3791_v56, 4  ;;  %v5548_v56 = vld [vmem:[%s6423_s7 + $0x28] sm:$0xff]  }
 0x238   : > { %v6315_v43 = vpop.f32.mrb[33].mxu1  ;;  %5236 = vmatprep.subr.bf16.mxu0 %v5528_v26  ;;  %v3768_v49 = vrot.slane %v3766_v25, 5 }
 0x239   : > { %v6317_v44 = vpop.f32.mrb[34].mxu1  ;;  %v3736_v34 = vrot.slane %v3735_v15, 4 }
 0x23a   : > { %v6322_v48 = vpop.f32.mrb[35].mxu1 }
 0x23b   : > { %5237 = vmatpush3.bf16.msra.mxu0 %v5528_v26  ;;  %v3721_v26 = vor.u32 %v3720_v37, %v3717_v30  ;;  %v4707_v30 = vld [vmem:[%s6420_s4] ss:$0 sm:$0xff] }
 0x23c   : > { %5238 = vmatprep.subr.bf16.mxu0 %v5529_v61 }
 0x23d   : > { %v3722_v52 = vrot.slane %v3721_v26, 4 }
 0x23e   : > { %5231 = vmatmul.mubr.bf16.gmra.mrb[4].mxu0 %v4670_v7  ;;  %v3726_v7 = vrot.slane %v3724_v32, 5 }
 0x23f   : > { %5239 = vmatpush3.bf16.msra.mxu0 %v5529_v61  ;;  %5250 = vmatprep.mubr.bf16.mxu0 %v4695_v55  ;;  %v3750_v61 = vrot.slane %v3749_v14, 4  ;;  %v3777_v55 = vor.u32 %v3776_v39, %v3773_v20 }
 0x240   : > { %5240 = vmatprep.subr.bf16.mxu0 %v5530_v21  ;;  %v3727_v51 = vsel %vm5968_vm12, %v3722_v52, %v3726_v7 }
 0x241   : > { %v3755_v45 = vsel %vm5968_vm12, %v3750_v61, %v3754_v10  ;;  %v3778_v59 = vrot.slane %v3777_v55, 4  ;;  %v5547_v55 = vld [vmem:[%s6423_s7 + $0x20] sm:$0xff]  }
 0x243   : > { %5241 = vmatpush3.bf16.msra.mxu0 %v5530_v21  ;;  %v3741_v21 = vsel %vm5968_vm12, %v3736_v34, %v3740_v53  ;;  %v3783_v63 = vsel %vm5968_vm12, %v3778_v59, %v3782_v57 }
 0x244   : > { %5242 = vmatprep.subr.bf16.mxu0 %v5531_v46  ;;  %v4696_v31 = vcombine.low %v3727_v51, %v3741_v21  ;;  %v5546_v21 = vld [vmem:[%s6423_s7 + $0x18] sm:$0xff]  }
 0x245   : > { %v5554_v51 = vld [vmem:[%s5639_s20 + $0x30] ss:$8 sps:$4 sm:$0xff]  }
 0x247   : > { %5243 = vmatpush3.bf16.msra.mxu0 %v5531_v46  ;;  %v3769_v46 = vsel %vm5968_vm12, %v3764_v47, %v3768_v49  ;;  %v5545_v49 = vld [vmem:[%s6423_s7 + $0x10] sm:$0xff]  }
 0x248   : > { %5244 = vmatprep.subr.bf16.mxu0 %v5532_v62  ;;  %v4697_v58 = vcombine.low %v3755_v45, %v3769_v46  ;;  %v5550_v45 = vld [vmem:[%s6423_s7 + $0x38] sm:$0xff]  }
 0x249   : > { %v5552_v46 = vld [vmem:[%s5639_s20 + $0x10] ss:$8 sps:$4 sm:$0xff]  }
 0x24b   : > { %5245 = vmatpush3.bf16.msra.mxu0 %v5532_v62  ;;  %v3796_v62 = vrot.slane %v3794_v24, 5  ;;  %v5549_v24 = vld [vmem:[%s6423_s7 + $0x30] sm:$0xff]  }
 0x24c   : > { %5246 = vmatprep.subr.bf16.mxu0 %v5533_v12 }
 0x24d   : > { %v3797_v0 = vsel %vm5968_vm12, %v3792_v60, %v3796_v62 }
 0x24e   : > { %v4698_v1 = vcombine.low %v3783_v63, %v3797_v0 }
 0x24f   : > { %5247 = vmatpush3.bf16.msra.mxu0 %v5533_v12 }
 0x250   : > { %5248 = vmatprep.subr.bf16.mxu0 %v5534_v28 }
 0x253   : > { %5249 = vmatpush3.bf16.msra.mxu0 %v5534_v28 }
 0x254   : > { %v5064_v8 = vpop.f32.mrb[36].mxu1 }
 0x255   : > { %v2050_v23 = vpop.f32.mrb[37].mxu1 }
 0x256   : > { %v5065_v41 = vpop.f32.mrb[38].mxu1  ;;  %5251 = vmatmul.mubr.bf16.vlgmr.msra.gmra.mrb[0].mxu0 %v4696_v31  ;;  %v4717_v31 = vld [vmem:[%s6424_s8] ss:$0 sm:$0xff] }
 0x257   : > { %v2053_v38 = vpop.f32.mrb[39].mxu1  ;;  %5254 = vmatprep.mubr.bf16.mxu0 %v4697_v58 }
 0x25e   : > { %5255 = vmatmul.mubr.bf16.gmra.mrb[4].mxu0 %v4698_v1 }
 0x329   : > { %v5252_v6 = vpop.f32.mrb[0].mxu0 }
 0x32a   : > { %v5306_v37 = vadd.f32 %v5252_v6, %v6313_v36  ;;  %v3913_v9 = vpop.f32.mrb[1].mxu0 }
 0x32b   : > { %v5307_v11 = vadd.f32 %v3913_v9, %v6315_v43  ;;  %v5253_v12 = vpop.f32.mrb[2].mxu0 }
 0x32c   : > { %v3961_v13 = vadd.f32 %v5306_v37, %v4707_v30  ;;  %v5308_v15 = vadd.f32 %v5253_v12, %v6317_v44  ;;  %v3916_v16 = vpop.f32.mrb[3].mxu0 }
 0x32d   : > { %v3959_v17 = vadd.f32 %v5307_v11, %v4707_v30  ;;  %v5309_v18 = vadd.f32 %v3916_v16, %v6322_v48  ;;  %v5544_v48 = vld [vmem:[%s6423_s7 + $0x8] sm:$0xff]  }
 0x32e   : > { %v3962_v3 = vadd.f32 %v5308_v15, %v4707_v30  ;;  %v3969_v14 = vmax.f32 %v3961_v13, 0.0 }
 0x32f   : > { %v3960_v29 = vadd.f32 %v5309_v18, %v4707_v30  ;;  %v3967_v22 = vmax.f32 %v3959_v17, 0.0 }
 0x330   : > { %v3970_v19 = vmax.f32 %v3962_v3, 0.0 }
 0x331   : > { %v3968_v25 = vmax.f32 %v3960_v29, 0.0  ;;  %v5256_v26 = vpop.f32.mrb[4].mxu0 }
 0x332   : > { %v3976_v27 = vpack.c.bf16 %v3970_v19, %v3969_v14  ;;  %v5310_v36 = vadd.f32 %v5256_v26, %v5064_v8  ;;  %v3929_v28 = vpop.f32.mrb[5].mxu0  ;;  %v5553_v8 = vld [vmem:[%s5639_s20 + $0x20] ss:$8 sps:$4 sm:$0xff]  }
 0x333   : > { %v5311_v32 = vadd.f32 %v3929_v28, %v2050_v23  ;;  %v5257_v43 = vpop.f32.mrb[6].mxu0  ;;  %v3975_v34 = vpack.c.bf16 %v3968_v25, %v3967_v22  ;;  %v4708_v23 = vld [vmem:[%s6422_s6] ss:$0 sm:$0xff] }
 0x334   : > { %v3965_v35 = vadd.f32 %v5310_v36, %v4707_v30  ;;  %v5312_v20 = vadd.f32 %v5257_v43, %v5065_v41  ;;  %v3932_v44 = vpop.f32.mrb[7].mxu0  ;;  %v5320_v57 = vadd.f32 %v4717_v31, %v4708_v23 }
 0x335   : > { %v3963_v39 = vadd.f32 %v5311_v32, %v4707_v30  ;;  %v5313_v40 = vadd.f32 %v3932_v44, %v2053_v38  ;;  %5274 = vmatprep.mubr.bf16.mxu1 %v3975_v34 }
 0x336   : > { %v3966_v42 = vadd.f32 %v5312_v20, %v4707_v30  ;;  %5275 = vmatmul.mubr.bf16.vlgmr.msra.gmra.mrb[40].mxu1 %v3976_v27  ;;  %v3973_v10 = vmax.f32 %v3965_v35, 0.0 }
 0x337   : > { %v3964_v61 = vadd.f32 %v5313_v40, %v4707_v30  ;;  %5283 = vmatpush3.bf16.msra.mxu1 %v5543_v33  ;;  %v3971_v50 = vmax.f32 %v3963_v39, 0.0 }
 0x338   : > { %v3974_v47 = vmax.f32 %v3966_v42, 0.0  ;;  %5284 = vmatprep.subr.bf16.mxu1 %v5544_v48 }
 0x339   : > { %v3972_v52 = vmax.f32 %v3964_v61, 0.0 }
 0x33a   : > { %v3978_v53 = vpack.c.bf16 %v3974_v47, %v3973_v10 }
 0x33b   : > { %5285 = vmatpush3.bf16.msra.mxu1 %v5544_v48  ;;  %v3977_v7 = vpack.c.bf16 %v3972_v52, %v3971_v50 }
 0x33c   : > { %5286 = vmatprep.subr.bf16.mxu1 %v5545_v49 }
 0x33d   : > { %5278 = vmatprep.mubr.bf16.mxu1 %v3977_v7 }
 0x33e   : > { %5279 = vmatmul.mubr.bf16.gmra.mrb[44].mxu1 %v3978_v53 }
 0x33f   : > { %5287 = vmatpush3.bf16.msra.mxu1 %v5545_v49  ;;  %5298 = vmatprep.mubr.bf16.mxu1 %v5551_v54 }
 0x340   : > { %5288 = vmatprep.subr.bf16.mxu1 %v5546_v21 }
 0x343   : > { %5289 = vmatpush3.bf16.msra.mxu1 %v5546_v21 }
 0x344   : > { %5290 = vmatprep.subr.bf16.mxu1 %v5547_v55 }
 0x347   : > { %5291 = vmatpush3.bf16.msra.mxu1 %v5547_v55 }
 0x348   : > { %5292 = vmatprep.subr.bf16.mxu1 %v5548_v56 }
 0x34b   : > { %5293 = vmatpush3.bf16.msra.mxu1 %v5548_v56 }
 0x34c   : > { %5294 = vmatprep.subr.bf16.mxu1 %v5549_v24 }
 0x34f   : > { %5295 = vmatpush3.bf16.msra.mxu1 %v5549_v24 }
 0x350   : > { %5296 = vmatprep.subr.bf16.mxu1 %v5550_v45 }
 0x353   : > { %5297 = vmatpush3.bf16.msra.mxu1 %v5550_v45 }
 0x356   : > { %5299 = vmatmul.mubr.bf16.vlgmr.msra.gmra.mrb[40].mxu1 %v5552_v46 }
 0x357   : > { %5302 = vmatprep.mubr.bf16.mxu1 %v5553_v8 }
 0x35e   : > { %5303 = vmatmul.mubr.bf16.gmra.mrb[44].mxu1 %v5554_v51 }
 0x429   : > { %v5300_v41 = vpop.f32.mrb[40].mxu1 }
 0x42a   : > { %v5314_v58 = vadd.f32 %v5300_v41, %v4708_v23  ;;  %v4252_v59 = vpop.f32.mrb[41].mxu1 }
 0x42b   : > { %v5316_v60 = vadd.f32 %v4708_v23, %v4252_v59  ;;  %v5301_v62 = vpop.f32.mrb[42].mxu1 }
 0x42c   : > { %v5315_v38 = vadd.f32 %v5314_v58, %v4717_v31  ;;  %v5319_v63 = vadd.f32 %v5320_v57, %v5301_v62  ;;  %v4255_v0 = vpop.f32.mrb[43].mxu1 }
 0x42d   : > { %v5317_v1 = vadd.f32 %v5316_v60, %v4717_v31  ;;  %v5321_v2 = vadd.f32 %v5320_v57, %v4255_v0 }
 0x42e   : > { %v4293_v4 = vmax.f32 %v5315_v38, 0.0  ;;  %v4294_v5 = vmax.f32 %v5319_v63, 0.0 }
 0x42f   : > { %v4291_v33 = vmax.f32 %v5317_v1, 0.0  ;;  %v4292_v6 = vmax.f32 %v5321_v2, 0.0 }
 0x430   : > { %4301 = vst [vmem:[%s332_s16 + $0x10] sm:$0xff] %v4293_v4  ;;  %4302 = vst [vmem:[%s332_s16 + $0x18] sm:$0xff] %v4294_v5 }
 0x431   : > { %4299 = vst [vmem:[%s332_s16] sm:$0xff] %v4291_v33  ;;  %4300 = vst [vmem:[%s332_s16 + $0x8] sm:$0xff] %v4292_v6  ;;  %v5304_v30 = vpop.f32.mrb[44].mxu1 }
 0x432   : > { %v5323_v37 = vadd.f32 %v5320_v57, %v5304_v30  ;;  %v4268_v9 = vpop.f32.mrb[45].mxu1 }
 0x433   : > { %v5325_v11 = vadd.f32 %v5320_v57, %v4268_v9  ;;  %v5305_v12 = vpop.f32.mrb[46].mxu1 }
 0x434   : > { %v4297_v13 = vmax.f32 %v5323_v37, 0.0  ;;  %v5327_v15 = vadd.f32 %v5320_v57, %v5305_v12  ;;  %v4271_v16 = vpop.f32.mrb[47].mxu1 }
 0x435   : > { %v4295_v17 = vmax.f32 %v5325_v11, 0.0  ;;  %v5329_v18 = vadd.f32 %v5320_v57, %v4271_v16 }
 0x436   : > { %4305 = vst [vmem:[%s332_s16 + $0x30] sm:$0xff] %v4297_v13  ;;  %v4298_v3 = vmax.f32 %v5327_v15, 0.0 }
 0x437   : > { %4303 = vst [vmem:[%s332_s16 + $0x20] sm:$0xff] %v4295_v17  ;;  %v4296_v29 = vmax.f32 %v5329_v18, 0.0 }
 0x438   : > { %4306 = vst [vmem:[%s332_s16 + $0x38] sm:$0xff] %v4298_v3 }
 0x439   : > { %4304 = vst [vmem:[%s332_s16 + $0x28] sm:$0xff] %v4296_v29 }
 0x43a PF: > { %s19_s30 = sadd.s32 1, %s5563_s30  }
 0x43b   : > { %p16_p4 = scmp.ge.s32.totalorder %s19_s30, 4  }
 0x43d   :  { %18 = sbr.rel (!%p16_p4) target bundleno = 1 (0x1), region = 98 }

</bundles_post_ra>
